<compile_context>
chip_gen: v7x
topology: tpu7x:2x2x1
jax: 0.10.0
libtpu: 0.0.40
codegen_flags: <defaults>
</compile_context>

<pallas_src>
import numpy as np
import jax
import jax.numpy as jnp
from jax.experimental import pallas as pl
from jax.experimental.pallas import tpu as pltpu


# ----------------------------- fused Pallas kernel ------------------------- #
def _make_fused_kernel(N, layers, n_hidden):
    """Builds a kernel running every conv layer back-to-back with VMEM-resident activations.

    layers: list of static per-layer shape dicts in execution order (hidden convs first,
            then the two output convs): {H, W, Cin, KH, KW, Cout, is_output}.
    Kernel ref layout:
      inputs : x_flat, (w0, b0), (w1, b1), ...
      outputs: one (N*Ho*Wo, Cout) ref per output conv
      scratch: n_hidden flat activation buffers, then one im2col patch buffer per layer
    """
    n_layers = len(layers)
    n_out = n_layers - n_hidden

    def kernel(*refs):
        x_ref = refs[0]
        wb = refs[1:1 + 2 * n_layers]
        out_refs = refs[1 + 2 * n_layers: 1 + 2 * n_layers + n_out]
        scr = refs[1 + 2 * n_layers + n_out:]
        act_refs = [x_ref] + list(scr[:n_hidden])   # flat (N*H*W, C) activations
        patch_refs = list(scr[n_hidden:])           # per-layer im2col buffers

        out_i = 0
        for li, L in enumerate(layers):
            H, W, Cin = L["H"], L["W"], L["Cin"]
            KH, KW, Cout = L["KH"], L["KW"], L["Cout"]
            Ho, Wo = H - KH + 1, W - KW + 1
            src = act_refs[li] if li < n_hidden else act_refs[n_hidden]
            p_ref = patch_refs[li]
            w_ref, b_ref = wb[2 * li], wb[2 * li + 1]

            # In-kernel im2col (valid conv, stride 1, dilation 1): fill the
            # (N*Ho*Wo, KH*KW*Cin) patch buffer with statically-unrolled
            # contiguous row-range copies from the flat activation ref.
            for n in range(N):
                for ho in range(Ho):
                    r0 = (n * Ho + ho) * Wo
                    for i in range(KH):
                        base = (n * H + ho + i) * W
                        for j in range(KW):
                            c0 = (i * KW + j) * Cin
                            p_ref[r0:r0 + Wo, c0:c0 + Cin] = src[base + j:base + j + Wo, :]

            # One GEMM per layer, batch folded into the M axis.
            acc = jnp.dot(p_ref[...], w_ref[...], preferred_element_type=jnp.float32)
            acc = acc + b_ref[...]
            if L["is_output"]:
                out_refs[out_i][...] = acc.astype(out_refs[out_i].dtype)
                out_i += 1
            else:
                act_refs[li + 1][...] = jnp.maximum(acc, 0.0)   # Conv2d + ReLU

    return kernel


# ------------------------------- forward ----------------------------------- #
def separator_bipart_forward(params, x_nchw):
    """x_nchw: (N, 2, 2**qbits, 2**qbits) — same layout as the PyTorch module."""
    x = jnp.transpose(x_nchw, (0, 2, 3, 1)).astype(jnp.float32)   # NCHW -> NHWC
    N, H, W, Cin = x.shape

    layers = []
    args = [x.reshape(N * H * W, Cin)]                            # flat activation
    cur_H, cur_W = H, W
    for w, b in params["convs"]:
        KH, KW, ci, co = w.shape
        layers.append(dict(H=cur_H, W=cur_W, Cin=ci, KH=KH, KW=KW, Cout=co,
                           is_output=False))
        args += [w.reshape(KH * KW * ci, co), b.reshape(1, co)]
        cur_H, cur_W = cur_H - KH + 1, cur_W - KW + 1
    n_hidden = len(params["convs"])

    out_meta = []
    for w, b in params["output_convs"]:
        KH, KW, ci, co = w.shape
        layers.append(dict(H=cur_H, W=cur_W, Cin=ci, KH=KH, KW=KW, Cout=co,
                           is_output=True))
        args += [w.reshape(KH * KW * ci, co), b.reshape(1, co)]
        out_meta.append((cur_H - KH + 1, cur_W - KW + 1, co))

    # VMEM scratch: hidden activations (flat), then one im2col buffer per layer.
    scratch = []
    for L in layers[:n_hidden]:
        Ho, Wo = L["H"] - L["KH"] + 1, L["W"] - L["KW"] + 1
        scratch.append(pltpu.VMEM((N * Ho * Wo, L["Cout"]), jnp.float32))
    for L in layers:
        Ho, Wo = L["H"] - L["KH"] + 1, L["W"] - L["KW"] + 1
        scratch.append(pltpu.VMEM((N * Ho * Wo, L["KH"] * L["KW"] * L["Cin"]),
                                  jnp.float32))

    out_shape = tuple(jax.ShapeDtypeStruct((N * Ho * Wo, co), jnp.float32)
                      for Ho, Wo, co in out_meta)

    flops = 0
    for L in layers:
        Ho, Wo = L["H"] - L["KH"] + 1, L["W"] - L["KW"] + 1
        flops += 2 * (N * Ho * Wo) * (L["KH"] * L["KW"] * L["Cin"]) * L["Cout"]
    bytes_accessed = 4 * (sum(int(a.size) for a in args)
                          + sum(N * Ho * Wo * co for Ho, Wo, co in out_meta))

    outs_flat = pl.pallas_call(
        _make_fused_kernel(N, layers, n_hidden),
        out_shape=out_shape,
        scratch_shapes=scratch,
        cost_estimate=pl.CostEstimate(flops=flops, transcendentals=0,
                                      bytes_accessed=bytes_accessed),
    )(*args)

    outputs = []
    for flat, (Ho, Wo, co) in zip(outs_flat, out_meta):
        y = flat.reshape(N, Ho, Wo, co)                           # NHWC
        outputs.append(jnp.transpose(y, (0, 3, 1, 2)))            # back to NCHW
    return outputs                                                # list of 2 tensors


# ------------------------ parameter construction -------------------------- #
def init_separator_bipart(key, qbits_num, out_ch_per_rho, filters_ratio,
                          kernel_size, output_dims=(2, 4), dilation=1,
                          ratio_type=None, padding=0):
    """Replicates SeparatorBipart.__init__ shape logic with deterministic init."""
    assert dilation == 1 and padding == 0, "kernel supports the default dilation/padding"
    dim = 2 ** qbits_num
    in_ch = 2
    fr = filters_ratio
    out_dim = dim
    params = {"convs": [], "output_convs": []}

    def _uniform_conv(key, ks, cin, cout):
        kw_key, kb_key = jax.random.split(key)
        bound = 1.0 / np.sqrt(cin * ks * ks)
        w = jax.random.uniform(kw_key, (ks, ks, cin, cout), jnp.float32, -bound, bound)
        b = jax.random.uniform(kb_key, (cout,), jnp.float32, -bound, bound)
        return w, b

    while out_dim - dilation * (kernel_size - 1) > max(output_dims):
        out_ch = int(in_ch * fr)
        key, sub = jax.random.split(key)
        params["convs"].append(_uniform_conv(sub, kernel_size, in_ch, out_ch))
        in_ch = out_ch
        if ratio_type == "sqrt":
            fr = np.sqrt(fr)
        elif ratio_type == "sq":
            fr = fr ** 2
        out_dim += 2 * padding - dilation * (kernel_size - 1)

    ks0 = int((out_dim - output_dims[0]) / dilation) + 1
    ks1 = int((out_dim - output_dims[1]) / dilation) + 1
    assert out_dim + 2 * padding - dilation * (ks0 - 1) == output_dims[0], "Wrong output dimension 0"
    assert out_dim + 2 * padding - dilation * (ks1 - 1) == output_dims[1], "Wrong output dimension 1"

    for ks in (ks0, ks1):
        key, sub = jax.random.split(key)
        params["output_convs"].append(_uniform_conv(sub, ks, in_ch, 2 * out_ch_per_rho))
    return params


# --------------------------- pure-JAX reference ---------------------------- #
def _conv2d_ref(x_nhwc, w, b, apply_relu):
    y = jax.lax.conv_general_dilated(
        x_nhwc, w, window_strides=(1, 1), padding="VALID",
        dimension_numbers=("NHWC", "HWIO", "NHWC"))
    y = y + b
    return jnp.maximum(y, 0.0) if apply_relu else y


if __name__ == "__main__":
    key = jax.random.PRNGKey(0)
    key, pkey, xkey = jax.random.split(key, 3)

    qbits_num = 3                     # dim = 8
    out_ch_per_rho = 2
    params = init_separator_bipart(pkey, qbits_num=qbits_num,
                                   out_ch_per_rho=out_ch_per_rho,
                                   filters_ratio=2.0, kernel_size=3)

    N = 2
    dim = 2 ** qbits_num
    x = jax.random.normal(xkey, (N, 2, dim, dim), jnp.float32)   # NCHW input

    fwd = jax.jit(separator_bipart_forward)
    outs = fwd(params, x)
    outs = jax.block_until_ready(outs)

    # shapes implied by the module: [(N, 2*ocpr, 2, 2), (N, 2*ocpr, 4, 4)]
    assert outs[0].shape == (N, 2 * out_ch_per_rho, 2, 2), outs[0].shape
    assert outs[1].shape == (N, 2 * out_ch_per_rho, 4, 4), outs[1].shape

    # correctness check against lax.conv reference
    xr = jnp.transpose(x, (0, 2, 3, 1))
    for w, b in params["convs"]:
        xr = _conv2d_ref(xr, w, b, True)
    refs = [jnp.transpose(_conv2d_ref(xr, w, b, False), (0, 3, 1, 2))
            for w, b in params["output_convs"]]
    for o, r in zip(outs, refs):
        np.testing.assert_allclose(np.asarray(o), np.asarray(r), rtol=1e-4, atol=1e-4)

    print("KERNEL_OK")
</pallas_src>

<mosaic_0001>
module attributes {stable_mosaic.version = 11 : i64} {
  func.func @kernel(%arg0: memref<128x2xf32, #tpu.memory_space<vmem>>, %arg1: memref<18x4xf32, #tpu.memory_space<vmem>>, %arg2: memref<1x4xf32, #tpu.memory_space<vmem>>, %arg3: memref<100x4xf32, #tpu.memory_space<vmem>>, %arg4: memref<1x4xf32, #tpu.memory_space<vmem>>, %arg5: memref<36x4xf32, #tpu.memory_space<vmem>>, %arg6: memref<1x4xf32, #tpu.memory_space<vmem>>, %arg7: memref<8x4xf32, #tpu.memory_space<vmem>>, %arg8: memref<32x4xf32, #tpu.memory_space<vmem>>, %arg9: memref<72x4xf32, #tpu.memory_space<vmem>>, %arg10: memref<72x18xf32, #tpu.memory_space<vmem>>, %arg11: memref<8x100xf32, #tpu.memory_space<vmem>>, %arg12: memref<32x36xf32, #tpu.memory_space<vmem>>) attributes {dimension_semantics = [], scalar_prefetch = 0 : i64, scratch_operands = 4 : i64, tpu.core_type = #tpu.core_type<tc>} {
    %c0 = arith.constant 0 : index
    %c0_0 = arith.constant 0 : index
    %0 = vector.load %arg0[%c0, %c0_0] : memref<128x2xf32, #tpu.memory_space<vmem>>, vector<6x2xf32>
    %c0_1 = arith.constant 0 : index
    %c0_2 = arith.constant 0 : index
    %1 = vector.load %arg10[%c0_1, %c0_2] : memref<72x18xf32, #tpu.memory_space<vmem>>, vector<6x2xf32>
    tpu.vector_store %arg10[%c0_1, %c0_2], %0 {strides = array<i32>} : memref<72x18xf32, #tpu.memory_space<vmem>>, vector<6x2xf32>,
    %c1 = arith.constant 1 : index
    %c0_3 = arith.constant 0 : index
    %2 = vector.load %arg0[%c1, %c0_3] : memref<128x2xf32, #tpu.memory_space<vmem>>, vector<6x2xf32>
    %c0_4 = arith.constant 0 : index
    %c2 = arith.constant 2 : index
    %3 = vector.load %arg10[%c0_4, %c2] : memref<72x18xf32, #tpu.memory_space<vmem>>, vector<6x2xf32>
    tpu.vector_store %arg10[%c0_4, %c2], %2 {strides = array<i32>} : memref<72x18xf32, #tpu.memory_space<vmem>>, vector<6x2xf32>,
    %c2_5 = arith.constant 2 : index
    %c0_6 = arith.constant 0 : index
    %4 = vector.load %arg0[%c2_5, %c0_6] : memref<128x2xf32, #tpu.memory_space<vmem>>, vector<6x2xf32>
    %c0_7 = arith.constant 0 : index
    %c4 = arith.constant 4 : index
    %5 = vector.load %arg10[%c0_7, %c4] : memref<72x18xf32, #tpu.memory_space<vmem>>, vector<6x2xf32>
    tpu.vector_store %arg10[%c0_7, %c4], %4 {strides = array<i32>} : memref<72x18xf32, #tpu.memory_space<vmem>>, vector<6x2xf32>,
    %c8 = arith.constant 8 : index
    %c0_8 = arith.constant 0 : index
    %6 = vector.load %arg0[%c8, %c0_8] : memref<128x2xf32, #tpu.memory_space<vmem>>, vector<6x2xf32>
    %c0_9 = arith.constant 0 : index
    %c6 = arith.constant 6 : index
    %7 = vector.load %arg10[%c0_9, %c6] : memref<72x18xf32, #tpu.memory_space<vmem>>, vector<6x2xf32>
    tpu.vector_store %arg10[%c0_9, %c6], %6 {strides = array<i32>} : memref<72x18xf32, #tpu.memory_space<vmem>>, vector<6x2xf32>,
    %c9 = arith.constant 9 : index
    %c0_10 = arith.constant 0 : index
    %8 = vector.load %arg0[%c9, %c0_10] : memref<128x2xf32, #tpu.memory_space<vmem>>, vector<6x2xf32>
    %c0_11 = arith.constant 0 : index
    %c8_12 = arith.constant 8 : index
    %9 = vector.load %arg10[%c0_11, %c8_12] : memref<72x18xf32, #tpu.memory_space<vmem>>, vector<6x2xf32>
    tpu.vector_store %arg10[%c0_11, %c8_12], %8 {strides = array<i32>} : memref<72x18xf32, #tpu.memory_space<vmem>>, vector<6x2xf32>,
    %c10 = arith.constant 10 : index
    %c0_13 = arith.constant 0 : index
    %10 = vector.load %arg0[%c10, %c0_13] : memref<128x2xf32, #tpu.memory_space<vmem>>, vector<6x2xf32>
    %c0_14 = arith.constant 0 : index
    %c10_15 = arith.constant 10 : index
    %11 = vector.load %arg10[%c0_14, %c10_15] : memref<72x18xf32, #tpu.memory_space<vmem>>, vector<6x2xf32>
    tpu.vector_store %arg10[%c0_14, %c10_15], %10 {strides = array<i32>} : memref<72x18xf32, #tpu.memory_space<vmem>>, vector<6x2xf32>,
    %c16 = arith.constant 16 : index
    %c0_16 = arith.constant 0 : index
    %12 = vector.load %arg0[%c16, %c0_16] : memref<128x2xf32, #tpu.memory_space<vmem>>, vector<6x2xf32>
    %c0_17 = arith.constant 0 : index
    %c12 = arith.constant 12 : index
    %13 = vector.load %arg10[%c0_17, %c12] : memref<72x18xf32, #tpu.memory_space<vmem>>, vector<6x2xf32>
    tpu.vector_store %arg10[%c0_17, %c12], %12 {strides = array<i32>} : memref<72x18xf32, #tpu.memory_space<vmem>>, vector<6x2xf32>,
    %c17 = arith.constant 17 : index
    %c0_18 = arith.constant 0 : index
    %14 = vector.load %arg0[%c17, %c0_18] : memref<128x2xf32, #tpu.memory_space<vmem>>, vector<6x2xf32>
    %c0_19 = arith.constant 0 : index
    %c14 = arith.constant 14 : index
    %15 = vector.load %arg10[%c0_19, %c14] : memref<72x18xf32, #tpu.memory_space<vmem>>, vector<6x2xf32>
    tpu.vector_store %arg10[%c0_19, %c14], %14 {strides = array<i32>} : memref<72x18xf32, #tpu.memory_space<vmem>>, vector<6x2xf32>,
    %c18 = arith.constant 18 : index
    %c0_20 = arith.constant 0 : index
    %16 = vector.load %arg0[%c18, %c0_20] : memref<128x2xf32, #tpu.memory_space<vmem>>, vector<6x2xf32>
    %c0_21 = arith.constant 0 : index
    %c16_22 = arith.constant 16 : index
    %17 = vector.load %arg10[%c0_21, %c16_22] : memref<72x18xf32, #tpu.memory_space<vmem>>, vector<6x2xf32>
    tpu.vector_store %arg10[%c0_21, %c16_22], %16 {strides = array<i32>} : memref<72x18xf32, #tpu.memory_space<vmem>>, vector<6x2xf32>,
    %c8_23 = arith.constant 8 : index
    %c0_24 = arith.constant 0 : index
    %18 = vector.load %arg0[%c8_23, %c0_24] : memref<128x2xf32, #tpu.memory_space<vmem>>, vector<6x2xf32>
    %c6_25 = arith.constant 6 : index
    %c0_26 = arith.constant 0 : index
    %19 = vector.load %arg10[%c6_25, %c0_26] : memref<72x18xf32, #tpu.memory_space<vmem>>, vector<6x2xf32>
    tpu.vector_store %arg10[%c6_25, %c0_26], %18 {strides = array<i32>} : memref<72x18xf32, #tpu.memory_space<vmem>>, vector<6x2xf32>,
    %c9_27 = arith.constant 9 : index
    %c0_28 = arith.constant 0 : index
    %20 = vector.load %arg0[%c9_27, %c0_28] : memref<128x2xf32, #tpu.memory_space<vmem>>, vector<6x2xf32>
    %c6_29 = arith.constant 6 : index
    %c2_30 = arith.constant 2 : index
    %21 = vector.load %arg10[%c6_29, %c2_30] : memref<72x18xf32, #tpu.memory_space<vmem>>, vector<6x2xf32>
    tpu.vector_store %arg10[%c6_29, %c2_30], %20 {strides = array<i32>} : memref<72x18xf32, #tpu.memory_space<vmem>>, vector<6x2xf32>,
    %c10_31 = arith.constant 10 : index
    %c0_32 = arith.constant 0 : index
    %22 = vector.load %arg0[%c10_31, %c0_32] : memref<128x2xf32, #tpu.memory_space<vmem>>, vector<6x2xf32>
    %c6_33 = arith.constant 6 : index
    %c4_34 = arith.constant 4 : index
    %23 = vector.load %arg10[%c6_33, %c4_34] : memref<72x18xf32, #tpu.memory_space<vmem>>, vector<6x2xf32>
    tpu.vector_store %arg10[%c6_33, %c4_34], %22 {strides = array<i32>} : memref<72x18xf32, #tpu.memory_space<vmem>>, vector<6x2xf32>,
    %c16_35 = arith.constant 16 : index
    %c0_36 = arith.constant 0 : index
    %24 = vector.load %arg0[%c16_35, %c0_36] : memref<128x2xf32, #tpu.memory_space<vmem>>, vector<6x2xf32>
    %c6_37 = arith.constant 6 : index
    %c6_38 = arith.constant 6 : index
    %25 = vector.load %arg10[%c6_37, %c6_38] : memref<72x18xf32, #tpu.memory_space<vmem>>, vector<6x2xf32>
    tpu.vector_store %arg10[%c6_37, %c6_38], %24 {strides = array<i32>} : memref<72x18xf32, #tpu.memory_space<vmem>>, vector<6x2xf32>,
    %c17_39 = arith.constant 17 : index
    %c0_40 = arith.constant 0 : index
    %26 = vector.load %arg0[%c17_39, %c0_40] : memref<128x2xf32, #tpu.memory_space<vmem>>, vector<6x2xf32>
    %c6_41 = arith.constant 6 : index
    %c8_42 = arith.constant 8 : index
    %27 = vector.load %arg10[%c6_41, %c8_42] : memref<72x18xf32, #tpu.memory_space<vmem>>, vector<6x2xf32>
    tpu.vector_store %arg10[%c6_41, %c8_42], %26 {strides = array<i32>} : memref<72x18xf32, #tpu.memory_space<vmem>>, vector<6x2xf32>,
    %c18_43 = arith.constant 18 : index
    %c0_44 = arith.constant 0 : index
    %28 = vector.load %arg0[%c18_43, %c0_44] : memref<128x2xf32, #tpu.memory_space<vmem>>, vector<6x2xf32>
    %c6_45 = arith.constant 6 : index
    %c10_46 = arith.constant 10 : index
    %29 = vector.load %arg10[%c6_45, %c10_46] : memref<72x18xf32, #tpu.memory_space<vmem>>, vector<6x2xf32>
    tpu.vector_store %arg10[%c6_45, %c10_46], %28 {strides = array<i32>} : memref<72x18xf32, #tpu.memory_space<vmem>>, vector<6x2xf32>,
    %c24 = arith.constant 24 : index
    %c0_47 = arith.constant 0 : index
    %30 = vector.load %arg0[%c24, %c0_47] : memref<128x2xf32, #tpu.memory_space<vmem>>, vector<6x2xf32>
    %c6_48 = arith.constant 6 : index
    %c12_49 = arith.constant 12 : index
    %31 = vector.load %arg10[%c6_48, %c12_49] : memref<72x18xf32, #tpu.memory_space<vmem>>, vector<6x2xf32>
    tpu.vector_store %arg10[%c6_48, %c12_49], %30 {strides = array<i32>} : memref<72x18xf32, #tpu.memory_space<vmem>>, vector<6x2xf32>,
    %c25 = arith.constant 25 : index
    %c0_50 = arith.constant 0 : index
    %32 = vector.load %arg0[%c25, %c0_50] : memref<128x2xf32, #tpu.memory_space<vmem>>, vector<6x2xf32>
    %c6_51 = arith.constant 6 : index
    %c14_52 = arith.constant 14 : index
    %33 = vector.load %arg10[%c6_51, %c14_52] : memref<72x18xf32, #tpu.memory_space<vmem>>, vector<6x2xf32>
    tpu.vector_store %arg10[%c6_51, %c14_52], %32 {strides = array<i32>} : memref<72x18xf32, #tpu.memory_space<vmem>>, vector<6x2xf32>,
    %c26 = arith.constant 26 : index
    %c0_53 = arith.constant 0 : index
    %34 = vector.load %arg0[%c26, %c0_53] : memref<128x2xf32, #tpu.memory_space<vmem>>, vector<6x2xf32>
    %c6_54 = arith.constant 6 : index
    %c16_55 = arith.constant 16 : index
    %35 = vector.load %arg10[%c6_54, %c16_55] : memref<72x18xf32, #tpu.memory_space<vmem>>, vector<6x2xf32>
    tpu.vector_store %arg10[%c6_54, %c16_55], %34 {strides = array<i32>} : memref<72x18xf32, #tpu.memory_space<vmem>>, vector<6x2xf32>,
    %c16_56 = arith.constant 16 : index
    %c0_57 = arith.constant 0 : index
    %36 = vector.load %arg0[%c16_56, %c0_57] : memref<128x2xf32, #tpu.memory_space<vmem>>, vector<6x2xf32>
    %c12_58 = arith.constant 12 : index
    %c0_59 = arith.constant 0 : index
    %37 = vector.load %arg10[%c12_58, %c0_59] : memref<72x18xf32, #tpu.memory_space<vmem>>, vector<6x2xf32>
    tpu.vector_store %arg10[%c12_58, %c0_59], %36 {strides = array<i32>} : memref<72x18xf32, #tpu.memory_space<vmem>>, vector<6x2xf32>,
    %c17_60 = arith.constant 17 : index
    %c0_61 = arith.constant 0 : index
    %38 = vector.load %arg0[%c17_60, %c0_61] : memref<128x2xf32, #tpu.memory_space<vmem>>, vector<6x2xf32>
    %c12_62 = arith.constant 12 : index
    %c2_63 = arith.constant 2 : index
    %39 = vector.load %arg10[%c12_62, %c2_63] : memref<72x18xf32, #tpu.memory_space<vmem>>, vector<6x2xf32>
    tpu.vector_store %arg10[%c12_62, %c2_63], %38 {strides = array<i32>} : memref<72x18xf32, #tpu.memory_space<vmem>>, vector<6x2xf32>,
    %c18_64 = arith.constant 18 : index
    %c0_65 = arith.constant 0 : index
    %40 = vector.load %arg0[%c18_64, %c0_65] : memref<128x2xf32, #tpu.memory_space<vmem>>, vector<6x2xf32>
    %c12_66 = arith.constant 12 : index
    %c4_67 = arith.constant 4 : index
    %41 = vector.load %arg10[%c12_66, %c4_67] : memref<72x18xf32, #tpu.memory_space<vmem>>, vector<6x2xf32>
    tpu.vector_store %arg10[%c12_66, %c4_67], %40 {strides = array<i32>} : memref<72x18xf32, #tpu.memory_space<vmem>>, vector<6x2xf32>,
    %c24_68 = arith.constant 24 : index
    %c0_69 = arith.constant 0 : index
    %42 = vector.load %arg0[%c24_68, %c0_69] : memref<128x2xf32, #tpu.memory_space<vmem>>, vector<6x2xf32>
    %c12_70 = arith.constant 12 : index
    %c6_71 = arith.constant 6 : index
    %43 = vector.load %arg10[%c12_70, %c6_71] : memref<72x18xf32, #tpu.memory_space<vmem>>, vector<6x2xf32>
    tpu.vector_store %arg10[%c12_70, %c6_71], %42 {strides = array<i32>} : memref<72x18xf32, #tpu.memory_space<vmem>>, vector<6x2xf32>,
    %c25_72 = arith.constant 25 : index
    %c0_73 = arith.constant 0 : index
    %44 = vector.load %arg0[%c25_72, %c0_73] : memref<128x2xf32, #tpu.memory_space<vmem>>, vector<6x2xf32>
    %c12_74 = arith.constant 12 : index
    %c8_75 = arith.constant 8 : index
    %45 = vector.load %arg10[%c12_74, %c8_75] : memref<72x18xf32, #tpu.memory_space<vmem>>, vector<6x2xf32>
    tpu.vector_store %arg10[%c12_74, %c8_75], %44 {strides = array<i32>} : memref<72x18xf32, #tpu.memory_space<vmem>>, vector<6x2xf32>,
    %c26_76 = arith.constant 26 : index
    %c0_77 = arith.constant 0 : index
    %46 = vector.load %arg0[%c26_76, %c0_77] : memref<128x2xf32, #tpu.memory_space<vmem>>, vector<6x2xf32>
    %c12_78 = arith.constant 12 : index
    %c10_79 = arith.constant 10 : index
    %47 = vector.load %arg10[%c12_78, %c10_79] : memref<72x18xf32, #tpu.memory_space<vmem>>, vector<6x2xf32>
    tpu.vector_store %arg10[%c12_78, %c10_79], %46 {strides = array<i32>} : memref<72x18xf32, #tpu.memory_space<vmem>>, vector<6x2xf32>,
    %c32 = arith.constant 32 : index
    %c0_80 = arith.constant 0 : index
    %48 = vector.load %arg0[%c32, %c0_80] : memref<128x2xf32, #tpu.memory_space<vmem>>, vector<6x2xf32>
    %c12_81 = arith.constant 12 : index
    %c12_82 = arith.constant 12 : index
    %49 = vector.load %arg10[%c12_81, %c12_82] : memref<72x18xf32, #tpu.memory_space<vmem>>, vector<6x2xf32>
    tpu.vector_store %arg10[%c12_81, %c12_82], %48 {strides = array<i32>} : memref<72x18xf32, #tpu.memory_space<vmem>>, vector<6x2xf32>,
    %c33 = arith.constant 33 : index
    %c0_83 = arith.constant 0 : index
    %50 = vector.load %arg0[%c33, %c0_83] : memref<128x2xf32, #tpu.memory_space<vmem>>, vector<6x2xf32>
    %c12_84 = arith.constant 12 : index
    %c14_85 = arith.constant 14 : index
    %51 = vector.load %arg10[%c12_84, %c14_85] : memref<72x18xf32, #tpu.memory_space<vmem>>, vector<6x2xf32>
    tpu.vector_store %arg10[%c12_84, %c14_85], %50 {strides = array<i32>} : memref<72x18xf32, #tpu.memory_space<vmem>>, vector<6x2xf32>,
    %c34 = arith.constant 34 : index
    %c0_86 = arith.constant 0 : index
    %52 = vector.load %arg0[%c34, %c0_86] : memref<128x2xf32, #tpu.memory_space<vmem>>, vector<6x2xf32>
    %c12_87 = arith.constant 12 : index
    %c16_88 = arith.constant 16 : index
    %53 = vector.load %arg10[%c12_87, %c16_88] : memref<72x18xf32, #tpu.memory_space<vmem>>, vector<6x2xf32>
    tpu.vector_store %arg10[%c12_87, %c16_88], %52 {strides = array<i32>} : memref<72x18xf32, #tpu.memory_space<vmem>>, vector<6x2xf32>,
    %c24_89 = arith.constant 24 : index
    %c0_90 = arith.constant 0 : index
    %54 = vector.load %arg0[%c24_89, %c0_90] : memref<128x2xf32, #tpu.memory_space<vmem>>, vector<6x2xf32>
    %c18_91 = arith.constant 18 : index
    %c0_92 = arith.constant 0 : index
    %55 = vector.load %arg10[%c18_91, %c0_92] : memref<72x18xf32, #tpu.memory_space<vmem>>, vector<6x2xf32>
    tpu.vector_store %arg10[%c18_91, %c0_92], %54 {strides = array<i32>} : memref<72x18xf32, #tpu.memory_space<vmem>>, vector<6x2xf32>,
    %c25_93 = arith.constant 25 : index
    %c0_94 = arith.constant 0 : index
    %56 = vector.load %arg0[%c25_93, %c0_94] : memref<128x2xf32, #tpu.memory_space<vmem>>, vector<6x2xf32>
    %c18_95 = arith.constant 18 : index
    %c2_96 = arith.constant 2 : index
    %57 = vector.load %arg10[%c18_95, %c2_96] : memref<72x18xf32, #tpu.memory_space<vmem>>, vector<6x2xf32>
    tpu.vector_store %arg10[%c18_95, %c2_96], %56 {strides = array<i32>} : memref<72x18xf32, #tpu.memory_space<vmem>>, vector<6x2xf32>,
    %c26_97 = arith.constant 26 : index
    %c0_98 = arith.constant 0 : index
    %58 = vector.load %arg0[%c26_97, %c0_98] : memref<128x2xf32, #tpu.memory_space<vmem>>, vector<6x2xf32>
    %c18_99 = arith.constant 18 : index
    %c4_100 = arith.constant 4 : index
    %59 = vector.load %arg10[%c18_99, %c4_100] : memref<72x18xf32, #tpu.memory_space<vmem>>, vector<6x2xf32>
    tpu.vector_store %arg10[%c18_99, %c4_100], %58 {strides = array<i32>} : memref<72x18xf32, #tpu.memory_space<vmem>>, vector<6x2xf32>,
    %c32_101 = arith.constant 32 : index
    %c0_102 = arith.constant 0 : index
    %60 = vector.load %arg0[%c32_101, %c0_102] : memref<128x2xf32, #tpu.memory_space<vmem>>, vector<6x2xf32>
    %c18_103 = arith.constant 18 : index
    %c6_104 = arith.constant 6 : index
    %61 = vector.load %arg10[%c18_103, %c6_104] : memref<72x18xf32, #tpu.memory_space<vmem>>, vector<6x2xf32>
    tpu.vector_store %arg10[%c18_103, %c6_104], %60 {strides = array<i32>} : memref<72x18xf32, #tpu.memory_space<vmem>>, vector<6x2xf32>,
    %c33_105 = arith.constant 33 : index
    %c0_106 = arith.constant 0 : index
    %62 = vector.load %arg0[%c33_105, %c0_106] : memref<128x2xf32, #tpu.memory_space<vmem>>, vector<6x2xf32>
    %c18_107 = arith.constant 18 : index
    %c8_108 = arith.constant 8 : index
    %63 = vector.load %arg10[%c18_107, %c8_108] : memref<72x18xf32, #tpu.memory_space<vmem>>, vector<6x2xf32>
    tpu.vector_store %arg10[%c18_107, %c8_108], %62 {strides = array<i32>} : memref<72x18xf32, #tpu.memory_space<vmem>>, vector<6x2xf32>,
    %c34_109 = arith.constant 34 : index
    %c0_110 = arith.constant 0 : index
    %64 = vector.load %arg0[%c34_109, %c0_110] : memref<128x2xf32, #tpu.memory_space<vmem>>, vector<6x2xf32>
    %c18_111 = arith.constant 18 : index
    %c10_112 = arith.constant 10 : index
    %65 = vector.load %arg10[%c18_111, %c10_112] : memref<72x18xf32, #tpu.memory_space<vmem>>, vector<6x2xf32>
    tpu.vector_store %arg10[%c18_111, %c10_112], %64 {strides = array<i32>} : memref<72x18xf32, #tpu.memory_space<vmem>>, vector<6x2xf32>,
    %c40 = arith.constant 40 : index
    %c0_113 = arith.constant 0 : index
    %66 = vector.load %arg0[%c40, %c0_113] : memref<128x2xf32, #tpu.memory_space<vmem>>, vector<6x2xf32>
    %c18_114 = arith.constant 18 : index
    %c12_115 = arith.constant 12 : index
    %67 = vector.load %arg10[%c18_114, %c12_115] : memref<72x18xf32, #tpu.memory_space<vmem>>, vector<6x2xf32>
    tpu.vector_store %arg10[%c18_114, %c12_115], %66 {strides = array<i32>} : memref<72x18xf32, #tpu.memory_space<vmem>>, vector<6x2xf32>,
    %c41 = arith.constant 41 : index
    %c0_116 = arith.constant 0 : index
    %68 = vector.load %arg0[%c41, %c0_116] : memref<128x2xf32, #tpu.memory_space<vmem>>, vector<6x2xf32>
    %c18_117 = arith.constant 18 : index
    %c14_118 = arith.constant 14 : index
    %69 = vector.load %arg10[%c18_117, %c14_118] : memref<72x18xf32, #tpu.memory_space<vmem>>, vector<6x2xf32>
    tpu.vector_store %arg10[%c18_117, %c14_118], %68 {strides = array<i32>} : memref<72x18xf32, #tpu.memory_space<vmem>>, vector<6x2xf32>,
    %c42 = arith.constant 42 : index
    %c0_119 = arith.constant 0 : index
    %70 = vector.load %arg0[%c42, %c0_119] : memref<128x2xf32, #tpu.memory_space<vmem>>, vector<6x2xf32>
    %c18_120 = arith.constant 18 : index
    %c16_121 = arith.constant 16 : index
    %71 = vector.load %arg10[%c18_120, %c16_121] : memref<72x18xf32, #tpu.memory_space<vmem>>, vector<6x2xf32>
    tpu.vector_store %arg10[%c18_120, %c16_121], %70 {strides = array<i32>} : memref<72x18xf32, #tpu.memory_space<vmem>>, vector<6x2xf32>,
    %c32_122 = arith.constant 32 : index
    %c0_123 = arith.constant 0 : index
    %72 = vector.load %arg0[%c32_122, %c0_123] : memref<128x2xf32, #tpu.memory_space<vmem>>, vector<6x2xf32>
    %c24_124 = arith.constant 24 : index
    %c0_125 = arith.constant 0 : index
    %73 = vector.load %arg10[%c24_124, %c0_125] : memref<72x18xf32, #tpu.memory_space<vmem>>, vector<6x2xf32>
    tpu.vector_store %arg10[%c24_124, %c0_125], %72 {strides = array<i32>} : memref<72x18xf32, #tpu.memory_space<vmem>>, vector<6x2xf32>,
    %c33_126 = arith.constant 33 : index
    %c0_127 = arith.constant 0 : index
    %74 = vector.load %arg0[%c33_126, %c0_127] : memref<128x2xf32, #tpu.memory_space<vmem>>, vector<6x2xf32>
    %c24_128 = arith.constant 24 : index
    %c2_129 = arith.constant 2 : index
    %75 = vector.load %arg10[%c24_128, %c2_129] : memref<72x18xf32, #tpu.memory_space<vmem>>, vector<6x2xf32>
    tpu.vector_store %arg10[%c24_128, %c2_129], %74 {strides = array<i32>} : memref<72x18xf32, #tpu.memory_space<vmem>>, vector<6x2xf32>,
    %c34_130 = arith.constant 34 : index
    %c0_131 = arith.constant 0 : index
    %76 = vector.load %arg0[%c34_130, %c0_131] : memref<128x2xf32, #tpu.memory_space<vmem>>, vector<6x2xf32>
    %c24_132 = arith.constant 24 : index
    %c4_133 = arith.constant 4 : index
    %77 = vector.load %arg10[%c24_132, %c4_133] : memref<72x18xf32, #tpu.memory_space<vmem>>, vector<6x2xf32>
    tpu.vector_store %arg10[%c24_132, %c4_133], %76 {strides = array<i32>} : memref<72x18xf32, #tpu.memory_space<vmem>>, vector<6x2xf32>,
    %c40_134 = arith.constant 40 : index
    %c0_135 = arith.constant 0 : index
    %78 = vector.load %arg0[%c40_134, %c0_135] : memref<128x2xf32, #tpu.memory_space<vmem>>, vector<6x2xf32>
    %c24_136 = arith.constant 24 : index
    %c6_137 = arith.constant 6 : index
    %79 = vector.load %arg10[%c24_136, %c6_137] : memref<72x18xf32, #tpu.memory_space<vmem>>, vector<6x2xf32>
    tpu.vector_store %arg10[%c24_136, %c6_137], %78 {strides = array<i32>} : memref<72x18xf32, #tpu.memory_space<vmem>>, vector<6x2xf32>,
    %c41_138 = arith.constant 41 : index
    %c0_139 = arith.constant 0 : index
    %80 = vector.load %arg0[%c41_138, %c0_139] : memref<128x2xf32, #tpu.memory_space<vmem>>, vector<6x2xf32>
    %c24_140 = arith.constant 24 : index
    %c8_141 = arith.constant 8 : index
    %81 = vector.load %arg10[%c24_140, %c8_141] : memref<72x18xf32, #tpu.memory_space<vmem>>, vector<6x2xf32>
    tpu.vector_store %arg10[%c24_140, %c8_141], %80 {strides = array<i32>} : memref<72x18xf32, #tpu.memory_space<vmem>>, vector<6x2xf32>,
    %c42_142 = arith.constant 42 : index
    %c0_143 = arith.constant 0 : index
    %82 = vector.load %arg0[%c42_142, %c0_143] : memref<128x2xf32, #tpu.memory_space<vmem>>, vector<6x2xf32>
    %c24_144 = arith.constant 24 : index
    %c10_145 = arith.constant 10 : index
    %83 = vector.load %arg10[%c24_144, %c10_145] : memref<72x18xf32, #tpu.memory_space<vmem>>, vector<6x2xf32>
    tpu.vector_store %arg10[%c24_144, %c10_145], %82 {strides = array<i32>} : memref<72x18xf32, #tpu.memory_space<vmem>>, vector<6x2xf32>,
    %c48 = arith.constant 48 : index
    %c0_146 = arith.constant 0 : index
    %84 = vector.load %arg0[%c48, %c0_146] : memref<128x2xf32, #tpu.memory_space<vmem>>, vector<6x2xf32>
    %c24_147 = arith.constant 24 : index
    %c12_148 = arith.constant 12 : index
    %85 = vector.load %arg10[%c24_147, %c12_148] : memref<72x18xf32, #tpu.memory_space<vmem>>, vector<6x2xf32>
    tpu.vector_store %arg10[%c24_147, %c12_148], %84 {strides = array<i32>} : memref<72x18xf32, #tpu.memory_space<vmem>>, vector<6x2xf32>,
    %c49 = arith.constant 49 : index
    %c0_149 = arith.constant 0 : index
    %86 = vector.load %arg0[%c49, %c0_149] : memref<128x2xf32, #tpu.memory_space<vmem>>, vector<6x2xf32>
    %c24_150 = arith.constant 24 : index
    %c14_151 = arith.constant 14 : index
    %87 = vector.load %arg10[%c24_150, %c14_151] : memref<72x18xf32, #tpu.memory_space<vmem>>, vector<6x2xf32>
    tpu.vector_store %arg10[%c24_150, %c14_151], %86 {strides = array<i32>} : memref<72x18xf32, #tpu.memory_space<vmem>>, vector<6x2xf32>,
    %c50 = arith.constant 50 : index
    %c0_152 = arith.constant 0 : index
    %88 = vector.load %arg0[%c50, %c0_152] : memref<128x2xf32, #tpu.memory_space<vmem>>, vector<6x2xf32>
    %c24_153 = arith.constant 24 : index
    %c16_154 = arith.constant 16 : index
    %89 = vector.load %arg10[%c24_153, %c16_154] : memref<72x18xf32, #tpu.memory_space<vmem>>, vector<6x2xf32>
    tpu.vector_store %arg10[%c24_153, %c16_154], %88 {strides = array<i32>} : memref<72x18xf32, #tpu.memory_space<vmem>>, vector<6x2xf32>,
    %c40_155 = arith.constant 40 : index
    %c0_156 = arith.constant 0 : index
    %90 = vector.load %arg0[%c40_155, %c0_156] : memref<128x2xf32, #tpu.memory_space<vmem>>, vector<6x2xf32>
    %c30 = arith.constant 30 : index
    %c0_157 = arith.constant 0 : index
    %91 = vector.load %arg10[%c30, %c0_157] : memref<72x18xf32, #tpu.memory_space<vmem>>, vector<6x2xf32>
    tpu.vector_store %arg10[%c30, %c0_157], %90 {strides = array<i32>} : memref<72x18xf32, #tpu.memory_space<vmem>>, vector<6x2xf32>,
    %c41_158 = arith.constant 41 : index
    %c0_159 = arith.constant 0 : index
    %92 = vector.load %arg0[%c41_158, %c0_159] : memref<128x2xf32, #tpu.memory_space<vmem>>, vector<6x2xf32>
    %c30_160 = arith.constant 30 : index
    %c2_161 = arith.constant 2 : index
    %93 = vector.load %arg10[%c30_160, %c2_161] : memref<72x18xf32, #tpu.memory_space<vmem>>, vector<6x2xf32>
    tpu.vector_store %arg10[%c30_160, %c2_161], %92 {strides = array<i32>} : memref<72x18xf32, #tpu.memory_space<vmem>>, vector<6x2xf32>,
    %c42_162 = arith.constant 42 : index
    %c0_163 = arith.constant 0 : index
    %94 = vector.load %arg0[%c42_162, %c0_163] : memref<128x2xf32, #tpu.memory_space<vmem>>, vector<6x2xf32>
    %c30_164 = arith.constant 30 : index
    %c4_165 = arith.constant 4 : index
    %95 = vector.load %arg10[%c30_164, %c4_165] : memref<72x18xf32, #tpu.memory_space<vmem>>, vector<6x2xf32>
    tpu.vector_store %arg10[%c30_164, %c4_165], %94 {strides = array<i32>} : memref<72x18xf32, #tpu.memory_space<vmem>>, vector<6x2xf32>,
    %c48_166 = arith.constant 48 : index
    %c0_167 = arith.constant 0 : index
    %96 = vector.load %arg0[%c48_166, %c0_167] : memref<128x2xf32, #tpu.memory_space<vmem>>, vector<6x2xf32>
    %c30_168 = arith.constant 30 : index
    %c6_169 = arith.constant 6 : index
    %97 = vector.load %arg10[%c30_168, %c6_169] : memref<72x18xf32, #tpu.memory_space<vmem>>, vector<6x2xf32>
    tpu.vector_store %arg10[%c30_168, %c6_169], %96 {strides = array<i32>} : memref<72x18xf32, #tpu.memory_space<vmem>>, vector<6x2xf32>,
    %c49_170 = arith.constant 49 : index
    %c0_171 = arith.constant 0 : index
    %98 = vector.load %arg0[%c49_170, %c0_171] : memref<128x2xf32, #tpu.memory_space<vmem>>, vector<6x2xf32>
    %c30_172 = arith.constant 30 : index
    %c8_173 = arith.constant 8 : index
    %99 = vector.load %arg10[%c30_172, %c8_173] : memref<72x18xf32, #tpu.memory_space<vmem>>, vector<6x2xf32>
    tpu.vector_store %arg10[%c30_172, %c8_173], %98 {strides = array<i32>} : memref<72x18xf32, #tpu.memory_space<vmem>>, vector<6x2xf32>,
    %c50_174 = arith.constant 50 : index
    %c0_175 = arith.constant 0 : index
    %100 = vector.load %arg0[%c50_174, %c0_175] : memref<128x2xf32, #tpu.memory_space<vmem>>, vector<6x2xf32>
    %c30_176 = arith.constant 30 : index
    %c10_177 = arith.constant 10 : index
    %101 = vector.load %arg10[%c30_176, %c10_177] : memref<72x18xf32, #tpu.memory_space<vmem>>, vector<6x2xf32>
    tpu.vector_store %arg10[%c30_176, %c10_177], %100 {strides = array<i32>} : memref<72x18xf32, #tpu.memory_space<vmem>>, vector<6x2xf32>,
    %c56 = arith.constant 56 : index
    %c0_178 = arith.constant 0 : index
    %102 = vector.load %arg0[%c56, %c0_178] : memref<128x2xf32, #tpu.memory_space<vmem>>, vector<6x2xf32>
    %c30_179 = arith.constant 30 : index
    %c12_180 = arith.constant 12 : index
    %103 = vector.load %arg10[%c30_179, %c12_180] : memref<72x18xf32, #tpu.memory_space<vmem>>, vector<6x2xf32>
    tpu.vector_store %arg10[%c30_179, %c12_180], %102 {strides = array<i32>} : memref<72x18xf32, #tpu.memory_space<vmem>>, vector<6x2xf32>,
    %c57 = arith.constant 57 : index
    %c0_181 = arith.constant 0 : index
    %104 = vector.load %arg0[%c57, %c0_181] : memref<128x2xf32, #tpu.memory_space<vmem>>, vector<6x2xf32>
    %c30_182 = arith.constant 30 : index
    %c14_183 = arith.constant 14 : index
    %105 = vector.load %arg10[%c30_182, %c14_183] : memref<72x18xf32, #tpu.memory_space<vmem>>, vector<6x2xf32>
    tpu.vector_store %arg10[%c30_182, %c14_183], %104 {strides = array<i32>} : memref<72x18xf32, #tpu.memory_space<vmem>>, vector<6x2xf32>,
    %c58 = arith.constant 58 : index
    %c0_184 = arith.constant 0 : index
    %106 = vector.load %arg0[%c58, %c0_184] : memref<128x2xf32, #tpu.memory_space<vmem>>, vector<6x2xf32>
    %c30_185 = arith.constant 30 : index
    %c16_186 = arith.constant 16 : index
    %107 = vector.load %arg10[%c30_185, %c16_186] : memref<72x18xf32, #tpu.memory_space<vmem>>, vector<6x2xf32>
    tpu.vector_store %arg10[%c30_185, %c16_186], %106 {strides = array<i32>} : memref<72x18xf32, #tpu.memory_space<vmem>>, vector<6x2xf32>,
    %c64 = arith.constant 64 : index
    %c0_187 = arith.constant 0 : index
    %108 = vector.load %arg0[%c64, %c0_187] : memref<128x2xf32, #tpu.memory_space<vmem>>, vector<6x2xf32>
    %c36 = arith.constant 36 : index
    %c0_188 = arith.constant 0 : index
    %109 = vector.load %arg10[%c36, %c0_188] : memref<72x18xf32, #tpu.memory_space<vmem>>, vector<6x2xf32>
    tpu.vector_store %arg10[%c36, %c0_188], %108 {strides = array<i32>} : memref<72x18xf32, #tpu.memory_space<vmem>>, vector<6x2xf32>,
    %c65 = arith.constant 65 : index
    %c0_189 = arith.constant 0 : index
    %110 = vector.load %arg0[%c65, %c0_189] : memref<128x2xf32, #tpu.memory_space<vmem>>, vector<6x2xf32>
    %c36_190 = arith.constant 36 : index
    %c2_191 = arith.constant 2 : index
    %111 = vector.load %arg10[%c36_190, %c2_191] : memref<72x18xf32, #tpu.memory_space<vmem>>, vector<6x2xf32>
    tpu.vector_store %arg10[%c36_190, %c2_191], %110 {strides = array<i32>} : memref<72x18xf32, #tpu.memory_space<vmem>>, vector<6x2xf32>,
    %c66 = arith.constant 66 : index
    %c0_192 = arith.constant 0 : index
    %112 = vector.load %arg0[%c66, %c0_192] : memref<128x2xf32, #tpu.memory_space<vmem>>, vector<6x2xf32>
    %c36_193 = arith.constant 36 : index
    %c4_194 = arith.constant 4 : index
    %113 = vector.load %arg10[%c36_193, %c4_194] : memref<72x18xf32, #tpu.memory_space<vmem>>, vector<6x2xf32>
    tpu.vector_store %arg10[%c36_193, %c4_194], %112 {strides = array<i32>} : memref<72x18xf32, #tpu.memory_space<vmem>>, vector<6x2xf32>,
    %c72 = arith.constant 72 : index
    %c0_195 = arith.constant 0 : index
    %114 = vector.load %arg0[%c72, %c0_195] : memref<128x2xf32, #tpu.memory_space<vmem>>, vector<6x2xf32>
    %c36_196 = arith.constant 36 : index
    %c6_197 = arith.constant 6 : index
    %115 = vector.load %arg10[%c36_196, %c6_197] : memref<72x18xf32, #tpu.memory_space<vmem>>, vector<6x2xf32>
    tpu.vector_store %arg10[%c36_196, %c6_197], %114 {strides = array<i32>} : memref<72x18xf32, #tpu.memory_space<vmem>>, vector<6x2xf32>,
    %c73 = arith.constant 73 : index
    %c0_198 = arith.constant 0 : index
    %116 = vector.load %arg0[%c73, %c0_198] : memref<128x2xf32, #tpu.memory_space<vmem>>, vector<6x2xf32>
    %c36_199 = arith.constant 36 : index
    %c8_200 = arith.constant 8 : index
    %117 = vector.load %arg10[%c36_199, %c8_200] : memref<72x18xf32, #tpu.memory_space<vmem>>, vector<6x2xf32>
    tpu.vector_store %arg10[%c36_199, %c8_200], %116 {strides = array<i32>} : memref<72x18xf32, #tpu.memory_space<vmem>>, vector<6x2xf32>,
    %c74 = arith.constant 74 : index
    %c0_201 = arith.constant 0 : index
    %118 = vector.load %arg0[%c74, %c0_201] : memref<128x2xf32, #tpu.memory_space<vmem>>, vector<6x2xf32>
    %c36_202 = arith.constant 36 : index
    %c10_203 = arith.constant 10 : index
    %119 = vector.load %arg10[%c36_202, %c10_203] : memref<72x18xf32, #tpu.memory_space<vmem>>, vector<6x2xf32>
    tpu.vector_store %arg10[%c36_202, %c10_203], %118 {strides = array<i32>} : memref<72x18xf32, #tpu.memory_space<vmem>>, vector<6x2xf32>,
    %c80 = arith.constant 80 : index
    %c0_204 = arith.constant 0 : index
    %120 = vector.load %arg0[%c80, %c0_204] : memref<128x2xf32, #tpu.memory_space<vmem>>, vector<6x2xf32>
    %c36_205 = arith.constant 36 : index
    %c12_206 = arith.constant 12 : index
    %121 = vector.load %arg10[%c36_205, %c12_206] : memref<72x18xf32, #tpu.memory_space<vmem>>, vector<6x2xf32>
    tpu.vector_store %arg10[%c36_205, %c12_206], %120 {strides = array<i32>} : memref<72x18xf32, #tpu.memory_space<vmem>>, vector<6x2xf32>,
    %c81 = arith.constant 81 : index
    %c0_207 = arith.constant 0 : index
    %122 = vector.load %arg0[%c81, %c0_207] : memref<128x2xf32, #tpu.memory_space<vmem>>, vector<6x2xf32>
    %c36_208 = arith.constant 36 : index
    %c14_209 = arith.constant 14 : index
    %123 = vector.load %arg10[%c36_208, %c14_209] : memref<72x18xf32, #tpu.memory_space<vmem>>, vector<6x2xf32>
    tpu.vector_store %arg10[%c36_208, %c14_209], %122 {strides = array<i32>} : memref<72x18xf32, #tpu.memory_space<vmem>>, vector<6x2xf32>,
    %c82 = arith.constant 82 : index
    %c0_210 = arith.constant 0 : index
    %124 = vector.load %arg0[%c82, %c0_210] : memref<128x2xf32, #tpu.memory_space<vmem>>, vector<6x2xf32>
    %c36_211 = arith.constant 36 : index
    %c16_212 = arith.constant 16 : index
    %125 = vector.load %arg10[%c36_211, %c16_212] : memref<72x18xf32, #tpu.memory_space<vmem>>, vector<6x2xf32>
    tpu.vector_store %arg10[%c36_211, %c16_212], %124 {strides = array<i32>} : memref<72x18xf32, #tpu.memory_space<vmem>>, vector<6x2xf32>,
    %c72_213 = arith.constant 72 : index
    %c0_214 = arith.constant 0 : index
    %126 = vector.load %arg0[%c72_213, %c0_214] : memref<128x2xf32, #tpu.memory_space<vmem>>, vector<6x2xf32>
    %c42_215 = arith.constant 42 : index
    %c0_216 = arith.constant 0 : index
    %127 = vector.load %arg10[%c42_215, %c0_216] : memref<72x18xf32, #tpu.memory_space<vmem>>, vector<6x2xf32>
    tpu.vector_store %arg10[%c42_215, %c0_216], %126 {strides = array<i32>} : memref<72x18xf32, #tpu.memory_space<vmem>>, vector<6x2xf32>,
    %c73_217 = arith.constant 73 : index
    %c0_218 = arith.constant 0 : index
    %128 = vector.load %arg0[%c73_217, %c0_218] : memref<128x2xf32, #tpu.memory_space<vmem>>, vector<6x2xf32>
    %c42_219 = arith.constant 42 : index
    %c2_220 = arith.constant 2 : index
    %129 = vector.load %arg10[%c42_219, %c2_220] : memref<72x18xf32, #tpu.memory_space<vmem>>, vector<6x2xf32>
    tpu.vector_store %arg10[%c42_219, %c2_220], %128 {strides = array<i32>} : memref<72x18xf32, #tpu.memory_space<vmem>>, vector<6x2xf32>,
    %c74_221 = arith.constant 74 : index
    %c0_222 = arith.constant 0 : index
    %130 = vector.load %arg0[%c74_221, %c0_222] : memref<128x2xf32, #tpu.memory_space<vmem>>, vector<6x2xf32>
    %c42_223 = arith.constant 42 : index
    %c4_224 = arith.constant 4 : index
    %131 = vector.load %arg10[%c42_223, %c4_224] : memref<72x18xf32, #tpu.memory_space<vmem>>, vector<6x2xf32>
    tpu.vector_store %arg10[%c42_223, %c4_224], %130 {strides = array<i32>} : memref<72x18xf32, #tpu.memory_space<vmem>>, vector<6x2xf32>,
    %c80_225 = arith.constant 80 : index
    %c0_226 = arith.constant 0 : index
    %132 = vector.load %arg0[%c80_225, %c0_226] : memref<128x2xf32, #tpu.memory_space<vmem>>, vector<6x2xf32>
    %c42_227 = arith.constant 42 : index
    %c6_228 = arith.constant 6 : index
    %133 = vector.load %arg10[%c42_227, %c6_228] : memref<72x18xf32, #tpu.memory_space<vmem>>, vector<6x2xf32>
    tpu.vector_store %arg10[%c42_227, %c6_228], %132 {strides = array<i32>} : memref<72x18xf32, #tpu.memory_space<vmem>>, vector<6x2xf32>,
    %c81_229 = arith.constant 81 : index
    %c0_230 = arith.constant 0 : index
    %134 = vector.load %arg0[%c81_229, %c0_230] : memref<128x2xf32, #tpu.memory_space<vmem>>, vector<6x2xf32>
    %c42_231 = arith.constant 42 : index
    %c8_232 = arith.constant 8 : index
    %135 = vector.load %arg10[%c42_231, %c8_232] : memref<72x18xf32, #tpu.memory_space<vmem>>, vector<6x2xf32>
    tpu.vector_store %arg10[%c42_231, %c8_232], %134 {strides = array<i32>} : memref<72x18xf32, #tpu.memory_space<vmem>>, vector<6x2xf32>,
    %c82_233 = arith.constant 82 : index
    %c0_234 = arith.constant 0 : index
    %136 = vector.load %arg0[%c82_233, %c0_234] : memref<128x2xf32, #tpu.memory_space<vmem>>, vector<6x2xf32>
    %c42_235 = arith.constant 42 : index
    %c10_236 = arith.constant 10 : index
    %137 = vector.load %arg10[%c42_235, %c10_236] : memref<72x18xf32, #tpu.memory_space<vmem>>, vector<6x2xf32>
    tpu.vector_store %arg10[%c42_235, %c10_236], %136 {strides = array<i32>} : memref<72x18xf32, #tpu.memory_space<vmem>>, vector<6x2xf32>,
    %c88 = arith.constant 88 : index
    %c0_237 = arith.constant 0 : index
    %138 = vector.load %arg0[%c88, %c0_237] : memref<128x2xf32, #tpu.memory_space<vmem>>, vector<6x2xf32>
    %c42_238 = arith.constant 42 : index
    %c12_239 = arith.constant 12 : index
    %139 = vector.load %arg10[%c42_238, %c12_239] : memref<72x18xf32, #tpu.memory_space<vmem>>, vector<6x2xf32>
    tpu.vector_store %arg10[%c42_238, %c12_239], %138 {strides = array<i32>} : memref<72x18xf32, #tpu.memory_space<vmem>>, vector<6x2xf32>,
    %c89 = arith.constant 89 : index
    %c0_240 = arith.constant 0 : index
    %140 = vector.load %arg0[%c89, %c0_240] : memref<128x2xf32, #tpu.memory_space<vmem>>, vector<6x2xf32>
    %c42_241 = arith.constant 42 : index
    %c14_242 = arith.constant 14 : index
    %141 = vector.load %arg10[%c42_241, %c14_242] : memref<72x18xf32, #tpu.memory_space<vmem>>, vector<6x2xf32>
    tpu.vector_store %arg10[%c42_241, %c14_242], %140 {strides = array<i32>} : memref<72x18xf32, #tpu.memory_space<vmem>>, vector<6x2xf32>,
    %c90 = arith.constant 90 : index
    %c0_243 = arith.constant 0 : index
    %142 = vector.load %arg0[%c90, %c0_243] : memref<128x2xf32, #tpu.memory_space<vmem>>, vector<6x2xf32>
    %c42_244 = arith.constant 42 : index
    %c16_245 = arith.constant 16 : index
    %143 = vector.load %arg10[%c42_244, %c16_245] : memref<72x18xf32, #tpu.memory_space<vmem>>, vector<6x2xf32>
    tpu.vector_store %arg10[%c42_244, %c16_245], %142 {strides = array<i32>} : memref<72x18xf32, #tpu.memory_space<vmem>>, vector<6x2xf32>,
    %c80_246 = arith.constant 80 : index
    %c0_247 = arith.constant 0 : index
    %144 = vector.load %arg0[%c80_246, %c0_247] : memref<128x2xf32, #tpu.memory_space<vmem>>, vector<6x2xf32>
    %c48_248 = arith.constant 48 : index
    %c0_249 = arith.constant 0 : index
    %145 = vector.load %arg10[%c48_248, %c0_249] : memref<72x18xf32, #tpu.memory_space<vmem>>, vector<6x2xf32>
    tpu.vector_store %arg10[%c48_248, %c0_249], %144 {strides = array<i32>} : memref<72x18xf32, #tpu.memory_space<vmem>>, vector<6x2xf32>,
    %c81_250 = arith.constant 81 : index
    %c0_251 = arith.constant 0 : index
    %146 = vector.load %arg0[%c81_250, %c0_251] : memref<128x2xf32, #tpu.memory_space<vmem>>, vector<6x2xf32>
    %c48_252 = arith.constant 48 : index
    %c2_253 = arith.constant 2 : index
    %147 = vector.load %arg10[%c48_252, %c2_253] : memref<72x18xf32, #tpu.memory_space<vmem>>, vector<6x2xf32>
    tpu.vector_store %arg10[%c48_252, %c2_253], %146 {strides = array<i32>} : memref<72x18xf32, #tpu.memory_space<vmem>>, vector<6x2xf32>,
    %c82_254 = arith.constant 82 : index
    %c0_255 = arith.constant 0 : index
    %148 = vector.load %arg0[%c82_254, %c0_255] : memref<128x2xf32, #tpu.memory_space<vmem>>, vector<6x2xf32>
    %c48_256 = arith.constant 48 : index
    %c4_257 = arith.constant 4 : index
    %149 = vector.load %arg10[%c48_256, %c4_257] : memref<72x18xf32, #tpu.memory_space<vmem>>, vector<6x2xf32>
    tpu.vector_store %arg10[%c48_256, %c4_257], %148 {strides = array<i32>} : memref<72x18xf32, #tpu.memory_space<vmem>>, vector<6x2xf32>,
    %c88_258 = arith.constant 88 : index
    %c0_259 = arith.constant 0 : index
    %150 = vector.load %arg0[%c88_258, %c0_259] : memref<128x2xf32, #tpu.memory_space<vmem>>, vector<6x2xf32>
    %c48_260 = arith.constant 48 : index
    %c6_261 = arith.constant 6 : index
    %151 = vector.load %arg10[%c48_260, %c6_261] : memref<72x18xf32, #tpu.memory_space<vmem>>, vector<6x2xf32>
    tpu.vector_store %arg10[%c48_260, %c6_261], %150 {strides = array<i32>} : memref<72x18xf32, #tpu.memory_space<vmem>>, vector<6x2xf32>,
    %c89_262 = arith.constant 89 : index
    %c0_263 = arith.constant 0 : index
    %152 = vector.load %arg0[%c89_262, %c0_263] : memref<128x2xf32, #tpu.memory_space<vmem>>, vector<6x2xf32>
    %c48_264 = arith.constant 48 : index
    %c8_265 = arith.constant 8 : index
    %153 = vector.load %arg10[%c48_264, %c8_265] : memref<72x18xf32, #tpu.memory_space<vmem>>, vector<6x2xf32>
    tpu.vector_store %arg10[%c48_264, %c8_265], %152 {strides = array<i32>} : memref<72x18xf32, #tpu.memory_space<vmem>>, vector<6x2xf32>,
    %c90_266 = arith.constant 90 : index
    %c0_267 = arith.constant 0 : index
    %154 = vector.load %arg0[%c90_266, %c0_267] : memref<128x2xf32, #tpu.memory_space<vmem>>, vector<6x2xf32>
    %c48_268 = arith.constant 48 : index
    %c10_269 = arith.constant 10 : index
    %155 = vector.load %arg10[%c48_268, %c10_269] : memref<72x18xf32, #tpu.memory_space<vmem>>, vector<6x2xf32>
    tpu.vector_store %arg10[%c48_268, %c10_269], %154 {strides = array<i32>} : memref<72x18xf32, #tpu.memory_space<vmem>>, vector<6x2xf32>,
    %c96 = arith.constant 96 : index
    %c0_270 = arith.constant 0 : index
    %156 = vector.load %arg0[%c96, %c0_270] : memref<128x2xf32, #tpu.memory_space<vmem>>, vector<6x2xf32>
    %c48_271 = arith.constant 48 : index
    %c12_272 = arith.constant 12 : index
    %157 = vector.load %arg10[%c48_271, %c12_272] : memref<72x18xf32, #tpu.memory_space<vmem>>, vector<6x2xf32>
    tpu.vector_store %arg10[%c48_271, %c12_272], %156 {strides = array<i32>} : memref<72x18xf32, #tpu.memory_space<vmem>>, vector<6x2xf32>,
    %c97 = arith.constant 97 : index
    %c0_273 = arith.constant 0 : index
    %158 = vector.load %arg0[%c97, %c0_273] : memref<128x2xf32, #tpu.memory_space<vmem>>, vector<6x2xf32>
    %c48_274 = arith.constant 48 : index
    %c14_275 = arith.constant 14 : index
    %159 = vector.load %arg10[%c48_274, %c14_275] : memref<72x18xf32, #tpu.memory_space<vmem>>, vector<6x2xf32>
    tpu.vector_store %arg10[%c48_274, %c14_275], %158 {strides = array<i32>} : memref<72x18xf32, #tpu.memory_space<vmem>>, vector<6x2xf32>,
    %c98 = arith.constant 98 : index
    %c0_276 = arith.constant 0 : index
    %160 = vector.load %arg0[%c98, %c0_276] : memref<128x2xf32, #tpu.memory_space<vmem>>, vector<6x2xf32>
    %c48_277 = arith.constant 48 : index
    %c16_278 = arith.constant 16 : index
    %161 = vector.load %arg10[%c48_277, %c16_278] : memref<72x18xf32, #tpu.memory_space<vmem>>, vector<6x2xf32>
    tpu.vector_store %arg10[%c48_277, %c16_278], %160 {strides = array<i32>} : memref<72x18xf32, #tpu.memory_space<vmem>>, vector<6x2xf32>,
    %c88_279 = arith.constant 88 : index
    %c0_280 = arith.constant 0 : index
    %162 = vector.load %arg0[%c88_279, %c0_280] : memref<128x2xf32, #tpu.memory_space<vmem>>, vector<6x2xf32>
    %c54 = arith.constant 54 : index
    %c0_281 = arith.constant 0 : index
    %163 = vector.load %arg10[%c54, %c0_281] : memref<72x18xf32, #tpu.memory_space<vmem>>, vector<6x2xf32>
    tpu.vector_store %arg10[%c54, %c0_281], %162 {strides = array<i32>} : memref<72x18xf32, #tpu.memory_space<vmem>>, vector<6x2xf32>,
    %c89_282 = arith.constant 89 : index
    %c0_283 = arith.constant 0 : index
    %164 = vector.load %arg0[%c89_282, %c0_283] : memref<128x2xf32, #tpu.memory_space<vmem>>, vector<6x2xf32>
    %c54_284 = arith.constant 54 : index
    %c2_285 = arith.constant 2 : index
    %165 = vector.load %arg10[%c54_284, %c2_285] : memref<72x18xf32, #tpu.memory_space<vmem>>, vector<6x2xf32>
    tpu.vector_store %arg10[%c54_284, %c2_285], %164 {strides = array<i32>} : memref<72x18xf32, #tpu.memory_space<vmem>>, vector<6x2xf32>,
    %c90_286 = arith.constant 90 : index
    %c0_287 = arith.constant 0 : index
    %166 = vector.load %arg0[%c90_286, %c0_287] : memref<128x2xf32, #tpu.memory_space<vmem>>, vector<6x2xf32>
    %c54_288 = arith.constant 54 : index
    %c4_289 = arith.constant 4 : index
    %167 = vector.load %arg10[%c54_288, %c4_289] : memref<72x18xf32, #tpu.memory_space<vmem>>, vector<6x2xf32>
    tpu.vector_store %arg10[%c54_288, %c4_289], %166 {strides = array<i32>} : memref<72x18xf32, #tpu.memory_space<vmem>>, vector<6x2xf32>,
    %c96_290 = arith.constant 96 : index
    %c0_291 = arith.constant 0 : index
    %168 = vector.load %arg0[%c96_290, %c0_291] : memref<128x2xf32, #tpu.memory_space<vmem>>, vector<6x2xf32>
    %c54_292 = arith.constant 54 : index
    %c6_293 = arith.constant 6 : index
    %169 = vector.load %arg10[%c54_292, %c6_293] : memref<72x18xf32, #tpu.memory_space<vmem>>, vector<6x2xf32>
    tpu.vector_store %arg10[%c54_292, %c6_293], %168 {strides = array<i32>} : memref<72x18xf32, #tpu.memory_space<vmem>>, vector<6x2xf32>,
    %c97_294 = arith.constant 97 : index
    %c0_295 = arith.constant 0 : index
    %170 = vector.load %arg0[%c97_294, %c0_295] : memref<128x2xf32, #tpu.memory_space<vmem>>, vector<6x2xf32>
    %c54_296 = arith.constant 54 : index
    %c8_297 = arith.constant 8 : index
    %171 = vector.load %arg10[%c54_296, %c8_297] : memref<72x18xf32, #tpu.memory_space<vmem>>, vector<6x2xf32>
    tpu.vector_store %arg10[%c54_296, %c8_297], %170 {strides = array<i32>} : memref<72x18xf32, #tpu.memory_space<vmem>>, vector<6x2xf32>,
    %c98_298 = arith.constant 98 : index
    %c0_299 = arith.constant 0 : index
    %172 = vector.load %arg0[%c98_298, %c0_299] : memref<128x2xf32, #tpu.memory_space<vmem>>, vector<6x2xf32>
    %c54_300 = arith.constant 54 : index
    %c10_301 = arith.constant 10 : index
    %173 = vector.load %arg10[%c54_300, %c10_301] : memref<72x18xf32, #tpu.memory_space<vmem>>, vector<6x2xf32>
    tpu.vector_store %arg10[%c54_300, %c10_301], %172 {strides = array<i32>} : memref<72x18xf32, #tpu.memory_space<vmem>>, vector<6x2xf32>,
    %c104 = arith.constant 104 : index
    %c0_302 = arith.constant 0 : index
    %174 = vector.load %arg0[%c104, %c0_302] : memref<128x2xf32, #tpu.memory_space<vmem>>, vector<6x2xf32>
    %c54_303 = arith.constant 54 : index
    %c12_304 = arith.constant 12 : index
    %175 = vector.load %arg10[%c54_303, %c12_304] : memref<72x18xf32, #tpu.memory_space<vmem>>, vector<6x2xf32>
    tpu.vector_store %arg10[%c54_303, %c12_304], %174 {strides = array<i32>} : memref<72x18xf32, #tpu.memory_space<vmem>>, vector<6x2xf32>,
    %c105 = arith.constant 105 : index
    %c0_305 = arith.constant 0 : index
    %176 = vector.load %arg0[%c105, %c0_305] : memref<128x2xf32, #tpu.memory_space<vmem>>, vector<6x2xf32>
    %c54_306 = arith.constant 54 : index
    %c14_307 = arith.constant 14 : index
    %177 = vector.load %arg10[%c54_306, %c14_307] : memref<72x18xf32, #tpu.memory_space<vmem>>, vector<6x2xf32>
    tpu.vector_store %arg10[%c54_306, %c14_307], %176 {strides = array<i32>} : memref<72x18xf32, #tpu.memory_space<vmem>>, vector<6x2xf32>,
    %c106 = arith.constant 106 : index
    %c0_308 = arith.constant 0 : index
    %178 = vector.load %arg0[%c106, %c0_308] : memref<128x2xf32, #tpu.memory_space<vmem>>, vector<6x2xf32>
    %c54_309 = arith.constant 54 : index
    %c16_310 = arith.constant 16 : index
    %179 = vector.load %arg10[%c54_309, %c16_310] : memref<72x18xf32, #tpu.memory_space<vmem>>, vector<6x2xf32>
    tpu.vector_store %arg10[%c54_309, %c16_310], %178 {strides = array<i32>} : memref<72x18xf32, #tpu.memory_space<vmem>>, vector<6x2xf32>,
    %c96_311 = arith.constant 96 : index
    %c0_312 = arith.constant 0 : index
    %180 = vector.load %arg0[%c96_311, %c0_312] : memref<128x2xf32, #tpu.memory_space<vmem>>, vector<6x2xf32>
    %c60 = arith.constant 60 : index
    %c0_313 = arith.constant 0 : index
    %181 = vector.load %arg10[%c60, %c0_313] : memref<72x18xf32, #tpu.memory_space<vmem>>, vector<6x2xf32>
    tpu.vector_store %arg10[%c60, %c0_313], %180 {strides = array<i32>} : memref<72x18xf32, #tpu.memory_space<vmem>>, vector<6x2xf32>,
    %c97_314 = arith.constant 97 : index
    %c0_315 = arith.constant 0 : index
    %182 = vector.load %arg0[%c97_314, %c0_315] : memref<128x2xf32, #tpu.memory_space<vmem>>, vector<6x2xf32>
    %c60_316 = arith.constant 60 : index
    %c2_317 = arith.constant 2 : index
    %183 = vector.load %arg10[%c60_316, %c2_317] : memref<72x18xf32, #tpu.memory_space<vmem>>, vector<6x2xf32>
    tpu.vector_store %arg10[%c60_316, %c2_317], %182 {strides = array<i32>} : memref<72x18xf32, #tpu.memory_space<vmem>>, vector<6x2xf32>,
    %c98_318 = arith.constant 98 : index
    %c0_319 = arith.constant 0 : index
    %184 = vector.load %arg0[%c98_318, %c0_319] : memref<128x2xf32, #tpu.memory_space<vmem>>, vector<6x2xf32>
    %c60_320 = arith.constant 60 : index
    %c4_321 = arith.constant 4 : index
    %185 = vector.load %arg10[%c60_320, %c4_321] : memref<72x18xf32, #tpu.memory_space<vmem>>, vector<6x2xf32>
    tpu.vector_store %arg10[%c60_320, %c4_321], %184 {strides = array<i32>} : memref<72x18xf32, #tpu.memory_space<vmem>>, vector<6x2xf32>,
    %c104_322 = arith.constant 104 : index
    %c0_323 = arith.constant 0 : index
    %186 = vector.load %arg0[%c104_322, %c0_323] : memref<128x2xf32, #tpu.memory_space<vmem>>, vector<6x2xf32>
    %c60_324 = arith.constant 60 : index
    %c6_325 = arith.constant 6 : index
    %187 = vector.load %arg10[%c60_324, %c6_325] : memref<72x18xf32, #tpu.memory_space<vmem>>, vector<6x2xf32>
    tpu.vector_store %arg10[%c60_324, %c6_325], %186 {strides = array<i32>} : memref<72x18xf32, #tpu.memory_space<vmem>>, vector<6x2xf32>,
    %c105_326 = arith.constant 105 : index
    %c0_327 = arith.constant 0 : index
    %188 = vector.load %arg0[%c105_326, %c0_327] : memref<128x2xf32, #tpu.memory_space<vmem>>, vector<6x2xf32>
    %c60_328 = arith.constant 60 : index
    %c8_329 = arith.constant 8 : index
    %189 = vector.load %arg10[%c60_328, %c8_329] : memref<72x18xf32, #tpu.memory_space<vmem>>, vector<6x2xf32>
    tpu.vector_store %arg10[%c60_328, %c8_329], %188 {strides = array<i32>} : memref<72x18xf32, #tpu.memory_space<vmem>>, vector<6x2xf32>,
    %c106_330 = arith.constant 106 : index
    %c0_331 = arith.constant 0 : index
    %190 = vector.load %arg0[%c106_330, %c0_331] : memref<128x2xf32, #tpu.memory_space<vmem>>, vector<6x2xf32>
    %c60_332 = arith.constant 60 : index
    %c10_333 = arith.constant 10 : index
    %191 = vector.load %arg10[%c60_332, %c10_333] : memref<72x18xf32, #tpu.memory_space<vmem>>, vector<6x2xf32>
    tpu.vector_store %arg10[%c60_332, %c10_333], %190 {strides = array<i32>} : memref<72x18xf32, #tpu.memory_space<vmem>>, vector<6x2xf32>,
    %c112 = arith.constant 112 : index
    %c0_334 = arith.constant 0 : index
    %192 = vector.load %arg0[%c112, %c0_334] : memref<128x2xf32, #tpu.memory_space<vmem>>, vector<6x2xf32>
    %c60_335 = arith.constant 60 : index
    %c12_336 = arith.constant 12 : index
    %193 = vector.load %arg10[%c60_335, %c12_336] : memref<72x18xf32, #tpu.memory_space<vmem>>, vector<6x2xf32>
    tpu.vector_store %arg10[%c60_335, %c12_336], %192 {strides = array<i32>} : memref<72x18xf32, #tpu.memory_space<vmem>>, vector<6x2xf32>,
    %c113 = arith.constant 113 : index
    %c0_337 = arith.constant 0 : index
    %194 = vector.load %arg0[%c113, %c0_337] : memref<128x2xf32, #tpu.memory_space<vmem>>, vector<6x2xf32>
    %c60_338 = arith.constant 60 : index
    %c14_339 = arith.constant 14 : index
    %195 = vector.load %arg10[%c60_338, %c14_339] : memref<72x18xf32, #tpu.memory_space<vmem>>, vector<6x2xf32>
    tpu.vector_store %arg10[%c60_338, %c14_339], %194 {strides = array<i32>} : memref<72x18xf32, #tpu.memory_space<vmem>>, vector<6x2xf32>,
    %c114 = arith.constant 114 : index
    %c0_340 = arith.constant 0 : index
    %196 = vector.load %arg0[%c114, %c0_340] : memref<128x2xf32, #tpu.memory_space<vmem>>, vector<6x2xf32>
    %c60_341 = arith.constant 60 : index
    %c16_342 = arith.constant 16 : index
    %197 = vector.load %arg10[%c60_341, %c16_342] : memref<72x18xf32, #tpu.memory_space<vmem>>, vector<6x2xf32>
    tpu.vector_store %arg10[%c60_341, %c16_342], %196 {strides = array<i32>} : memref<72x18xf32, #tpu.memory_space<vmem>>, vector<6x2xf32>,
    %c104_343 = arith.constant 104 : index
    %c0_344 = arith.constant 0 : index
    %198 = vector.load %arg0[%c104_343, %c0_344] : memref<128x2xf32, #tpu.memory_space<vmem>>, vector<6x2xf32>
    %c66_345 = arith.constant 66 : index
    %c0_346 = arith.constant 0 : index
    %199 = vector.load %arg10[%c66_345, %c0_346] : memref<72x18xf32, #tpu.memory_space<vmem>>, vector<6x2xf32>
    tpu.vector_store %arg10[%c66_345, %c0_346], %198 {strides = array<i32>} : memref<72x18xf32, #tpu.memory_space<vmem>>, vector<6x2xf32>,
    %c105_347 = arith.constant 105 : index
    %c0_348 = arith.constant 0 : index
    %200 = vector.load %arg0[%c105_347, %c0_348] : memref<128x2xf32, #tpu.memory_space<vmem>>, vector<6x2xf32>
    %c66_349 = arith.constant 66 : index
    %c2_350 = arith.constant 2 : index
    %201 = vector.load %arg10[%c66_349, %c2_350] : memref<72x18xf32, #tpu.memory_space<vmem>>, vector<6x2xf32>
    tpu.vector_store %arg10[%c66_349, %c2_350], %200 {strides = array<i32>} : memref<72x18xf32, #tpu.memory_space<vmem>>, vector<6x2xf32>,
    %c106_351 = arith.constant 106 : index
    %c0_352 = arith.constant 0 : index
    %202 = vector.load %arg0[%c106_351, %c0_352] : memref<128x2xf32, #tpu.memory_space<vmem>>, vector<6x2xf32>
    %c66_353 = arith.constant 66 : index
    %c4_354 = arith.constant 4 : index
    %203 = vector.load %arg10[%c66_353, %c4_354] : memref<72x18xf32, #tpu.memory_space<vmem>>, vector<6x2xf32>
    tpu.vector_store %arg10[%c66_353, %c4_354], %202 {strides = array<i32>} : memref<72x18xf32, #tpu.memory_space<vmem>>, vector<6x2xf32>,
    %c112_355 = arith.constant 112 : index
    %c0_356 = arith.constant 0 : index
    %204 = vector.load %arg0[%c112_355, %c0_356] : memref<128x2xf32, #tpu.memory_space<vmem>>, vector<6x2xf32>
    %c66_357 = arith.constant 66 : index
    %c6_358 = arith.constant 6 : index
    %205 = vector.load %arg10[%c66_357, %c6_358] : memref<72x18xf32, #tpu.memory_space<vmem>>, vector<6x2xf32>
    tpu.vector_store %arg10[%c66_357, %c6_358], %204 {strides = array<i32>} : memref<72x18xf32, #tpu.memory_space<vmem>>, vector<6x2xf32>,
    %c113_359 = arith.constant 113 : index
    %c0_360 = arith.constant 0 : index
    %206 = vector.load %arg0[%c113_359, %c0_360] : memref<128x2xf32, #tpu.memory_space<vmem>>, vector<6x2xf32>
    %c66_361 = arith.constant 66 : index
    %c8_362 = arith.constant 8 : index
    %207 = vector.load %arg10[%c66_361, %c8_362] : memref<72x18xf32, #tpu.memory_space<vmem>>, vector<6x2xf32>
    tpu.vector_store %arg10[%c66_361, %c8_362], %206 {strides = array<i32>} : memref<72x18xf32, #tpu.memory_space<vmem>>, vector<6x2xf32>,
    %c114_363 = arith.constant 114 : index
    %c0_364 = arith.constant 0 : index
    %208 = vector.load %arg0[%c114_363, %c0_364] : memref<128x2xf32, #tpu.memory_space<vmem>>, vector<6x2xf32>
    %c66_365 = arith.constant 66 : index
    %c10_366 = arith.constant 10 : index
    %209 = vector.load %arg10[%c66_365, %c10_366] : memref<72x18xf32, #tpu.memory_space<vmem>>, vector<6x2xf32>
    tpu.vector_store %arg10[%c66_365, %c10_366], %208 {strides = array<i32>} : memref<72x18xf32, #tpu.memory_space<vmem>>, vector<6x2xf32>,
    %c120 = arith.constant 120 : index
    %c0_367 = arith.constant 0 : index
    %210 = vector.load %arg0[%c120, %c0_367] : memref<128x2xf32, #tpu.memory_space<vmem>>, vector<6x2xf32>
    %c66_368 = arith.constant 66 : index
    %c12_369 = arith.constant 12 : index
    %211 = vector.load %arg10[%c66_368, %c12_369] : memref<72x18xf32, #tpu.memory_space<vmem>>, vector<6x2xf32>
    tpu.vector_store %arg10[%c66_368, %c12_369], %210 {strides = array<i32>} : memref<72x18xf32, #tpu.memory_space<vmem>>, vector<6x2xf32>,
    %c121 = arith.constant 121 : index
    %c0_370 = arith.constant 0 : index
    %212 = vector.load %arg0[%c121, %c0_370] : memref<128x2xf32, #tpu.memory_space<vmem>>, vector<6x2xf32>
    %c66_371 = arith.constant 66 : index
    %c14_372 = arith.constant 14 : index
    %213 = vector.load %arg10[%c66_371, %c14_372] : memref<72x18xf32, #tpu.memory_space<vmem>>, vector<6x2xf32>
    tpu.vector_store %arg10[%c66_371, %c14_372], %212 {strides = array<i32>} : memref<72x18xf32, #tpu.memory_space<vmem>>, vector<6x2xf32>,
    %c122 = arith.constant 122 : index
    %c0_373 = arith.constant 0 : index
    %214 = vector.load %arg0[%c122, %c0_373] : memref<128x2xf32, #tpu.memory_space<vmem>>, vector<6x2xf32>
    %c66_374 = arith.constant 66 : index
    %c16_375 = arith.constant 16 : index
    %215 = vector.load %arg10[%c66_374, %c16_375] : memref<72x18xf32, #tpu.memory_space<vmem>>, vector<6x2xf32>
    tpu.vector_store %arg10[%c66_374, %c16_375], %214 {strides = array<i32>} : memref<72x18xf32, #tpu.memory_space<vmem>>, vector<6x2xf32>,
    %c0_376 = arith.constant 0 : index
    %c0_377 = arith.constant 0 : index
    %216 = vector.load %arg10[%c0_376, %c0_377] : memref<72x18xf32, #tpu.memory_space<vmem>>, vector<72x18xf32>
    %c0_378 = arith.constant 0 : index
    %c0_379 = arith.constant 0 : index
    %217 = vector.load %arg1[%c0_378, %c0_379] : memref<18x4xf32, #tpu.memory_space<vmem>>, vector<18x4xf32>
    %cst = arith.constant dense<0.000000e+00> : vector<72x4xf32>
    %218 = tpu.matmul %216, %217, %cst {dimension_numbers = #tpu.dot_dimension_numbers<[1], [0], [0], [1], [0, 0, 1, 1], [], []>} : vector<72x18xf32>, vector<18x4xf32>, vector<72x4xf32> -> vector<72x4xf32>
    %c0_380 = arith.constant 0 : index
    %c0_381 = arith.constant 0 : index
    %219 = vector.load %arg2[%c0_380, %c0_381] : memref<1x4xf32, #tpu.memory_space<vmem>>, vector<1x4xf32>
    %220 = vector.broadcast %219 : vector<1x4xf32> to vector<72x4xf32>
    %221 = arith.addf %218, %220 : vector<72x4xf32>
    %cst_382 = arith.constant 0.000000e+00 : f32
    %222 = vector.broadcast %cst_382 : f32 to vector<72x4xf32>
    %223 = arith.maximumf %221, %222 : vector<72x4xf32>
    %c0_383 = arith.constant 0 : index
    %c0_384 = arith.constant 0 : index
    %224 = vector.load %arg9[%c0_383, %c0_384] : memref<72x4xf32, #tpu.memory_space<vmem>>, vector<72x4xf32>
    tpu.vector_store %arg9[%c0_383, %c0_384], %223 {strides = array<i32>} : memref<72x4xf32, #tpu.memory_space<vmem>>, vector<72x4xf32>,
    %c0_385 = arith.constant 0 : index
    %c0_386 = arith.constant 0 : index
    %225 = vector.load %arg9[%c0_385, %c0_386] : memref<72x4xf32, #tpu.memory_space<vmem>>, vector<2x4xf32>
    %c0_387 = arith.constant 0 : index
    %c0_388 = arith.constant 0 : index
    %226 = vector.load %arg11[%c0_387, %c0_388] : memref<8x100xf32, #tpu.memory_space<vmem>>, vector<2x4xf32>
    tpu.vector_store %arg11[%c0_387, %c0_388], %225 {strides = array<i32>} : memref<8x100xf32, #tpu.memory_space<vmem>>, vector<2x4xf32>,
    %c1_389 = arith.constant 1 : index
    %c0_390 = arith.constant 0 : index
    %227 = vector.load %arg9[%c1_389, %c0_390] : memref<72x4xf32, #tpu.memory_space<vmem>>, vector<2x4xf32>
    %c0_391 = arith.constant 0 : index
    %c4_392 = arith.constant 4 : index
    %228 = vector.load %arg11[%c0_391, %c4_392] : memref<8x100xf32, #tpu.memory_space<vmem>>, vector<2x4xf32>
    tpu.vector_store %arg11[%c0_391, %c4_392], %227 {strides = array<i32>} : memref<8x100xf32, #tpu.memory_space<vmem>>, vector<2x4xf32>,
    %c2_393 = arith.constant 2 : index
    %c0_394 = arith.constant 0 : index
    %229 = vector.load %arg9[%c2_393, %c0_394] : memref<72x4xf32, #tpu.memory_space<vmem>>, vector<2x4xf32>
    %c0_395 = arith.constant 0 : index
    %c8_396 = arith.constant 8 : index
    %230 = vector.load %arg11[%c0_395, %c8_396] : memref<8x100xf32, #tpu.memory_space<vmem>>, vector<2x4xf32>
    tpu.vector_store %arg11[%c0_395, %c8_396], %229 {strides = array<i32>} : memref<8x100xf32, #tpu.memory_space<vmem>>, vector<2x4xf32>,
    %c3 = arith.constant 3 : index
    %c0_397 = arith.constant 0 : index
    %231 = vector.load %arg9[%c3, %c0_397] : memref<72x4xf32, #tpu.memory_space<vmem>>, vector<2x4xf32>
    %c0_398 = arith.constant 0 : index
    %c12_399 = arith.constant 12 : index
    %232 = vector.load %arg11[%c0_398, %c12_399] : memref<8x100xf32, #tpu.memory_space<vmem>>, vector<2x4xf32>
    tpu.vector_store %arg11[%c0_398, %c12_399], %231 {strides = array<i32>} : memref<8x100xf32, #tpu.memory_space<vmem>>, vector<2x4xf32>,
    %c4_400 = arith.constant 4 : index
    %c0_401 = arith.constant 0 : index
    %233 = vector.load %arg9[%c4_400, %c0_401] : memref<72x4xf32, #tpu.memory_space<vmem>>, vector<2x4xf32>
    %c0_402 = arith.constant 0 : index
    %c16_403 = arith.constant 16 : index
    %234 = vector.load %arg11[%c0_402, %c16_403] : memref<8x100xf32, #tpu.memory_space<vmem>>, vector<2x4xf32>
    tpu.vector_store %arg11[%c0_402, %c16_403], %233 {strides = array<i32>} : memref<8x100xf32, #tpu.memory_space<vmem>>, vector<2x4xf32>,
    %c6_404 = arith.constant 6 : index
    %c0_405 = arith.constant 0 : index
    %235 = vector.load %arg9[%c6_404, %c0_405] : memref<72x4xf32, #tpu.memory_space<vmem>>, vector<2x4xf32>
    %c0_406 = arith.constant 0 : index
    %c20 = arith.constant 20 : index
    %236 = vector.load %arg11[%c0_406, %c20] : memref<8x100xf32, #tpu.memory_space<vmem>>, vector<2x4xf32>
    tpu.vector_store %arg11[%c0_406, %c20], %235 {strides = array<i32>} : memref<8x100xf32, #tpu.memory_space<vmem>>, vector<2x4xf32>,
    %c7 = arith.constant 7 : index
    %c0_407 = arith.constant 0 : index
    %237 = vector.load %arg9[%c7, %c0_407] : memref<72x4xf32, #tpu.memory_space<vmem>>, vector<2x4xf32>
    %c0_408 = arith.constant 0 : index
    %c24_409 = arith.constant 24 : index
    %238 = vector.load %arg11[%c0_408, %c24_409] : memref<8x100xf32, #tpu.memory_space<vmem>>, vector<2x4xf32>
    tpu.vector_store %arg11[%c0_408, %c24_409], %237 {strides = array<i32>} : memref<8x100xf32, #tpu.memory_space<vmem>>, vector<2x4xf32>,
    %c8_410 = arith.constant 8 : index
    %c0_411 = arith.constant 0 : index
    %239 = vector.load %arg9[%c8_410, %c0_411] : memref<72x4xf32, #tpu.memory_space<vmem>>, vector<2x4xf32>
    %c0_412 = arith.constant 0 : index
    %c28 = arith.constant 28 : index
    %240 = vector.load %arg11[%c0_412, %c28] : memref<8x100xf32, #tpu.memory_space<vmem>>, vector<2x4xf32>
    tpu.vector_store %arg11[%c0_412, %c28], %239 {strides = array<i32>} : memref<8x100xf32, #tpu.memory_space<vmem>>, vector<2x4xf32>,
    %c9_413 = arith.constant 9 : index
    %c0_414 = arith.constant 0 : index
    %241 = vector.load %arg9[%c9_413, %c0_414] : memref<72x4xf32, #tpu.memory_space<vmem>>, vector<2x4xf32>
    %c0_415 = arith.constant 0 : index
    %c32_416 = arith.constant 32 : index
    %242 = vector.load %arg11[%c0_415, %c32_416] : memref<8x100xf32, #tpu.memory_space<vmem>>, vector<2x4xf32>
    tpu.vector_store %arg11[%c0_415, %c32_416], %241 {strides = array<i32>} : memref<8x100xf32, #tpu.memory_space<vmem>>, vector<2x4xf32>,
    %c10_417 = arith.constant 10 : index
    %c0_418 = arith.constant 0 : index
    %243 = vector.load %arg9[%c10_417, %c0_418] : memref<72x4xf32, #tpu.memory_space<vmem>>, vector<2x4xf32>
    %c0_419 = arith.constant 0 : index
    %c36_420 = arith.constant 36 : index
    %244 = vector.load %arg11[%c0_419, %c36_420] : memref<8x100xf32, #tpu.memory_space<vmem>>, vector<2x4xf32>
    tpu.vector_store %arg11[%c0_419, %c36_420], %243 {strides = array<i32>} : memref<8x100xf32, #tpu.memory_space<vmem>>, vector<2x4xf32>,
    %c12_421 = arith.constant 12 : index
    %c0_422 = arith.constant 0 : index
    %245 = vector.load %arg9[%c12_421, %c0_422] : memref<72x4xf32, #tpu.memory_space<vmem>>, vector<2x4xf32>
    %c0_423 = arith.constant 0 : index
    %c40_424 = arith.constant 40 : index
    %246 = vector.load %arg11[%c0_423, %c40_424] : memref<8x100xf32, #tpu.memory_space<vmem>>, vector<2x4xf32>
    tpu.vector_store %arg11[%c0_423, %c40_424], %245 {strides = array<i32>} : memref<8x100xf32, #tpu.memory_space<vmem>>, vector<2x4xf32>,
    %c13 = arith.constant 13 : index
    %c0_425 = arith.constant 0 : index
    %247 = vector.load %arg9[%c13, %c0_425] : memref<72x4xf32, #tpu.memory_space<vmem>>, vector<2x4xf32>
    %c0_426 = arith.constant 0 : index
    %c44 = arith.constant 44 : index
    %248 = vector.load %arg11[%c0_426, %c44] : memref<8x100xf32, #tpu.memory_space<vmem>>, vector<2x4xf32>
    tpu.vector_store %arg11[%c0_426, %c44], %247 {strides = array<i32>} : memref<8x100xf32, #tpu.memory_space<vmem>>, vector<2x4xf32>,
    %c14_427 = arith.constant 14 : index
    %c0_428 = arith.constant 0 : index
    %249 = vector.load %arg9[%c14_427, %c0_428] : memref<72x4xf32, #tpu.memory_space<vmem>>, vector<2x4xf32>
    %c0_429 = arith.constant 0 : index
    %c48_430 = arith.constant 48 : index
    %250 = vector.load %arg11[%c0_429, %c48_430] : memref<8x100xf32, #tpu.memory_space<vmem>>, vector<2x4xf32>
    tpu.vector_store %arg11[%c0_429, %c48_430], %249 {strides = array<i32>} : memref<8x100xf32, #tpu.memory_space<vmem>>, vector<2x4xf32>,
    %c15 = arith.constant 15 : index
    %c0_431 = arith.constant 0 : index
    %251 = vector.load %arg9[%c15, %c0_431] : memref<72x4xf32, #tpu.memory_space<vmem>>, vector<2x4xf32>
    %c0_432 = arith.constant 0 : index
    %c52 = arith.constant 52 : index
    %252 = vector.load %arg11[%c0_432, %c52] : memref<8x100xf32, #tpu.memory_space<vmem>>, vector<2x4xf32>
    tpu.vector_store %arg11[%c0_432, %c52], %251 {strides = array<i32>} : memref<8x100xf32, #tpu.memory_space<vmem>>, vector<2x4xf32>,
    %c16_433 = arith.constant 16 : index
    %c0_434 = arith.constant 0 : index
    %253 = vector.load %arg9[%c16_433, %c0_434] : memref<72x4xf32, #tpu.memory_space<vmem>>, vector<2x4xf32>
    %c0_435 = arith.constant 0 : index
    %c56_436 = arith.constant 56 : index
    %254 = vector.load %arg11[%c0_435, %c56_436] : memref<8x100xf32, #tpu.memory_space<vmem>>, vector<2x4xf32>
    tpu.vector_store %arg11[%c0_435, %c56_436], %253 {strides = array<i32>} : memref<8x100xf32, #tpu.memory_space<vmem>>, vector<2x4xf32>,
    %c18_437 = arith.constant 18 : index
    %c0_438 = arith.constant 0 : index
    %255 = vector.load %arg9[%c18_437, %c0_438] : memref<72x4xf32, #tpu.memory_space<vmem>>, vector<2x4xf32>
    %c0_439 = arith.constant 0 : index
    %c60_440 = arith.constant 60 : index
    %256 = vector.load %arg11[%c0_439, %c60_440] : memref<8x100xf32, #tpu.memory_space<vmem>>, vector<2x4xf32>
    tpu.vector_store %arg11[%c0_439, %c60_440], %255 {strides = array<i32>} : memref<8x100xf32, #tpu.memory_space<vmem>>, vector<2x4xf32>,
    %c19 = arith.constant 19 : index
    %c0_441 = arith.constant 0 : index
    %257 = vector.load %arg9[%c19, %c0_441] : memref<72x4xf32, #tpu.memory_space<vmem>>, vector<2x4xf32>
    %c0_442 = arith.constant 0 : index
    %c64_443 = arith.constant 64 : index
    %258 = vector.load %arg11[%c0_442, %c64_443] : memref<8x100xf32, #tpu.memory_space<vmem>>, vector<2x4xf32>
    tpu.vector_store %arg11[%c0_442, %c64_443], %257 {strides = array<i32>} : memref<8x100xf32, #tpu.memory_space<vmem>>, vector<2x4xf32>,
    %c20_444 = arith.constant 20 : index
    %c0_445 = arith.constant 0 : index
    %259 = vector.load %arg9[%c20_444, %c0_445] : memref<72x4xf32, #tpu.memory_space<vmem>>, vector<2x4xf32>
    %c0_446 = arith.constant 0 : index
    %c68 = arith.constant 68 : index
    %260 = vector.load %arg11[%c0_446, %c68] : memref<8x100xf32, #tpu.memory_space<vmem>>, vector<2x4xf32>
    tpu.vector_store %arg11[%c0_446, %c68], %259 {strides = array<i32>} : memref<8x100xf32, #tpu.memory_space<vmem>>, vector<2x4xf32>,
    %c21 = arith.constant 21 : index
    %c0_447 = arith.constant 0 : index
    %261 = vector.load %arg9[%c21, %c0_447] : memref<72x4xf32, #tpu.memory_space<vmem>>, vector<2x4xf32>
    %c0_448 = arith.constant 0 : index
    %c72_449 = arith.constant 72 : index
    %262 = vector.load %arg11[%c0_448, %c72_449] : memref<8x100xf32, #tpu.memory_space<vmem>>, vector<2x4xf32>
    tpu.vector_store %arg11[%c0_448, %c72_449], %261 {strides = array<i32>} : memref<8x100xf32, #tpu.memory_space<vmem>>, vector<2x4xf32>,
    %c22 = arith.constant 22 : index
    %c0_450 = arith.constant 0 : index
    %263 = vector.load %arg9[%c22, %c0_450] : memref<72x4xf32, #tpu.memory_space<vmem>>, vector<2x4xf32>
    %c0_451 = arith.constant 0 : index
    %c76 = arith.constant 76 : index
    %264 = vector.load %arg11[%c0_451, %c76] : memref<8x100xf32, #tpu.memory_space<vmem>>, vector<2x4xf32>
    tpu.vector_store %arg11[%c0_451, %c76], %263 {strides = array<i32>} : memref<8x100xf32, #tpu.memory_space<vmem>>, vector<2x4xf32>,
    %c24_452 = arith.constant 24 : index
    %c0_453 = arith.constant 0 : index
    %265 = vector.load %arg9[%c24_452, %c0_453] : memref<72x4xf32, #tpu.memory_space<vmem>>, vector<2x4xf32>
    %c0_454 = arith.constant 0 : index
    %c80_455 = arith.constant 80 : index
    %266 = vector.load %arg11[%c0_454, %c80_455] : memref<8x100xf32, #tpu.memory_space<vmem>>, vector<2x4xf32>
    tpu.vector_store %arg11[%c0_454, %c80_455], %265 {strides = array<i32>} : memref<8x100xf32, #tpu.memory_space<vmem>>, vector<2x4xf32>,
    %c25_456 = arith.constant 25 : index
    %c0_457 = arith.constant 0 : index
    %267 = vector.load %arg9[%c25_456, %c0_457] : memref<72x4xf32, #tpu.memory_space<vmem>>, vector<2x4xf32>
    %c0_458 = arith.constant 0 : index
    %c84 = arith.constant 84 : index
    %268 = vector.load %arg11[%c0_458, %c84] : memref<8x100xf32, #tpu.memory_space<vmem>>, vector<2x4xf32>
    tpu.vector_store %arg11[%c0_458, %c84], %267 {strides = array<i32>} : memref<8x100xf32, #tpu.memory_space<vmem>>, vector<2x4xf32>,
    %c26_459 = arith.constant 26 : index
    %c0_460 = arith.constant 0 : index
    %269 = vector.load %arg9[%c26_459, %c0_460] : memref<72x4xf32, #tpu.memory_space<vmem>>, vector<2x4xf32>
    %c0_461 = arith.constant 0 : index
    %c88_462 = arith.constant 88 : index
    %270 = vector.load %arg11[%c0_461, %c88_462] : memref<8x100xf32, #tpu.memory_space<vmem>>, vector<2x4xf32>
    tpu.vector_store %arg11[%c0_461, %c88_462], %269 {strides = array<i32>} : memref<8x100xf32, #tpu.memory_space<vmem>>, vector<2x4xf32>,
    %c27 = arith.constant 27 : index
    %c0_463 = arith.constant 0 : index
    %271 = vector.load %arg9[%c27, %c0_463] : memref<72x4xf32, #tpu.memory_space<vmem>>, vector<2x4xf32>
    %c0_464 = arith.constant 0 : index
    %c92 = arith.constant 92 : index
    %272 = vector.load %arg11[%c0_464, %c92] : memref<8x100xf32, #tpu.memory_space<vmem>>, vector<2x4xf32>
    tpu.vector_store %arg11[%c0_464, %c92], %271 {strides = array<i32>} : memref<8x100xf32, #tpu.memory_space<vmem>>, vector<2x4xf32>,
    %c28_465 = arith.constant 28 : index
    %c0_466 = arith.constant 0 : index
    %273 = vector.load %arg9[%c28_465, %c0_466] : memref<72x4xf32, #tpu.memory_space<vmem>>, vector<2x4xf32>
    %c0_467 = arith.constant 0 : index
    %c96_468 = arith.constant 96 : index
    %274 = vector.load %arg11[%c0_467, %c96_468] : memref<8x100xf32, #tpu.memory_space<vmem>>, vector<2x4xf32>
    tpu.vector_store %arg11[%c0_467, %c96_468], %273 {strides = array<i32>} : memref<8x100xf32, #tpu.memory_space<vmem>>, vector<2x4xf32>,
    %c6_469 = arith.constant 6 : index
    %c0_470 = arith.constant 0 : index
    %275 = vector.load %arg9[%c6_469, %c0_470] : memref<72x4xf32, #tpu.memory_space<vmem>>, vector<2x4xf32>
    %c2_471 = arith.constant 2 : index
    %c0_472 = arith.constant 0 : index
    %276 = vector.load %arg11[%c2_471, %c0_472] : memref<8x100xf32, #tpu.memory_space<vmem>>, vector<2x4xf32>
    tpu.vector_store %arg11[%c2_471, %c0_472], %275 {strides = array<i32>} : memref<8x100xf32, #tpu.memory_space<vmem>>, vector<2x4xf32>,
    %c7_473 = arith.constant 7 : index
    %c0_474 = arith.constant 0 : index
    %277 = vector.load %arg9[%c7_473, %c0_474] : memref<72x4xf32, #tpu.memory_space<vmem>>, vector<2x4xf32>
    %c2_475 = arith.constant 2 : index
    %c4_476 = arith.constant 4 : index
    %278 = vector.load %arg11[%c2_475, %c4_476] : memref<8x100xf32, #tpu.memory_space<vmem>>, vector<2x4xf32>
    tpu.vector_store %arg11[%c2_475, %c4_476], %277 {strides = array<i32>} : memref<8x100xf32, #tpu.memory_space<vmem>>, vector<2x4xf32>,
    %c8_477 = arith.constant 8 : index
    %c0_478 = arith.constant 0 : index
    %279 = vector.load %arg9[%c8_477, %c0_478] : memref<72x4xf32, #tpu.memory_space<vmem>>, vector<2x4xf32>
    %c2_479 = arith.constant 2 : index
    %c8_480 = arith.constant 8 : index
    %280 = vector.load %arg11[%c2_479, %c8_480] : memref<8x100xf32, #tpu.memory_space<vmem>>, vector<2x4xf32>
    tpu.vector_store %arg11[%c2_479, %c8_480], %279 {strides = array<i32>} : memref<8x100xf32, #tpu.memory_space<vmem>>, vector<2x4xf32>,
    %c9_481 = arith.constant 9 : index
    %c0_482 = arith.constant 0 : index
    %281 = vector.load %arg9[%c9_481, %c0_482] : memref<72x4xf32, #tpu.memory_space<vmem>>, vector<2x4xf32>
    %c2_483 = arith.constant 2 : index
    %c12_484 = arith.constant 12 : index
    %282 = vector.load %arg11[%c2_483, %c12_484] : memref<8x100xf32, #tpu.memory_space<vmem>>, vector<2x4xf32>
    tpu.vector_store %arg11[%c2_483, %c12_484], %281 {strides = array<i32>} : memref<8x100xf32, #tpu.memory_space<vmem>>, vector<2x4xf32>,
    %c10_485 = arith.constant 10 : index
    %c0_486 = arith.constant 0 : index
    %283 = vector.load %arg9[%c10_485, %c0_486] : memref<72x4xf32, #tpu.memory_space<vmem>>, vector<2x4xf32>
    %c2_487 = arith.constant 2 : index
    %c16_488 = arith.constant 16 : index
    %284 = vector.load %arg11[%c2_487, %c16_488] : memref<8x100xf32, #tpu.memory_space<vmem>>, vector<2x4xf32>
    tpu.vector_store %arg11[%c2_487, %c16_488], %283 {strides = array<i32>} : memref<8x100xf32, #tpu.memory_space<vmem>>, vector<2x4xf32>,
    %c12_489 = arith.constant 12 : index
    %c0_490 = arith.constant 0 : index
    %285 = vector.load %arg9[%c12_489, %c0_490] : memref<72x4xf32, #tpu.memory_space<vmem>>, vector<2x4xf32>
    %c2_491 = arith.constant 2 : index
    %c20_492 = arith.constant 20 : index
    %286 = vector.load %arg11[%c2_491, %c20_492] : memref<8x100xf32, #tpu.memory_space<vmem>>, vector<2x4xf32>
    tpu.vector_store %arg11[%c2_491, %c20_492], %285 {strides = array<i32>} : memref<8x100xf32, #tpu.memory_space<vmem>>, vector<2x4xf32>,
    %c13_493 = arith.constant 13 : index
    %c0_494 = arith.constant 0 : index
    %287 = vector.load %arg9[%c13_493, %c0_494] : memref<72x4xf32, #tpu.memory_space<vmem>>, vector<2x4xf32>
    %c2_495 = arith.constant 2 : index
    %c24_496 = arith.constant 24 : index
    %288 = vector.load %arg11[%c2_495, %c24_496] : memref<8x100xf32, #tpu.memory_space<vmem>>, vector<2x4xf32>
    tpu.vector_store %arg11[%c2_495, %c24_496], %287 {strides = array<i32>} : memref<8x100xf32, #tpu.memory_space<vmem>>, vector<2x4xf32>,
    %c14_497 = arith.constant 14 : index
    %c0_498 = arith.constant 0 : index
    %289 = vector.load %arg9[%c14_497, %c0_498] : memref<72x4xf32, #tpu.memory_space<vmem>>, vector<2x4xf32>
    %c2_499 = arith.constant 2 : index
    %c28_500 = arith.constant 28 : index
    %290 = vector.load %arg11[%c2_499, %c28_500] : memref<8x100xf32, #tpu.memory_space<vmem>>, vector<2x4xf32>
    tpu.vector_store %arg11[%c2_499, %c28_500], %289 {strides = array<i32>} : memref<8x100xf32, #tpu.memory_space<vmem>>, vector<2x4xf32>,
    %c15_501 = arith.constant 15 : index
    %c0_502 = arith.constant 0 : index
    %291 = vector.load %arg9[%c15_501, %c0_502] : memref<72x4xf32, #tpu.memory_space<vmem>>, vector<2x4xf32>
    %c2_503 = arith.constant 2 : index
    %c32_504 = arith.constant 32 : index
    %292 = vector.load %arg11[%c2_503, %c32_504] : memref<8x100xf32, #tpu.memory_space<vmem>>, vector<2x4xf32>
    tpu.vector_store %arg11[%c2_503, %c32_504], %291 {strides = array<i32>} : memref<8x100xf32, #tpu.memory_space<vmem>>, vector<2x4xf32>,
    %c16_505 = arith.constant 16 : index
    %c0_506 = arith.constant 0 : index
    %293 = vector.load %arg9[%c16_505, %c0_506] : memref<72x4xf32, #tpu.memory_space<vmem>>, vector<2x4xf32>
    %c2_507 = arith.constant 2 : index
    %c36_508 = arith.constant 36 : index
    %294 = vector.load %arg11[%c2_507, %c36_508] : memref<8x100xf32, #tpu.memory_space<vmem>>, vector<2x4xf32>
    tpu.vector_store %arg11[%c2_507, %c36_508], %293 {strides = array<i32>} : memref<8x100xf32, #tpu.memory_space<vmem>>, vector<2x4xf32>,
    %c18_509 = arith.constant 18 : index
    %c0_510 = arith.constant 0 : index
    %295 = vector.load %arg9[%c18_509, %c0_510] : memref<72x4xf32, #tpu.memory_space<vmem>>, vector<2x4xf32>
    %c2_511 = arith.constant 2 : index
    %c40_512 = arith.constant 40 : index
    %296 = vector.load %arg11[%c2_511, %c40_512] : memref<8x100xf32, #tpu.memory_space<vmem>>, vector<2x4xf32>
    tpu.vector_store %arg11[%c2_511, %c40_512], %295 {strides = array<i32>} : memref<8x100xf32, #tpu.memory_space<vmem>>, vector<2x4xf32>,
    %c19_513 = arith.constant 19 : index
    %c0_514 = arith.constant 0 : index
    %297 = vector.load %arg9[%c19_513, %c0_514] : memref<72x4xf32, #tpu.memory_space<vmem>>, vector<2x4xf32>
    %c2_515 = arith.constant 2 : index
    %c44_516 = arith.constant 44 : index
    %298 = vector.load %arg11[%c2_515, %c44_516] : memref<8x100xf32, #tpu.memory_space<vmem>>, vector<2x4xf32>
    tpu.vector_store %arg11[%c2_515, %c44_516], %297 {strides = array<i32>} : memref<8x100xf32, #tpu.memory_space<vmem>>, vector<2x4xf32>,
    %c20_517 = arith.constant 20 : index
    %c0_518 = arith.constant 0 : index
    %299 = vector.load %arg9[%c20_517, %c0_518] : memref<72x4xf32, #tpu.memory_space<vmem>>, vector<2x4xf32>
    %c2_519 = arith.constant 2 : index
    %c48_520 = arith.constant 48 : index
    %300 = vector.load %arg11[%c2_519, %c48_520] : memref<8x100xf32, #tpu.memory_space<vmem>>, vector<2x4xf32>
    tpu.vector_store %arg11[%c2_519, %c48_520], %299 {strides = array<i32>} : memref<8x100xf32, #tpu.memory_space<vmem>>, vector<2x4xf32>,
    %c21_521 = arith.constant 21 : index
    %c0_522 = arith.constant 0 : index
    %301 = vector.load %arg9[%c21_521, %c0_522] : memref<72x4xf32, #tpu.memory_space<vmem>>, vector<2x4xf32>
    %c2_523 = arith.constant 2 : index
    %c52_524 = arith.constant 52 : index
    %302 = vector.load %arg11[%c2_523, %c52_524] : memref<8x100xf32, #tpu.memory_space<vmem>>, vector<2x4xf32>
    tpu.vector_store %arg11[%c2_523, %c52_524], %301 {strides = array<i32>} : memref<8x100xf32, #tpu.memory_space<vmem>>, vector<2x4xf32>,
    %c22_525 = arith.constant 22 : index
    %c0_526 = arith.constant 0 : index
    %303 = vector.load %arg9[%c22_525, %c0_526] : memref<72x4xf32, #tpu.memory_space<vmem>>, vector<2x4xf32>
    %c2_527 = arith.constant 2 : index
    %c56_528 = arith.constant 56 : index
    %304 = vector.load %arg11[%c2_527, %c56_528] : memref<8x100xf32, #tpu.memory_space<vmem>>, vector<2x4xf32>
    tpu.vector_store %arg11[%c2_527, %c56_528], %303 {strides = array<i32>} : memref<8x100xf32, #tpu.memory_space<vmem>>, vector<2x4xf32>,
    %c24_529 = arith.constant 24 : index
    %c0_530 = arith.constant 0 : index
    %305 = vector.load %arg9[%c24_529, %c0_530] : memref<72x4xf32, #tpu.memory_space<vmem>>, vector<2x4xf32>
    %c2_531 = arith.constant 2 : index
    %c60_532 = arith.constant 60 : index
    %306 = vector.load %arg11[%c2_531, %c60_532] : memref<8x100xf32, #tpu.memory_space<vmem>>, vector<2x4xf32>
    tpu.vector_store %arg11[%c2_531, %c60_532], %305 {strides = array<i32>} : memref<8x100xf32, #tpu.memory_space<vmem>>, vector<2x4xf32>,
    %c25_533 = arith.constant 25 : index
    %c0_534 = arith.constant 0 : index
    %307 = vector.load %arg9[%c25_533, %c0_534] : memref<72x4xf32, #tpu.memory_space<vmem>>, vector<2x4xf32>
    %c2_535 = arith.constant 2 : index
    %c64_536 = arith.constant 64 : index
    %308 = vector.load %arg11[%c2_535, %c64_536] : memref<8x100xf32, #tpu.memory_space<vmem>>, vector<2x4xf32>
    tpu.vector_store %arg11[%c2_535, %c64_536], %307 {strides = array<i32>} : memref<8x100xf32, #tpu.memory_space<vmem>>, vector<2x4xf32>,
    %c26_537 = arith.constant 26 : index
    %c0_538 = arith.constant 0 : index
    %309 = vector.load %arg9[%c26_537, %c0_538] : memref<72x4xf32, #tpu.memory_space<vmem>>, vector<2x4xf32>
    %c2_539 = arith.constant 2 : index
    %c68_540 = arith.constant 68 : index
    %310 = vector.load %arg11[%c2_539, %c68_540] : memref<8x100xf32, #tpu.memory_space<vmem>>, vector<2x4xf32>
    tpu.vector_store %arg11[%c2_539, %c68_540], %309 {strides = array<i32>} : memref<8x100xf32, #tpu.memory_space<vmem>>, vector<2x4xf32>,
    %c27_541 = arith.constant 27 : index
    %c0_542 = arith.constant 0 : index
    %311 = vector.load %arg9[%c27_541, %c0_542] : memref<72x4xf32, #tpu.memory_space<vmem>>, vector<2x4xf32>
    %c2_543 = arith.constant 2 : index
    %c72_544 = arith.constant 72 : index
    %312 = vector.load %arg11[%c2_543, %c72_544] : memref<8x100xf32, #tpu.memory_space<vmem>>, vector<2x4xf32>
    tpu.vector_store %arg11[%c2_543, %c72_544], %311 {strides = array<i32>} : memref<8x100xf32, #tpu.memory_space<vmem>>, vector<2x4xf32>,
    %c28_545 = arith.constant 28 : index
    %c0_546 = arith.constant 0 : index
    %313 = vector.load %arg9[%c28_545, %c0_546] : memref<72x4xf32, #tpu.memory_space<vmem>>, vector<2x4xf32>
    %c2_547 = arith.constant 2 : index
    %c76_548 = arith.constant 76 : index
    %314 = vector.load %arg11[%c2_547, %c76_548] : memref<8x100xf32, #tpu.memory_space<vmem>>, vector<2x4xf32>
    tpu.vector_store %arg11[%c2_547, %c76_548], %313 {strides = array<i32>} : memref<8x100xf32, #tpu.memory_space<vmem>>, vector<2x4xf32>,
    %c30_549 = arith.constant 30 : index
    %c0_550 = arith.constant 0 : index
    %315 = vector.load %arg9[%c30_549, %c0_550] : memref<72x4xf32, #tpu.memory_space<vmem>>, vector<2x4xf32>
    %c2_551 = arith.constant 2 : index
    %c80_552 = arith.constant 80 : index
    %316 = vector.load %arg11[%c2_551, %c80_552] : memref<8x100xf32, #tpu.memory_space<vmem>>, vector<2x4xf32>
    tpu.vector_store %arg11[%c2_551, %c80_552], %315 {strides = array<i32>} : memref<8x100xf32, #tpu.memory_space<vmem>>, vector<2x4xf32>,
    %c31 = arith.constant 31 : index
    %c0_553 = arith.constant 0 : index
    %317 = vector.load %arg9[%c31, %c0_553] : memref<72x4xf32, #tpu.memory_space<vmem>>, vector<2x4xf32>
    %c2_554 = arith.constant 2 : index
    %c84_555 = arith.constant 84 : index
    %318 = vector.load %arg11[%c2_554, %c84_555] : memref<8x100xf32, #tpu.memory_space<vmem>>, vector<2x4xf32>
    tpu.vector_store %arg11[%c2_554, %c84_555], %317 {strides = array<i32>} : memref<8x100xf32, #tpu.memory_space<vmem>>, vector<2x4xf32>,
    %c32_556 = arith.constant 32 : index
    %c0_557 = arith.constant 0 : index
    %319 = vector.load %arg9[%c32_556, %c0_557] : memref<72x4xf32, #tpu.memory_space<vmem>>, vector<2x4xf32>
    %c2_558 = arith.constant 2 : index
    %c88_559 = arith.constant 88 : index
    %320 = vector.load %arg11[%c2_558, %c88_559] : memref<8x100xf32, #tpu.memory_space<vmem>>, vector<2x4xf32>
    tpu.vector_store %arg11[%c2_558, %c88_559], %319 {strides = array<i32>} : memref<8x100xf32, #tpu.memory_space<vmem>>, vector<2x4xf32>,
    %c33_560 = arith.constant 33 : index
    %c0_561 = arith.constant 0 : index
    %321 = vector.load %arg9[%c33_560, %c0_561] : memref<72x4xf32, #tpu.memory_space<vmem>>, vector<2x4xf32>
    %c2_562 = arith.constant 2 : index
    %c92_563 = arith.constant 92 : index
    %322 = vector.load %arg11[%c2_562, %c92_563] : memref<8x100xf32, #tpu.memory_space<vmem>>, vector<2x4xf32>
    tpu.vector_store %arg11[%c2_562, %c92_563], %321 {strides = array<i32>} : memref<8x100xf32, #tpu.memory_space<vmem>>, vector<2x4xf32>,
    %c34_564 = arith.constant 34 : index
    %c0_565 = arith.constant 0 : index
    %323 = vector.load %arg9[%c34_564, %c0_565] : memref<72x4xf32, #tpu.memory_space<vmem>>, vector<2x4xf32>
    %c2_566 = arith.constant 2 : index
    %c96_567 = arith.constant 96 : index
    %324 = vector.load %arg11[%c2_566, %c96_567] : memref<8x100xf32, #tpu.memory_space<vmem>>, vector<2x4xf32>
    tpu.vector_store %arg11[%c2_566, %c96_567], %323 {strides = array<i32>} : memref<8x100xf32, #tpu.memory_space<vmem>>, vector<2x4xf32>,
    %c36_568 = arith.constant 36 : index
    %c0_569 = arith.constant 0 : index
    %325 = vector.load %arg9[%c36_568, %c0_569] : memref<72x4xf32, #tpu.memory_space<vmem>>, vector<2x4xf32>
    %c4_570 = arith.constant 4 : index
    %c0_571 = arith.constant 0 : index
    %326 = vector.load %arg11[%c4_570, %c0_571] : memref<8x100xf32, #tpu.memory_space<vmem>>, vector<2x4xf32>
    tpu.vector_store %arg11[%c4_570, %c0_571], %325 {strides = array<i32>} : memref<8x100xf32, #tpu.memory_space<vmem>>, vector<2x4xf32>,
    %c37 = arith.constant 37 : index
    %c0_572 = arith.constant 0 : index
    %327 = vector.load %arg9[%c37, %c0_572] : memref<72x4xf32, #tpu.memory_space<vmem>>, vector<2x4xf32>
    %c4_573 = arith.constant 4 : index
    %c4_574 = arith.constant 4 : index
    %328 = vector.load %arg11[%c4_573, %c4_574] : memref<8x100xf32, #tpu.memory_space<vmem>>, vector<2x4xf32>
    tpu.vector_store %arg11[%c4_573, %c4_574], %327 {strides = array<i32>} : memref<8x100xf32, #tpu.memory_space<vmem>>, vector<2x4xf32>,
    %c38 = arith.constant 38 : index
    %c0_575 = arith.constant 0 : index
    %329 = vector.load %arg9[%c38, %c0_575] : memref<72x4xf32, #tpu.memory_space<vmem>>, vector<2x4xf32>
    %c4_576 = arith.constant 4 : index
    %c8_577 = arith.constant 8 : index
    %330 = vector.load %arg11[%c4_576, %c8_577] : memref<8x100xf32, #tpu.memory_space<vmem>>, vector<2x4xf32>
    tpu.vector_store %arg11[%c4_576, %c8_577], %329 {strides = array<i32>} : memref<8x100xf32, #tpu.memory_space<vmem>>, vector<2x4xf32>,
    %c39 = arith.constant 39 : index
    %c0_578 = arith.constant 0 : index
    %331 = vector.load %arg9[%c39, %c0_578] : memref<72x4xf32, #tpu.memory_space<vmem>>, vector<2x4xf32>
    %c4_579 = arith.constant 4 : index
    %c12_580 = arith.constant 12 : index
    %332 = vector.load %arg11[%c4_579, %c12_580] : memref<8x100xf32, #tpu.memory_space<vmem>>, vector<2x4xf32>
    tpu.vector_store %arg11[%c4_579, %c12_580], %331 {strides = array<i32>} : memref<8x100xf32, #tpu.memory_space<vmem>>, vector<2x4xf32>,
    %c40_581 = arith.constant 40 : index
    %c0_582 = arith.constant 0 : index
    %333 = vector.load %arg9[%c40_581, %c0_582] : memref<72x4xf32, #tpu.memory_space<vmem>>, vector<2x4xf32>
    %c4_583 = arith.constant 4 : index
    %c16_584 = arith.constant 16 : index
    %334 = vector.load %arg11[%c4_583, %c16_584] : memref<8x100xf32, #tpu.memory_space<vmem>>, vector<2x4xf32>
    tpu.vector_store %arg11[%c4_583, %c16_584], %333 {strides = array<i32>} : memref<8x100xf32, #tpu.memory_space<vmem>>, vector<2x4xf32>,
    %c42_585 = arith.constant 42 : index
    %c0_586 = arith.constant 0 : index
    %335 = vector.load %arg9[%c42_585, %c0_586] : memref<72x4xf32, #tpu.memory_space<vmem>>, vector<2x4xf32>
    %c4_587 = arith.constant 4 : index
    %c20_588 = arith.constant 20 : index
    %336 = vector.load %arg11[%c4_587, %c20_588] : memref<8x100xf32, #tpu.memory_space<vmem>>, vector<2x4xf32>
    tpu.vector_store %arg11[%c4_587, %c20_588], %335 {strides = array<i32>} : memref<8x100xf32, #tpu.memory_space<vmem>>, vector<2x4xf32>,
    %c43 = arith.constant 43 : index
    %c0_589 = arith.constant 0 : index
    %337 = vector.load %arg9[%c43, %c0_589] : memref<72x4xf32, #tpu.memory_space<vmem>>, vector<2x4xf32>
    %c4_590 = arith.constant 4 : index
    %c24_591 = arith.constant 24 : index
    %338 = vector.load %arg11[%c4_590, %c24_591] : memref<8x100xf32, #tpu.memory_space<vmem>>, vector<2x4xf32>
    tpu.vector_store %arg11[%c4_590, %c24_591], %337 {strides = array<i32>} : memref<8x100xf32, #tpu.memory_space<vmem>>, vector<2x4xf32>,
    %c44_592 = arith.constant 44 : index
    %c0_593 = arith.constant 0 : index
    %339 = vector.load %arg9[%c44_592, %c0_593] : memref<72x4xf32, #tpu.memory_space<vmem>>, vector<2x4xf32>
    %c4_594 = arith.constant 4 : index
    %c28_595 = arith.constant 28 : index
    %340 = vector.load %arg11[%c4_594, %c28_595] : memref<8x100xf32, #tpu.memory_space<vmem>>, vector<2x4xf32>
    tpu.vector_store %arg11[%c4_594, %c28_595], %339 {strides = array<i32>} : memref<8x100xf32, #tpu.memory_space<vmem>>, vector<2x4xf32>,
    %c45 = arith.constant 45 : index
    %c0_596 = arith.constant 0 : index
    %341 = vector.load %arg9[%c45, %c0_596] : memref<72x4xf32, #tpu.memory_space<vmem>>, vector<2x4xf32>
    %c4_597 = arith.constant 4 : index
    %c32_598 = arith.constant 32 : index
    %342 = vector.load %arg11[%c4_597, %c32_598] : memref<8x100xf32, #tpu.memory_space<vmem>>, vector<2x4xf32>
    tpu.vector_store %arg11[%c4_597, %c32_598], %341 {strides = array<i32>} : memref<8x100xf32, #tpu.memory_space<vmem>>, vector<2x4xf32>,
    %c46 = arith.constant 46 : index
    %c0_599 = arith.constant 0 : index
    %343 = vector.load %arg9[%c46, %c0_599] : memref<72x4xf32, #tpu.memory_space<vmem>>, vector<2x4xf32>
    %c4_600 = arith.constant 4 : index
    %c36_601 = arith.constant 36 : index
    %344 = vector.load %arg11[%c4_600, %c36_601] : memref<8x100xf32, #tpu.memory_space<vmem>>, vector<2x4xf32>
    tpu.vector_store %arg11[%c4_600, %c36_601], %343 {strides = array<i32>} : memref<8x100xf32, #tpu.memory_space<vmem>>, vector<2x4xf32>,
    %c48_602 = arith.constant 48 : index
    %c0_603 = arith.constant 0 : index
    %345 = vector.load %arg9[%c48_602, %c0_603] : memref<72x4xf32, #tpu.memory_space<vmem>>, vector<2x4xf32>
    %c4_604 = arith.constant 4 : index
    %c40_605 = arith.constant 40 : index
    %346 = vector.load %arg11[%c4_604, %c40_605] : memref<8x100xf32, #tpu.memory_space<vmem>>, vector<2x4xf32>
    tpu.vector_store %arg11[%c4_604, %c40_605], %345 {strides = array<i32>} : memref<8x100xf32, #tpu.memory_space<vmem>>, vector<2x4xf32>,
    %c49_606 = arith.constant 49 : index
    %c0_607 = arith.constant 0 : index
    %347 = vector.load %arg9[%c49_606, %c0_607] : memref<72x4xf32, #tpu.memory_space<vmem>>, vector<2x4xf32>
    %c4_608 = arith.constant 4 : index
    %c44_609 = arith.constant 44 : index
    %348 = vector.load %arg11[%c4_608, %c44_609] : memref<8x100xf32, #tpu.memory_space<vmem>>, vector<2x4xf32>
    tpu.vector_store %arg11[%c4_608, %c44_609], %347 {strides = array<i32>} : memref<8x100xf32, #tpu.memory_space<vmem>>, vector<2x4xf32>,
    %c50_610 = arith.constant 50 : index
    %c0_611 = arith.constant 0 : index
    %349 = vector.load %arg9[%c50_610, %c0_611] : memref<72x4xf32, #tpu.memory_space<vmem>>, vector<2x4xf32>
    %c4_612 = arith.constant 4 : index
    %c48_613 = arith.constant 48 : index
    %350 = vector.load %arg11[%c4_612, %c48_613] : memref<8x100xf32, #tpu.memory_space<vmem>>, vector<2x4xf32>
    tpu.vector_store %arg11[%c4_612, %c48_613], %349 {strides = array<i32>} : memref<8x100xf32, #tpu.memory_space<vmem>>, vector<2x4xf32>,
    %c51 = arith.constant 51 : index
    %c0_614 = arith.constant 0 : index
    %351 = vector.load %arg9[%c51, %c0_614] : memref<72x4xf32, #tpu.memory_space<vmem>>, vector<2x4xf32>
    %c4_615 = arith.constant 4 : index
    %c52_616 = arith.constant 52 : index
    %352 = vector.load %arg11[%c4_615, %c52_616] : memref<8x100xf32, #tpu.memory_space<vmem>>, vector<2x4xf32>
    tpu.vector_store %arg11[%c4_615, %c52_616], %351 {strides = array<i32>} : memref<8x100xf32, #tpu.memory_space<vmem>>, vector<2x4xf32>,
    %c52_617 = arith.constant 52 : index
    %c0_618 = arith.constant 0 : index
    %353 = vector.load %arg9[%c52_617, %c0_618] : memref<72x4xf32, #tpu.memory_space<vmem>>, vector<2x4xf32>
    %c4_619 = arith.constant 4 : index
    %c56_620 = arith.constant 56 : index
    %354 = vector.load %arg11[%c4_619, %c56_620] : memref<8x100xf32, #tpu.memory_space<vmem>>, vector<2x4xf32>
    tpu.vector_store %arg11[%c4_619, %c56_620], %353 {strides = array<i32>} : memref<8x100xf32, #tpu.memory_space<vmem>>, vector<2x4xf32>,
    %c54_621 = arith.constant 54 : index
    %c0_622 = arith.constant 0 : index
    %355 = vector.load %arg9[%c54_621, %c0_622] : memref<72x4xf32, #tpu.memory_space<vmem>>, vector<2x4xf32>
    %c4_623 = arith.constant 4 : index
    %c60_624 = arith.constant 60 : index
    %356 = vector.load %arg11[%c4_623, %c60_624] : memref<8x100xf32, #tpu.memory_space<vmem>>, vector<2x4xf32>
    tpu.vector_store %arg11[%c4_623, %c60_624], %355 {strides = array<i32>} : memref<8x100xf32, #tpu.memory_space<vmem>>, vector<2x4xf32>,
    %c55 = arith.constant 55 : index
    %c0_625 = arith.constant 0 : index
    %357 = vector.load %arg9[%c55, %c0_625] : memref<72x4xf32, #tpu.memory_space<vmem>>, vector<2x4xf32>
    %c4_626 = arith.constant 4 : index
    %c64_627 = arith.constant 64 : index
    %358 = vector.load %arg11[%c4_626, %c64_627] : memref<8x100xf32, #tpu.memory_space<vmem>>, vector<2x4xf32>
    tpu.vector_store %arg11[%c4_626, %c64_627], %357 {strides = array<i32>} : memref<8x100xf32, #tpu.memory_space<vmem>>, vector<2x4xf32>,
    %c56_628 = arith.constant 56 : index
    %c0_629 = arith.constant 0 : index
    %359 = vector.load %arg9[%c56_628, %c0_629] : memref<72x4xf32, #tpu.memory_space<vmem>>, vector<2x4xf32>
    %c4_630 = arith.constant 4 : index
    %c68_631 = arith.constant 68 : index
    %360 = vector.load %arg11[%c4_630, %c68_631] : memref<8x100xf32, #tpu.memory_space<vmem>>, vector<2x4xf32>
    tpu.vector_store %arg11[%c4_630, %c68_631], %359 {strides = array<i32>} : memref<8x100xf32, #tpu.memory_space<vmem>>, vector<2x4xf32>,
    %c57_632 = arith.constant 57 : index
    %c0_633 = arith.constant 0 : index
    %361 = vector.load %arg9[%c57_632, %c0_633] : memref<72x4xf32, #tpu.memory_space<vmem>>, vector<2x4xf32>
    %c4_634 = arith.constant 4 : index
    %c72_635 = arith.constant 72 : index
    %362 = vector.load %arg11[%c4_634, %c72_635] : memref<8x100xf32, #tpu.memory_space<vmem>>, vector<2x4xf32>
    tpu.vector_store %arg11[%c4_634, %c72_635], %361 {strides = array<i32>} : memref<8x100xf32, #tpu.memory_space<vmem>>, vector<2x4xf32>,
    %c58_636 = arith.constant 58 : index
    %c0_637 = arith.constant 0 : index
    %363 = vector.load %arg9[%c58_636, %c0_637] : memref<72x4xf32, #tpu.memory_space<vmem>>, vector<2x4xf32>
    %c4_638 = arith.constant 4 : index
    %c76_639 = arith.constant 76 : index
    %364 = vector.load %arg11[%c4_638, %c76_639] : memref<8x100xf32, #tpu.memory_space<vmem>>, vector<2x4xf32>
    tpu.vector_store %arg11[%c4_638, %c76_639], %363 {strides = array<i32>} : memref<8x100xf32, #tpu.memory_space<vmem>>, vector<2x4xf32>,
    %c60_640 = arith.constant 60 : index
    %c0_641 = arith.constant 0 : index
    %365 = vector.load %arg9[%c60_640, %c0_641] : memref<72x4xf32, #tpu.memory_space<vmem>>, vector<2x4xf32>
    %c4_642 = arith.constant 4 : index
    %c80_643 = arith.constant 80 : index
    %366 = vector.load %arg11[%c4_642, %c80_643] : memref<8x100xf32, #tpu.memory_space<vmem>>, vector<2x4xf32>
    tpu.vector_store %arg11[%c4_642, %c80_643], %365 {strides = array<i32>} : memref<8x100xf32, #tpu.memory_space<vmem>>, vector<2x4xf32>,
    %c61 = arith.constant 61 : index
    %c0_644 = arith.constant 0 : index
    %367 = vector.load %arg9[%c61, %c0_644] : memref<72x4xf32, #tpu.memory_space<vmem>>, vector<2x4xf32>
    %c4_645 = arith.constant 4 : index
    %c84_646 = arith.constant 84 : index
    %368 = vector.load %arg11[%c4_645, %c84_646] : memref<8x100xf32, #tpu.memory_space<vmem>>, vector<2x4xf32>
    tpu.vector_store %arg11[%c4_645, %c84_646], %367 {strides = array<i32>} : memref<8x100xf32, #tpu.memory_space<vmem>>, vector<2x4xf32>,
    %c62 = arith.constant 62 : index
    %c0_647 = arith.constant 0 : index
    %369 = vector.load %arg9[%c62, %c0_647] : memref<72x4xf32, #tpu.memory_space<vmem>>, vector<2x4xf32>
    %c4_648 = arith.constant 4 : index
    %c88_649 = arith.constant 88 : index
    %370 = vector.load %arg11[%c4_648, %c88_649] : memref<8x100xf32, #tpu.memory_space<vmem>>, vector<2x4xf32>
    tpu.vector_store %arg11[%c4_648, %c88_649], %369 {strides = array<i32>} : memref<8x100xf32, #tpu.memory_space<vmem>>, vector<2x4xf32>,
    %c63 = arith.constant 63 : index
    %c0_650 = arith.constant 0 : index
    %371 = vector.load %arg9[%c63, %c0_650] : memref<72x4xf32, #tpu.memory_space<vmem>>, vector<2x4xf32>
    %c4_651 = arith.constant 4 : index
    %c92_652 = arith.constant 92 : index
    %372 = vector.load %arg11[%c4_651, %c92_652] : memref<8x100xf32, #tpu.memory_space<vmem>>, vector<2x4xf32>
    tpu.vector_store %arg11[%c4_651, %c92_652], %371 {strides = array<i32>} : memref<8x100xf32, #tpu.memory_space<vmem>>, vector<2x4xf32>,
    %c64_653 = arith.constant 64 : index
    %c0_654 = arith.constant 0 : index
    %373 = vector.load %arg9[%c64_653, %c0_654] : memref<72x4xf32, #tpu.memory_space<vmem>>, vector<2x4xf32>
    %c4_655 = arith.constant 4 : index
    %c96_656 = arith.constant 96 : index
    %374 = vector.load %arg11[%c4_655, %c96_656] : memref<8x100xf32, #tpu.memory_space<vmem>>, vector<2x4xf32>
    tpu.vector_store %arg11[%c4_655, %c96_656], %373 {strides = array<i32>} : memref<8x100xf32, #tpu.memory_space<vmem>>, vector<2x4xf32>,
    %c42_657 = arith.constant 42 : index
    %c0_658 = arith.constant 0 : index
    %375 = vector.load %arg9[%c42_657, %c0_658] : memref<72x4xf32, #tpu.memory_space<vmem>>, vector<2x4xf32>
    %c6_659 = arith.constant 6 : index
    %c0_660 = arith.constant 0 : index
    %376 = vector.load %arg11[%c6_659, %c0_660] : memref<8x100xf32, #tpu.memory_space<vmem>>, vector<2x4xf32>
    tpu.vector_store %arg11[%c6_659, %c0_660], %375 {strides = array<i32>} : memref<8x100xf32, #tpu.memory_space<vmem>>, vector<2x4xf32>,
    %c43_661 = arith.constant 43 : index
    %c0_662 = arith.constant 0 : index
    %377 = vector.load %arg9[%c43_661, %c0_662] : memref<72x4xf32, #tpu.memory_space<vmem>>, vector<2x4xf32>
    %c6_663 = arith.constant 6 : index
    %c4_664 = arith.constant 4 : index
    %378 = vector.load %arg11[%c6_663, %c4_664] : memref<8x100xf32, #tpu.memory_space<vmem>>, vector<2x4xf32>
    tpu.vector_store %arg11[%c6_663, %c4_664], %377 {strides = array<i32>} : memref<8x100xf32, #tpu.memory_space<vmem>>, vector<2x4xf32>,
    %c44_665 = arith.constant 44 : index
    %c0_666 = arith.constant 0 : index
    %379 = vector.load %arg9[%c44_665, %c0_666] : memref<72x4xf32, #tpu.memory_space<vmem>>, vector<2x4xf32>
    %c6_667 = arith.constant 6 : index
    %c8_668 = arith.constant 8 : index
    %380 = vector.load %arg11[%c6_667, %c8_668] : memref<8x100xf32, #tpu.memory_space<vmem>>, vector<2x4xf32>
    tpu.vector_store %arg11[%c6_667, %c8_668], %379 {strides = array<i32>} : memref<8x100xf32, #tpu.memory_space<vmem>>, vector<2x4xf32>,
    %c45_669 = arith.constant 45 : index
    %c0_670 = arith.constant 0 : index
    %381 = vector.load %arg9[%c45_669, %c0_670] : memref<72x4xf32, #tpu.memory_space<vmem>>, vector<2x4xf32>
    %c6_671 = arith.constant 6 : index
    %c12_672 = arith.constant 12 : index
    %382 = vector.load %arg11[%c6_671, %c12_672] : memref<8x100xf32, #tpu.memory_space<vmem>>, vector<2x4xf32>
    tpu.vector_store %arg11[%c6_671, %c12_672], %381 {strides = array<i32>} : memref<8x100xf32, #tpu.memory_space<vmem>>, vector<2x4xf32>,
    %c46_673 = arith.constant 46 : index
    %c0_674 = arith.constant 0 : index
    %383 = vector.load %arg9[%c46_673, %c0_674] : memref<72x4xf32, #tpu.memory_space<vmem>>, vector<2x4xf32>
    %c6_675 = arith.constant 6 : index
    %c16_676 = arith.constant 16 : index
    %384 = vector.load %arg11[%c6_675, %c16_676] : memref<8x100xf32, #tpu.memory_space<vmem>>, vector<2x4xf32>
    tpu.vector_store %arg11[%c6_675, %c16_676], %383 {strides = array<i32>} : memref<8x100xf32, #tpu.memory_space<vmem>>, vector<2x4xf32>,
    %c48_677 = arith.constant 48 : index
    %c0_678 = arith.constant 0 : index
    %385 = vector.load %arg9[%c48_677, %c0_678] : memref<72x4xf32, #tpu.memory_space<vmem>>, vector<2x4xf32>
    %c6_679 = arith.constant 6 : index
    %c20_680 = arith.constant 20 : index
    %386 = vector.load %arg11[%c6_679, %c20_680] : memref<8x100xf32, #tpu.memory_space<vmem>>, vector<2x4xf32>
    tpu.vector_store %arg11[%c6_679, %c20_680], %385 {strides = array<i32>} : memref<8x100xf32, #tpu.memory_space<vmem>>, vector<2x4xf32>,
    %c49_681 = arith.constant 49 : index
    %c0_682 = arith.constant 0 : index
    %387 = vector.load %arg9[%c49_681, %c0_682] : memref<72x4xf32, #tpu.memory_space<vmem>>, vector<2x4xf32>
    %c6_683 = arith.constant 6 : index
    %c24_684 = arith.constant 24 : index
    %388 = vector.load %arg11[%c6_683, %c24_684] : memref<8x100xf32, #tpu.memory_space<vmem>>, vector<2x4xf32>
    tpu.vector_store %arg11[%c6_683, %c24_684], %387 {strides = array<i32>} : memref<8x100xf32, #tpu.memory_space<vmem>>, vector<2x4xf32>,
    %c50_685 = arith.constant 50 : index
    %c0_686 = arith.constant 0 : index
    %389 = vector.load %arg9[%c50_685, %c0_686] : memref<72x4xf32, #tpu.memory_space<vmem>>, vector<2x4xf32>
    %c6_687 = arith.constant 6 : index
    %c28_688 = arith.constant 28 : index
    %390 = vector.load %arg11[%c6_687, %c28_688] : memref<8x100xf32, #tpu.memory_space<vmem>>, vector<2x4xf32>
    tpu.vector_store %arg11[%c6_687, %c28_688], %389 {strides = array<i32>} : memref<8x100xf32, #tpu.memory_space<vmem>>, vector<2x4xf32>,
    %c51_689 = arith.constant 51 : index
    %c0_690 = arith.constant 0 : index
    %391 = vector.load %arg9[%c51_689, %c0_690] : memref<72x4xf32, #tpu.memory_space<vmem>>, vector<2x4xf32>
    %c6_691 = arith.constant 6 : index
    %c32_692 = arith.constant 32 : index
    %392 = vector.load %arg11[%c6_691, %c32_692] : memref<8x100xf32, #tpu.memory_space<vmem>>, vector<2x4xf32>
    tpu.vector_store %arg11[%c6_691, %c32_692], %391 {strides = array<i32>} : memref<8x100xf32, #tpu.memory_space<vmem>>, vector<2x4xf32>,
    %c52_693 = arith.constant 52 : index
    %c0_694 = arith.constant 0 : index
    %393 = vector.load %arg9[%c52_693, %c0_694] : memref<72x4xf32, #tpu.memory_space<vmem>>, vector<2x4xf32>
    %c6_695 = arith.constant 6 : index
    %c36_696 = arith.constant 36 : index
    %394 = vector.load %arg11[%c6_695, %c36_696] : memref<8x100xf32, #tpu.memory_space<vmem>>, vector<2x4xf32>
    tpu.vector_store %arg11[%c6_695, %c36_696], %393 {strides = array<i32>} : memref<8x100xf32, #tpu.memory_space<vmem>>, vector<2x4xf32>,
    %c54_697 = arith.constant 54 : index
    %c0_698 = arith.constant 0 : index
    %395 = vector.load %arg9[%c54_697, %c0_698] : memref<72x4xf32, #tpu.memory_space<vmem>>, vector<2x4xf32>
    %c6_699 = arith.constant 6 : index
    %c40_700 = arith.constant 40 : index
    %396 = vector.load %arg11[%c6_699, %c40_700] : memref<8x100xf32, #tpu.memory_space<vmem>>, vector<2x4xf32>
    tpu.vector_store %arg11[%c6_699, %c40_700], %395 {strides = array<i32>} : memref<8x100xf32, #tpu.memory_space<vmem>>, vector<2x4xf32>,
    %c55_701 = arith.constant 55 : index
    %c0_702 = arith.constant 0 : index
    %397 = vector.load %arg9[%c55_701, %c0_702] : memref<72x4xf32, #tpu.memory_space<vmem>>, vector<2x4xf32>
    %c6_703 = arith.constant 6 : index
    %c44_704 = arith.constant 44 : index
    %398 = vector.load %arg11[%c6_703, %c44_704] : memref<8x100xf32, #tpu.memory_space<vmem>>, vector<2x4xf32>
    tpu.vector_store %arg11[%c6_703, %c44_704], %397 {strides = array<i32>} : memref<8x100xf32, #tpu.memory_space<vmem>>, vector<2x4xf32>,
    %c56_705 = arith.constant 56 : index
    %c0_706 = arith.constant 0 : index
    %399 = vector.load %arg9[%c56_705, %c0_706] : memref<72x4xf32, #tpu.memory_space<vmem>>, vector<2x4xf32>
    %c6_707 = arith.constant 6 : index
    %c48_708 = arith.constant 48 : index
    %400 = vector.load %arg11[%c6_707, %c48_708] : memref<8x100xf32, #tpu.memory_space<vmem>>, vector<2x4xf32>
    tpu.vector_store %arg11[%c6_707, %c48_708], %399 {strides = array<i32>} : memref<8x100xf32, #tpu.memory_space<vmem>>, vector<2x4xf32>,
    %c57_709 = arith.constant 57 : index
    %c0_710 = arith.constant 0 : index
    %401 = vector.load %arg9[%c57_709, %c0_710] : memref<72x4xf32, #tpu.memory_space<vmem>>, vector<2x4xf32>
    %c6_711 = arith.constant 6 : index
    %c52_712 = arith.constant 52 : index
    %402 = vector.load %arg11[%c6_711, %c52_712] : memref<8x100xf32, #tpu.memory_space<vmem>>, vector<2x4xf32>
    tpu.vector_store %arg11[%c6_711, %c52_712], %401 {strides = array<i32>} : memref<8x100xf32, #tpu.memory_space<vmem>>, vector<2x4xf32>,
    %c58_713 = arith.constant 58 : index
    %c0_714 = arith.constant 0 : index
    %403 = vector.load %arg9[%c58_713, %c0_714] : memref<72x4xf32, #tpu.memory_space<vmem>>, vector<2x4xf32>
    %c6_715 = arith.constant 6 : index
    %c56_716 = arith.constant 56 : index
    %404 = vector.load %arg11[%c6_715, %c56_716] : memref<8x100xf32, #tpu.memory_space<vmem>>, vector<2x4xf32>
    tpu.vector_store %arg11[%c6_715, %c56_716], %403 {strides = array<i32>} : memref<8x100xf32, #tpu.memory_space<vmem>>, vector<2x4xf32>,
    %c60_717 = arith.constant 60 : index
    %c0_718 = arith.constant 0 : index
    %405 = vector.load %arg9[%c60_717, %c0_718] : memref<72x4xf32, #tpu.memory_space<vmem>>, vector<2x4xf32>
    %c6_719 = arith.constant 6 : index
    %c60_720 = arith.constant 60 : index
    %406 = vector.load %arg11[%c6_719, %c60_720] : memref<8x100xf32, #tpu.memory_space<vmem>>, vector<2x4xf32>
    tpu.vector_store %arg11[%c6_719, %c60_720], %405 {strides = array<i32>} : memref<8x100xf32, #tpu.memory_space<vmem>>, vector<2x4xf32>,
    %c61_721 = arith.constant 61 : index
    %c0_722 = arith.constant 0 : index
    %407 = vector.load %arg9[%c61_721, %c0_722] : memref<72x4xf32, #tpu.memory_space<vmem>>, vector<2x4xf32>
    %c6_723 = arith.constant 6 : index
    %c64_724 = arith.constant 64 : index
    %408 = vector.load %arg11[%c6_723, %c64_724] : memref<8x100xf32, #tpu.memory_space<vmem>>, vector<2x4xf32>
    tpu.vector_store %arg11[%c6_723, %c64_724], %407 {strides = array<i32>} : memref<8x100xf32, #tpu.memory_space<vmem>>, vector<2x4xf32>,
    %c62_725 = arith.constant 62 : index
    %c0_726 = arith.constant 0 : index
    %409 = vector.load %arg9[%c62_725, %c0_726] : memref<72x4xf32, #tpu.memory_space<vmem>>, vector<2x4xf32>
    %c6_727 = arith.constant 6 : index
    %c68_728 = arith.constant 68 : index
    %410 = vector.load %arg11[%c6_727, %c68_728] : memref<8x100xf32, #tpu.memory_space<vmem>>, vector<2x4xf32>
    tpu.vector_store %arg11[%c6_727, %c68_728], %409 {strides = array<i32>} : memref<8x100xf32, #tpu.memory_space<vmem>>, vector<2x4xf32>,
    %c63_729 = arith.constant 63 : index
    %c0_730 = arith.constant 0 : index
    %411 = vector.load %arg9[%c63_729, %c0_730] : memref<72x4xf32, #tpu.memory_space<vmem>>, vector<2x4xf32>
    %c6_731 = arith.constant 6 : index
    %c72_732 = arith.constant 72 : index
    %412 = vector.load %arg11[%c6_731, %c72_732] : memref<8x100xf32, #tpu.memory_space<vmem>>, vector<2x4xf32>
    tpu.vector_store %arg11[%c6_731, %c72_732], %411 {strides = array<i32>} : memref<8x100xf32, #tpu.memory_space<vmem>>, vector<2x4xf32>,
    %c64_733 = arith.constant 64 : index
    %c0_734 = arith.constant 0 : index
    %413 = vector.load %arg9[%c64_733, %c0_734] : memref<72x4xf32, #tpu.memory_space<vmem>>, vector<2x4xf32>
    %c6_735 = arith.constant 6 : index
    %c76_736 = arith.constant 76 : index
    %414 = vector.load %arg11[%c6_735, %c76_736] : memref<8x100xf32, #tpu.memory_space<vmem>>, vector<2x4xf32>
    tpu.vector_store %arg11[%c6_735, %c76_736], %413 {strides = array<i32>} : memref<8x100xf32, #tpu.memory_space<vmem>>, vector<2x4xf32>,
    %c66_737 = arith.constant 66 : index
    %c0_738 = arith.constant 0 : index
    %415 = vector.load %arg9[%c66_737, %c0_738] : memref<72x4xf32, #tpu.memory_space<vmem>>, vector<2x4xf32>
    %c6_739 = arith.constant 6 : index
    %c80_740 = arith.constant 80 : index
    %416 = vector.load %arg11[%c6_739, %c80_740] : memref<8x100xf32, #tpu.memory_space<vmem>>, vector<2x4xf32>
    tpu.vector_store %arg11[%c6_739, %c80_740], %415 {strides = array<i32>} : memref<8x100xf32, #tpu.memory_space<vmem>>, vector<2x4xf32>,
    %c67 = arith.constant 67 : index
    %c0_741 = arith.constant 0 : index
    %417 = vector.load %arg9[%c67, %c0_741] : memref<72x4xf32, #tpu.memory_space<vmem>>, vector<2x4xf32>
    %c6_742 = arith.constant 6 : index
    %c84_743 = arith.constant 84 : index
    %418 = vector.load %arg11[%c6_742, %c84_743] : memref<8x100xf32, #tpu.memory_space<vmem>>, vector<2x4xf32>
    tpu.vector_store %arg11[%c6_742, %c84_743], %417 {strides = array<i32>} : memref<8x100xf32, #tpu.memory_space<vmem>>, vector<2x4xf32>,
    %c68_744 = arith.constant 68 : index
    %c0_745 = arith.constant 0 : index
    %419 = vector.load %arg9[%c68_744, %c0_745] : memref<72x4xf32, #tpu.memory_space<vmem>>, vector<2x4xf32>
    %c6_746 = arith.constant 6 : index
    %c88_747 = arith.constant 88 : index
    %420 = vector.load %arg11[%c6_746, %c88_747] : memref<8x100xf32, #tpu.memory_space<vmem>>, vector<2x4xf32>
    tpu.vector_store %arg11[%c6_746, %c88_747], %419 {strides = array<i32>} : memref<8x100xf32, #tpu.memory_space<vmem>>, vector<2x4xf32>,
    %c69 = arith.constant 69 : index
    %c0_748 = arith.constant 0 : index
    %421 = vector.load %arg9[%c69, %c0_748] : memref<72x4xf32, #tpu.memory_space<vmem>>, vector<2x4xf32>
    %c6_749 = arith.constant 6 : index
    %c92_750 = arith.constant 92 : index
    %422 = vector.load %arg11[%c6_749, %c92_750] : memref<8x100xf32, #tpu.memory_space<vmem>>, vector<2x4xf32>
    tpu.vector_store %arg11[%c6_749, %c92_750], %421 {strides = array<i32>} : memref<8x100xf32, #tpu.memory_space<vmem>>, vector<2x4xf32>,
    %c70 = arith.constant 70 : index
    %c0_751 = arith.constant 0 : index
    %423 = vector.load %arg9[%c70, %c0_751] : memref<72x4xf32, #tpu.memory_space<vmem>>, vector<2x4xf32>
    %c6_752 = arith.constant 6 : index
    %c96_753 = arith.constant 96 : index
    %424 = vector.load %arg11[%c6_752, %c96_753] : memref<8x100xf32, #tpu.memory_space<vmem>>, vector<2x4xf32>
    tpu.vector_store %arg11[%c6_752, %c96_753], %423 {strides = array<i32>} : memref<8x100xf32, #tpu.memory_space<vmem>>, vector<2x4xf32>,
    %c0_754 = arith.constant 0 : index
    %c0_755 = arith.constant 0 : index
    %425 = vector.load %arg11[%c0_754, %c0_755] : memref<8x100xf32, #tpu.memory_space<vmem>>, vector<8x100xf32>
    %c0_756 = arith.constant 0 : index
    %c0_757 = arith.constant 0 : index
    %426 = vector.load %arg3[%c0_756, %c0_757] : memref<100x4xf32, #tpu.memory_space<vmem>>, vector<100x4xf32>
    %cst_758 = arith.constant dense<0.000000e+00> : vector<8x4xf32>
    %427 = tpu.matmul %425, %426, %cst_758 {dimension_numbers = #tpu.dot_dimension_numbers<[1], [0], [0], [1], [0, 0, 1, 1], [], []>} : vector<8x100xf32>, vector<100x4xf32>, vector<8x4xf32> -> vector<8x4xf32>
    %c0_759 = arith.constant 0 : index
    %c0_760 = arith.constant 0 : index
    %428 = vector.load %arg4[%c0_759, %c0_760] : memref<1x4xf32, #tpu.memory_space<vmem>>, vector<1x4xf32>
    %429 = vector.broadcast %428 : vector<1x4xf32> to vector<8x4xf32>
    %430 = arith.addf %427, %429 : vector<8x4xf32>
    %c0_761 = arith.constant 0 : index
    %c0_762 = arith.constant 0 : index
    %431 = vector.load %arg7[%c0_761, %c0_762] : memref<8x4xf32, #tpu.memory_space<vmem>>, vector<8x4xf32>
    tpu.vector_store %arg7[%c0_761, %c0_762], %430 {strides = array<i32>} : memref<8x4xf32, #tpu.memory_space<vmem>>, vector<8x4xf32>,
    %c0_763 = arith.constant 0 : index
    %c0_764 = arith.constant 0 : index
    %432 = vector.load %arg9[%c0_763, %c0_764] : memref<72x4xf32, #tpu.memory_space<vmem>>, vector<4x4xf32>
    %c0_765 = arith.constant 0 : index
    %c0_766 = arith.constant 0 : index
    %433 = vector.load %arg12[%c0_765, %c0_766] : memref<32x36xf32, #tpu.memory_space<vmem>>, vector<4x4xf32>
    tpu.vector_store %arg12[%c0_765, %c0_766], %432 {strides = array<i32>} : memref<32x36xf32, #tpu.memory_space<vmem>>, vector<4x4xf32>,
    %c1_767 = arith.constant 1 : index
    %c0_768 = arith.constant 0 : index
    %434 = vector.load %arg9[%c1_767, %c0_768] : memref<72x4xf32, #tpu.memory_space<vmem>>, vector<4x4xf32>
    %c0_769 = arith.constant 0 : index
    %c4_770 = arith.constant 4 : index
    %435 = vector.load %arg12[%c0_769, %c4_770] : memref<32x36xf32, #tpu.memory_space<vmem>>, vector<4x4xf32>
    tpu.vector_store %arg12[%c0_769, %c4_770], %434 {strides = array<i32>} : memref<32x36xf32, #tpu.memory_space<vmem>>, vector<4x4xf32>,
    %c2_771 = arith.constant 2 : index
    %c0_772 = arith.constant 0 : index
    %436 = vector.load %arg9[%c2_771, %c0_772] : memref<72x4xf32, #tpu.memory_space<vmem>>, vector<4x4xf32>
    %c0_773 = arith.constant 0 : index
    %c8_774 = arith.constant 8 : index
    %437 = vector.load %arg12[%c0_773, %c8_774] : memref<32x36xf32, #tpu.memory_space<vmem>>, vector<4x4xf32>
    tpu.vector_store %arg12[%c0_773, %c8_774], %436 {strides = array<i32>} : memref<32x36xf32, #tpu.memory_space<vmem>>, vector<4x4xf32>,
    %c6_775 = arith.constant 6 : index
    %c0_776 = arith.constant 0 : index
    %438 = vector.load %arg9[%c6_775, %c0_776] : memref<72x4xf32, #tpu.memory_space<vmem>>, vector<4x4xf32>
    %c0_777 = arith.constant 0 : index
    %c12_778 = arith.constant 12 : index
    %439 = vector.load %arg12[%c0_777, %c12_778] : memref<32x36xf32, #tpu.memory_space<vmem>>, vector<4x4xf32>
    tpu.vector_store %arg12[%c0_777, %c12_778], %438 {strides = array<i32>} : memref<32x36xf32, #tpu.memory_space<vmem>>, vector<4x4xf32>,
    %c7_779 = arith.constant 7 : index
    %c0_780 = arith.constant 0 : index
    %440 = vector.load %arg9[%c7_779, %c0_780] : memref<72x4xf32, #tpu.memory_space<vmem>>, vector<4x4xf32>
    %c0_781 = arith.constant 0 : index
    %c16_782 = arith.constant 16 : index
    %441 = vector.load %arg12[%c0_781, %c16_782] : memref<32x36xf32, #tpu.memory_space<vmem>>, vector<4x4xf32>
    tpu.vector_store %arg12[%c0_781, %c16_782], %440 {strides = array<i32>} : memref<32x36xf32, #tpu.memory_space<vmem>>, vector<4x4xf32>,
    %c8_783 = arith.constant 8 : index
    %c0_784 = arith.constant 0 : index
    %442 = vector.load %arg9[%c8_783, %c0_784] : memref<72x4xf32, #tpu.memory_space<vmem>>, vector<4x4xf32>
    %c0_785 = arith.constant 0 : index
    %c20_786 = arith.constant 20 : index
    %443 = vector.load %arg12[%c0_785, %c20_786] : memref<32x36xf32, #tpu.memory_space<vmem>>, vector<4x4xf32>
    tpu.vector_store %arg12[%c0_785, %c20_786], %442 {strides = array<i32>} : memref<32x36xf32, #tpu.memory_space<vmem>>, vector<4x4xf32>,
    %c12_787 = arith.constant 12 : index
    %c0_788 = arith.constant 0 : index
    %444 = vector.load %arg9[%c12_787, %c0_788] : memref<72x4xf32, #tpu.memory_space<vmem>>, vector<4x4xf32>
    %c0_789 = arith.constant 0 : index
    %c24_790 = arith.constant 24 : index
    %445 = vector.load %arg12[%c0_789, %c24_790] : memref<32x36xf32, #tpu.memory_space<vmem>>, vector<4x4xf32>
    tpu.vector_store %arg12[%c0_789, %c24_790], %444 {strides = array<i32>} : memref<32x36xf32, #tpu.memory_space<vmem>>, vector<4x4xf32>,
    %c13_791 = arith.constant 13 : index
    %c0_792 = arith.constant 0 : index
    %446 = vector.load %arg9[%c13_791, %c0_792] : memref<72x4xf32, #tpu.memory_space<vmem>>, vector<4x4xf32>
    %c0_793 = arith.constant 0 : index
    %c28_794 = arith.constant 28 : index
    %447 = vector.load %arg12[%c0_793, %c28_794] : memref<32x36xf32, #tpu.memory_space<vmem>>, vector<4x4xf32>
    tpu.vector_store %arg12[%c0_793, %c28_794], %446 {strides = array<i32>} : memref<32x36xf32, #tpu.memory_space<vmem>>, vector<4x4xf32>,
    %c14_795 = arith.constant 14 : index
    %c0_796 = arith.constant 0 : index
    %448 = vector.load %arg9[%c14_795, %c0_796] : memref<72x4xf32, #tpu.memory_space<vmem>>, vector<4x4xf32>
    %c0_797 = arith.constant 0 : index
    %c32_798 = arith.constant 32 : index
    %449 = vector.load %arg12[%c0_797, %c32_798] : memref<32x36xf32, #tpu.memory_space<vmem>>, vector<4x4xf32>
    tpu.vector_store %arg12[%c0_797, %c32_798], %448 {strides = array<i32>} : memref<32x36xf32, #tpu.memory_space<vmem>>, vector<4x4xf32>,
    %c6_799 = arith.constant 6 : index
    %c0_800 = arith.constant 0 : index
    %450 = vector.load %arg9[%c6_799, %c0_800] : memref<72x4xf32, #tpu.memory_space<vmem>>, vector<4x4xf32>
    %c4_801 = arith.constant 4 : index
    %c0_802 = arith.constant 0 : index
    %451 = vector.load %arg12[%c4_801, %c0_802] : memref<32x36xf32, #tpu.memory_space<vmem>>, vector<4x4xf32>
    tpu.vector_store %arg12[%c4_801, %c0_802], %450 {strides = array<i32>} : memref<32x36xf32, #tpu.memory_space<vmem>>, vector<4x4xf32>,
    %c7_803 = arith.constant 7 : index
    %c0_804 = arith.constant 0 : index
    %452 = vector.load %arg9[%c7_803, %c0_804] : memref<72x4xf32, #tpu.memory_space<vmem>>, vector<4x4xf32>
    %c4_805 = arith.constant 4 : index
    %c4_806 = arith.constant 4 : index
    %453 = vector.load %arg12[%c4_805, %c4_806] : memref<32x36xf32, #tpu.memory_space<vmem>>, vector<4x4xf32>
    tpu.vector_store %arg12[%c4_805, %c4_806], %452 {strides = array<i32>} : memref<32x36xf32, #tpu.memory_space<vmem>>, vector<4x4xf32>,
    %c8_807 = arith.constant 8 : index
    %c0_808 = arith.constant 0 : index
    %454 = vector.load %arg9[%c8_807, %c0_808] : memref<72x4xf32, #tpu.memory_space<vmem>>, vector<4x4xf32>
    %c4_809 = arith.constant 4 : index
    %c8_810 = arith.constant 8 : index
    %455 = vector.load %arg12[%c4_809, %c8_810] : memref<32x36xf32, #tpu.memory_space<vmem>>, vector<4x4xf32>
    tpu.vector_store %arg12[%c4_809, %c8_810], %454 {strides = array<i32>} : memref<32x36xf32, #tpu.memory_space<vmem>>, vector<4x4xf32>,
    %c12_811 = arith.constant 12 : index
    %c0_812 = arith.constant 0 : index
    %456 = vector.load %arg9[%c12_811, %c0_812] : memref<72x4xf32, #tpu.memory_space<vmem>>, vector<4x4xf32>
    %c4_813 = arith.constant 4 : index
    %c12_814 = arith.constant 12 : index
    %457 = vector.load %arg12[%c4_813, %c12_814] : memref<32x36xf32, #tpu.memory_space<vmem>>, vector<4x4xf32>
    tpu.vector_store %arg12[%c4_813, %c12_814], %456 {strides = array<i32>} : memref<32x36xf32, #tpu.memory_space<vmem>>, vector<4x4xf32>,
    %c13_815 = arith.constant 13 : index
    %c0_816 = arith.constant 0 : index
    %458 = vector.load %arg9[%c13_815, %c0_816] : memref<72x4xf32, #tpu.memory_space<vmem>>, vector<4x4xf32>
    %c4_817 = arith.constant 4 : index
    %c16_818 = arith.constant 16 : index
    %459 = vector.load %arg12[%c4_817, %c16_818] : memref<32x36xf32, #tpu.memory_space<vmem>>, vector<4x4xf32>
    tpu.vector_store %arg12[%c4_817, %c16_818], %458 {strides = array<i32>} : memref<32x36xf32, #tpu.memory_space<vmem>>, vector<4x4xf32>,
    %c14_819 = arith.constant 14 : index
    %c0_820 = arith.constant 0 : index
    %460 = vector.load %arg9[%c14_819, %c0_820] : memref<72x4xf32, #tpu.memory_space<vmem>>, vector<4x4xf32>
    %c4_821 = arith.constant 4 : index
    %c20_822 = arith.constant 20 : index
    %461 = vector.load %arg12[%c4_821, %c20_822] : memref<32x36xf32, #tpu.memory_space<vmem>>, vector<4x4xf32>
    tpu.vector_store %arg12[%c4_821, %c20_822], %460 {strides = array<i32>} : memref<32x36xf32, #tpu.memory_space<vmem>>, vector<4x4xf32>,
    %c18_823 = arith.constant 18 : index
    %c0_824 = arith.constant 0 : index
    %462 = vector.load %arg9[%c18_823, %c0_824] : memref<72x4xf32, #tpu.memory_space<vmem>>, vector<4x4xf32>
    %c4_825 = arith.constant 4 : index
    %c24_826 = arith.constant 24 : index
    %463 = vector.load %arg12[%c4_825, %c24_826] : memref<32x36xf32, #tpu.memory_space<vmem>>, vector<4x4xf32>
    tpu.vector_store %arg12[%c4_825, %c24_826], %462 {strides = array<i32>} : memref<32x36xf32, #tpu.memory_space<vmem>>, vector<4x4xf32>,
    %c19_827 = arith.constant 19 : index
    %c0_828 = arith.constant 0 : index
    %464 = vector.load %arg9[%c19_827, %c0_828] : memref<72x4xf32, #tpu.memory_space<vmem>>, vector<4x4xf32>
    %c4_829 = arith.constant 4 : index
    %c28_830 = arith.constant 28 : index
    %465 = vector.load %arg12[%c4_829, %c28_830] : memref<32x36xf32, #tpu.memory_space<vmem>>, vector<4x4xf32>
    tpu.vector_store %arg12[%c4_829, %c28_830], %464 {strides = array<i32>} : memref<32x36xf32, #tpu.memory_space<vmem>>, vector<4x4xf32>,
    %c20_831 = arith.constant 20 : index
    %c0_832 = arith.constant 0 : index
    %466 = vector.load %arg9[%c20_831, %c0_832] : memref<72x4xf32, #tpu.memory_space<vmem>>, vector<4x4xf32>
    %c4_833 = arith.constant 4 : index
    %c32_834 = arith.constant 32 : index
    %467 = vector.load %arg12[%c4_833, %c32_834] : memref<32x36xf32, #tpu.memory_space<vmem>>, vector<4x4xf32>
    tpu.vector_store %arg12[%c4_833, %c32_834], %466 {strides = array<i32>} : memref<32x36xf32, #tpu.memory_space<vmem>>, vector<4x4xf32>,
    %c12_835 = arith.constant 12 : index
    %c0_836 = arith.constant 0 : index
    %468 = vector.load %arg9[%c12_835, %c0_836] : memref<72x4xf32, #tpu.memory_space<vmem>>, vector<4x4xf32>
    %c8_837 = arith.constant 8 : index
    %c0_838 = arith.constant 0 : index
    %469 = vector.load %arg12[%c8_837, %c0_838] : memref<32x36xf32, #tpu.memory_space<vmem>>, vector<4x4xf32>
    tpu.vector_store %arg12[%c8_837, %c0_838], %468 {strides = array<i32>} : memref<32x36xf32, #tpu.memory_space<vmem>>, vector<4x4xf32>,
    %c13_839 = arith.constant 13 : index
    %c0_840 = arith.constant 0 : index
    %470 = vector.load %arg9[%c13_839, %c0_840] : memref<72x4xf32, #tpu.memory_space<vmem>>, vector<4x4xf32>
    %c8_841 = arith.constant 8 : index
    %c4_842 = arith.constant 4 : index
    %471 = vector.load %arg12[%c8_841, %c4_842] : memref<32x36xf32, #tpu.memory_space<vmem>>, vector<4x4xf32>
    tpu.vector_store %arg12[%c8_841, %c4_842], %470 {strides = array<i32>} : memref<32x36xf32, #tpu.memory_space<vmem>>, vector<4x4xf32>,
    %c14_843 = arith.constant 14 : index
    %c0_844 = arith.constant 0 : index
    %472 = vector.load %arg9[%c14_843, %c0_844] : memref<72x4xf32, #tpu.memory_space<vmem>>, vector<4x4xf32>
    %c8_845 = arith.constant 8 : index
    %c8_846 = arith.constant 8 : index
    %473 = vector.load %arg12[%c8_845, %c8_846] : memref<32x36xf32, #tpu.memory_space<vmem>>, vector<4x4xf32>
    tpu.vector_store %arg12[%c8_845, %c8_846], %472 {strides = array<i32>} : memref<32x36xf32, #tpu.memory_space<vmem>>, vector<4x4xf32>,
    %c18_847 = arith.constant 18 : index
    %c0_848 = arith.constant 0 : index
    %474 = vector.load %arg9[%c18_847, %c0_848] : memref<72x4xf32, #tpu.memory_space<vmem>>, vector<4x4xf32>
    %c8_849 = arith.constant 8 : index
    %c12_850 = arith.constant 12 : index
    %475 = vector.load %arg12[%c8_849, %c12_850] : memref<32x36xf32, #tpu.memory_space<vmem>>, vector<4x4xf32>
    tpu.vector_store %arg12[%c8_849, %c12_850], %474 {strides = array<i32>} : memref<32x36xf32, #tpu.memory_space<vmem>>, vector<4x4xf32>,
    %c19_851 = arith.constant 19 : index
    %c0_852 = arith.constant 0 : index
    %476 = vector.load %arg9[%c19_851, %c0_852] : memref<72x4xf32, #tpu.memory_space<vmem>>, vector<4x4xf32>
    %c8_853 = arith.constant 8 : index
    %c16_854 = arith.constant 16 : index
    %477 = vector.load %arg12[%c8_853, %c16_854] : memref<32x36xf32, #tpu.memory_space<vmem>>, vector<4x4xf32>
    tpu.vector_store %arg12[%c8_853, %c16_854], %476 {strides = array<i32>} : memref<32x36xf32, #tpu.memory_space<vmem>>, vector<4x4xf32>,
    %c20_855 = arith.constant 20 : index
    %c0_856 = arith.constant 0 : index
    %478 = vector.load %arg9[%c20_855, %c0_856] : memref<72x4xf32, #tpu.memory_space<vmem>>, vector<4x4xf32>
    %c8_857 = arith.constant 8 : index
    %c20_858 = arith.constant 20 : index
    %479 = vector.load %arg12[%c8_857, %c20_858] : memref<32x36xf32, #tpu.memory_space<vmem>>, vector<4x4xf32>
    tpu.vector_store %arg12[%c8_857, %c20_858], %478 {strides = array<i32>} : memref<32x36xf32, #tpu.memory_space<vmem>>, vector<4x4xf32>,
    %c24_859 = arith.constant 24 : index
    %c0_860 = arith.constant 0 : index
    %480 = vector.load %arg9[%c24_859, %c0_860] : memref<72x4xf32, #tpu.memory_space<vmem>>, vector<4x4xf32>
    %c8_861 = arith.constant 8 : index
    %c24_862 = arith.constant 24 : index
    %481 = vector.load %arg12[%c8_861, %c24_862] : memref<32x36xf32, #tpu.memory_space<vmem>>, vector<4x4xf32>
    tpu.vector_store %arg12[%c8_861, %c24_862], %480 {strides = array<i32>} : memref<32x36xf32, #tpu.memory_space<vmem>>, vector<4x4xf32>,
    %c25_863 = arith.constant 25 : index
    %c0_864 = arith.constant 0 : index
    %482 = vector.load %arg9[%c25_863, %c0_864] : memref<72x4xf32, #tpu.memory_space<vmem>>, vector<4x4xf32>
    %c8_865 = arith.constant 8 : index
    %c28_866 = arith.constant 28 : index
    %483 = vector.load %arg12[%c8_865, %c28_866] : memref<32x36xf32, #tpu.memory_space<vmem>>, vector<4x4xf32>
    tpu.vector_store %arg12[%c8_865, %c28_866], %482 {strides = array<i32>} : memref<32x36xf32, #tpu.memory_space<vmem>>, vector<4x4xf32>,
    %c26_867 = arith.constant 26 : index
    %c0_868 = arith.constant 0 : index
    %484 = vector.load %arg9[%c26_867, %c0_868] : memref<72x4xf32, #tpu.memory_space<vmem>>, vector<4x4xf32>
    %c8_869 = arith.constant 8 : index
    %c32_870 = arith.constant 32 : index
    %485 = vector.load %arg12[%c8_869, %c32_870] : memref<32x36xf32, #tpu.memory_space<vmem>>, vector<4x4xf32>
    tpu.vector_store %arg12[%c8_869, %c32_870], %484 {strides = array<i32>} : memref<32x36xf32, #tpu.memory_space<vmem>>, vector<4x4xf32>,
    %c18_871 = arith.constant 18 : index
    %c0_872 = arith.constant 0 : index
    %486 = vector.load %arg9[%c18_871, %c0_872] : memref<72x4xf32, #tpu.memory_space<vmem>>, vector<4x4xf32>
    %c12_873 = arith.constant 12 : index
    %c0_874 = arith.constant 0 : index
    %487 = vector.load %arg12[%c12_873, %c0_874] : memref<32x36xf32, #tpu.memory_space<vmem>>, vector<4x4xf32>
    tpu.vector_store %arg12[%c12_873, %c0_874], %486 {strides = array<i32>} : memref<32x36xf32, #tpu.memory_space<vmem>>, vector<4x4xf32>,
    %c19_875 = arith.constant 19 : index
    %c0_876 = arith.constant 0 : index
    %488 = vector.load %arg9[%c19_875, %c0_876] : memref<72x4xf32, #tpu.memory_space<vmem>>, vector<4x4xf32>
    %c12_877 = arith.constant 12 : index
    %c4_878 = arith.constant 4 : index
    %489 = vector.load %arg12[%c12_877, %c4_878] : memref<32x36xf32, #tpu.memory_space<vmem>>, vector<4x4xf32>
    tpu.vector_store %arg12[%c12_877, %c4_878], %488 {strides = array<i32>} : memref<32x36xf32, #tpu.memory_space<vmem>>, vector<4x4xf32>,
    %c20_879 = arith.constant 20 : index
    %c0_880 = arith.constant 0 : index
    %490 = vector.load %arg9[%c20_879, %c0_880] : memref<72x4xf32, #tpu.memory_space<vmem>>, vector<4x4xf32>
    %c12_881 = arith.constant 12 : index
    %c8_882 = arith.constant 8 : index
    %491 = vector.load %arg12[%c12_881, %c8_882] : memref<32x36xf32, #tpu.memory_space<vmem>>, vector<4x4xf32>
    tpu.vector_store %arg12[%c12_881, %c8_882], %490 {strides = array<i32>} : memref<32x36xf32, #tpu.memory_space<vmem>>, vector<4x4xf32>,
    %c24_883 = arith.constant 24 : index
    %c0_884 = arith.constant 0 : index
    %492 = vector.load %arg9[%c24_883, %c0_884] : memref<72x4xf32, #tpu.memory_space<vmem>>, vector<4x4xf32>
    %c12_885 = arith.constant 12 : index
    %c12_886 = arith.constant 12 : index
    %493 = vector.load %arg12[%c12_885, %c12_886] : memref<32x36xf32, #tpu.memory_space<vmem>>, vector<4x4xf32>
    tpu.vector_store %arg12[%c12_885, %c12_886], %492 {strides = array<i32>} : memref<32x36xf32, #tpu.memory_space<vmem>>, vector<4x4xf32>,
    %c25_887 = arith.constant 25 : index
    %c0_888 = arith.constant 0 : index
    %494 = vector.load %arg9[%c25_887, %c0_888] : memref<72x4xf32, #tpu.memory_space<vmem>>, vector<4x4xf32>
    %c12_889 = arith.constant 12 : index
    %c16_890 = arith.constant 16 : index
    %495 = vector.load %arg12[%c12_889, %c16_890] : memref<32x36xf32, #tpu.memory_space<vmem>>, vector<4x4xf32>
    tpu.vector_store %arg12[%c12_889, %c16_890], %494 {strides = array<i32>} : memref<32x36xf32, #tpu.memory_space<vmem>>, vector<4x4xf32>,
    %c26_891 = arith.constant 26 : index
    %c0_892 = arith.constant 0 : index
    %496 = vector.load %arg9[%c26_891, %c0_892] : memref<72x4xf32, #tpu.memory_space<vmem>>, vector<4x4xf32>
    %c12_893 = arith.constant 12 : index
    %c20_894 = arith.constant 20 : index
    %497 = vector.load %arg12[%c12_893, %c20_894] : memref<32x36xf32, #tpu.memory_space<vmem>>, vector<4x4xf32>
    tpu.vector_store %arg12[%c12_893, %c20_894], %496 {strides = array<i32>} : memref<32x36xf32, #tpu.memory_space<vmem>>, vector<4x4xf32>,
    %c30_895 = arith.constant 30 : index
    %c0_896 = arith.constant 0 : index
    %498 = vector.load %arg9[%c30_895, %c0_896] : memref<72x4xf32, #tpu.memory_space<vmem>>, vector<4x4xf32>
    %c12_897 = arith.constant 12 : index
    %c24_898 = arith.constant 24 : index
    %499 = vector.load %arg12[%c12_897, %c24_898] : memref<32x36xf32, #tpu.memory_space<vmem>>, vector<4x4xf32>
    tpu.vector_store %arg12[%c12_897, %c24_898], %498 {strides = array<i32>} : memref<32x36xf32, #tpu.memory_space<vmem>>, vector<4x4xf32>,
    %c31_899 = arith.constant 31 : index
    %c0_900 = arith.constant 0 : index
    %500 = vector.load %arg9[%c31_899, %c0_900] : memref<72x4xf32, #tpu.memory_space<vmem>>, vector<4x4xf32>
    %c12_901 = arith.constant 12 : index
    %c28_902 = arith.constant 28 : index
    %501 = vector.load %arg12[%c12_901, %c28_902] : memref<32x36xf32, #tpu.memory_space<vmem>>, vector<4x4xf32>
    tpu.vector_store %arg12[%c12_901, %c28_902], %500 {strides = array<i32>} : memref<32x36xf32, #tpu.memory_space<vmem>>, vector<4x4xf32>,
    %c32_903 = arith.constant 32 : index
    %c0_904 = arith.constant 0 : index
    %502 = vector.load %arg9[%c32_903, %c0_904] : memref<72x4xf32, #tpu.memory_space<vmem>>, vector<4x4xf32>
    %c12_905 = arith.constant 12 : index
    %c32_906 = arith.constant 32 : index
    %503 = vector.load %arg12[%c12_905, %c32_906] : memref<32x36xf32, #tpu.memory_space<vmem>>, vector<4x4xf32>
    tpu.vector_store %arg12[%c12_905, %c32_906], %502 {strides = array<i32>} : memref<32x36xf32, #tpu.memory_space<vmem>>, vector<4x4xf32>,
    %c36_907 = arith.constant 36 : index
    %c0_908 = arith.constant 0 : index
    %504 = vector.load %arg9[%c36_907, %c0_908] : memref<72x4xf32, #tpu.memory_space<vmem>>, vector<4x4xf32>
    %c16_909 = arith.constant 16 : index
    %c0_910 = arith.constant 0 : index
    %505 = vector.load %arg12[%c16_909, %c0_910] : memref<32x36xf32, #tpu.memory_space<vmem>>, vector<4x4xf32>
    tpu.vector_store %arg12[%c16_909, %c0_910], %504 {strides = array<i32>} : memref<32x36xf32, #tpu.memory_space<vmem>>, vector<4x4xf32>,
    %c37_911 = arith.constant 37 : index
    %c0_912 = arith.constant 0 : index
    %506 = vector.load %arg9[%c37_911, %c0_912] : memref<72x4xf32, #tpu.memory_space<vmem>>, vector<4x4xf32>
    %c16_913 = arith.constant 16 : index
    %c4_914 = arith.constant 4 : index
    %507 = vector.load %arg12[%c16_913, %c4_914] : memref<32x36xf32, #tpu.memory_space<vmem>>, vector<4x4xf32>
    tpu.vector_store %arg12[%c16_913, %c4_914], %506 {strides = array<i32>} : memref<32x36xf32, #tpu.memory_space<vmem>>, vector<4x4xf32>,
    %c38_915 = arith.constant 38 : index
    %c0_916 = arith.constant 0 : index
    %508 = vector.load %arg9[%c38_915, %c0_916] : memref<72x4xf32, #tpu.memory_space<vmem>>, vector<4x4xf32>
    %c16_917 = arith.constant 16 : index
    %c8_918 = arith.constant 8 : index
    %509 = vector.load %arg12[%c16_917, %c8_918] : memref<32x36xf32, #tpu.memory_space<vmem>>, vector<4x4xf32>
    tpu.vector_store %arg12[%c16_917, %c8_918], %508 {strides = array<i32>} : memref<32x36xf32, #tpu.memory_space<vmem>>, vector<4x4xf32>,
    %c42_919 = arith.constant 42 : index
    %c0_920 = arith.constant 0 : index
    %510 = vector.load %arg9[%c42_919, %c0_920] : memref<72x4xf32, #tpu.memory_space<vmem>>, vector<4x4xf32>
    %c16_921 = arith.constant 16 : index
    %c12_922 = arith.constant 12 : index
    %511 = vector.load %arg12[%c16_921, %c12_922] : memref<32x36xf32, #tpu.memory_space<vmem>>, vector<4x4xf32>
    tpu.vector_store %arg12[%c16_921, %c12_922], %510 {strides = array<i32>} : memref<32x36xf32, #tpu.memory_space<vmem>>, vector<4x4xf32>,
    %c43_923 = arith.constant 43 : index
    %c0_924 = arith.constant 0 : index
    %512 = vector.load %arg9[%c43_923, %c0_924] : memref<72x4xf32, #tpu.memory_space<vmem>>, vector<4x4xf32>
    %c16_925 = arith.constant 16 : index
    %c16_926 = arith.constant 16 : index
    %513 = vector.load %arg12[%c16_925, %c16_926] : memref<32x36xf32, #tpu.memory_space<vmem>>, vector<4x4xf32>
    tpu.vector_store %arg12[%c16_925, %c16_926], %512 {strides = array<i32>} : memref<32x36xf32, #tpu.memory_space<vmem>>, vector<4x4xf32>,
    %c44_927 = arith.constant 44 : index
    %c0_928 = arith.constant 0 : index
    %514 = vector.load %arg9[%c44_927, %c0_928] : memref<72x4xf32, #tpu.memory_space<vmem>>, vector<4x4xf32>
    %c16_929 = arith.constant 16 : index
    %c20_930 = arith.constant 20 : index
    %515 = vector.load %arg12[%c16_929, %c20_930] : memref<32x36xf32, #tpu.memory_space<vmem>>, vector<4x4xf32>
    tpu.vector_store %arg12[%c16_929, %c20_930], %514 {strides = array<i32>} : memref<32x36xf32, #tpu.memory_space<vmem>>, vector<4x4xf32>,
    %c48_931 = arith.constant 48 : index
    %c0_932 = arith.constant 0 : index
    %516 = vector.load %arg9[%c48_931, %c0_932] : memref<72x4xf32, #tpu.memory_space<vmem>>, vector<4x4xf32>
    %c16_933 = arith.constant 16 : index
    %c24_934 = arith.constant 24 : index
    %517 = vector.load %arg12[%c16_933, %c24_934] : memref<32x36xf32, #tpu.memory_space<vmem>>, vector<4x4xf32>
    tpu.vector_store %arg12[%c16_933, %c24_934], %516 {strides = array<i32>} : memref<32x36xf32, #tpu.memory_space<vmem>>, vector<4x4xf32>,
    %c49_935 = arith.constant 49 : index
    %c0_936 = arith.constant 0 : index
    %518 = vector.load %arg9[%c49_935, %c0_936] : memref<72x4xf32, #tpu.memory_space<vmem>>, vector<4x4xf32>
    %c16_937 = arith.constant 16 : index
    %c28_938 = arith.constant 28 : index
    %519 = vector.load %arg12[%c16_937, %c28_938] : memref<32x36xf32, #tpu.memory_space<vmem>>, vector<4x4xf32>
    tpu.vector_store %arg12[%c16_937, %c28_938], %518 {strides = array<i32>} : memref<32x36xf32, #tpu.memory_space<vmem>>, vector<4x4xf32>,
    %c50_939 = arith.constant 50 : index
    %c0_940 = arith.constant 0 : index
    %520 = vector.load %arg9[%c50_939, %c0_940] : memref<72x4xf32, #tpu.memory_space<vmem>>, vector<4x4xf32>
    %c16_941 = arith.constant 16 : index
    %c32_942 = arith.constant 32 : index
    %521 = vector.load %arg12[%c16_941, %c32_942] : memref<32x36xf32, #tpu.memory_space<vmem>>, vector<4x4xf32>
    tpu.vector_store %arg12[%c16_941, %c32_942], %520 {strides = array<i32>} : memref<32x36xf32, #tpu.memory_space<vmem>>, vector<4x4xf32>,
    %c42_943 = arith.constant 42 : index
    %c0_944 = arith.constant 0 : index
    %522 = vector.load %arg9[%c42_943, %c0_944] : memref<72x4xf32, #tpu.memory_space<vmem>>, vector<4x4xf32>
    %c20_945 = arith.constant 20 : index
    %c0_946 = arith.constant 0 : index
    %523 = vector.load %arg12[%c20_945, %c0_946] : memref<32x36xf32, #tpu.memory_space<vmem>>, vector<4x4xf32>
    tpu.vector_store %arg12[%c20_945, %c0_946], %522 {strides = array<i32>} : memref<32x36xf32, #tpu.memory_space<vmem>>, vector<4x4xf32>,
    %c43_947 = arith.constant 43 : index
    %c0_948 = arith.constant 0 : index
    %524 = vector.load %arg9[%c43_947, %c0_948] : memref<72x4xf32, #tpu.memory_space<vmem>>, vector<4x4xf32>
    %c20_949 = arith.constant 20 : index
    %c4_950 = arith.constant 4 : index
    %525 = vector.load %arg12[%c20_949, %c4_950] : memref<32x36xf32, #tpu.memory_space<vmem>>, vector<4x4xf32>
    tpu.vector_store %arg12[%c20_949, %c4_950], %524 {strides = array<i32>} : memref<32x36xf32, #tpu.memory_space<vmem>>, vector<4x4xf32>,
    %c44_951 = arith.constant 44 : index
    %c0_952 = arith.constant 0 : index
    %526 = vector.load %arg9[%c44_951, %c0_952] : memref<72x4xf32, #tpu.memory_space<vmem>>, vector<4x4xf32>
    %c20_953 = arith.constant 20 : index
    %c8_954 = arith.constant 8 : index
    %527 = vector.load %arg12[%c20_953, %c8_954] : memref<32x36xf32, #tpu.memory_space<vmem>>, vector<4x4xf32>
    tpu.vector_store %arg12[%c20_953, %c8_954], %526 {strides = array<i32>} : memref<32x36xf32, #tpu.memory_space<vmem>>, vector<4x4xf32>,
    %c48_955 = arith.constant 48 : index
    %c0_956 = arith.constant 0 : index
    %528 = vector.load %arg9[%c48_955, %c0_956] : memref<72x4xf32, #tpu.memory_space<vmem>>, vector<4x4xf32>
    %c20_957 = arith.constant 20 : index
    %c12_958 = arith.constant 12 : index
    %529 = vector.load %arg12[%c20_957, %c12_958] : memref<32x36xf32, #tpu.memory_space<vmem>>, vector<4x4xf32>
    tpu.vector_store %arg12[%c20_957, %c12_958], %528 {strides = array<i32>} : memref<32x36xf32, #tpu.memory_space<vmem>>, vector<4x4xf32>,
    %c49_959 = arith.constant 49 : index
    %c0_960 = arith.constant 0 : index
    %530 = vector.load %arg9[%c49_959, %c0_960] : memref<72x4xf32, #tpu.memory_space<vmem>>, vector<4x4xf32>
    %c20_961 = arith.constant 20 : index
    %c16_962 = arith.constant 16 : index
    %531 = vector.load %arg12[%c20_961, %c16_962] : memref<32x36xf32, #tpu.memory_space<vmem>>, vector<4x4xf32>
    tpu.vector_store %arg12[%c20_961, %c16_962], %530 {strides = array<i32>} : memref<32x36xf32, #tpu.memory_space<vmem>>, vector<4x4xf32>,
    %c50_963 = arith.constant 50 : index
    %c0_964 = arith.constant 0 : index
    %532 = vector.load %arg9[%c50_963, %c0_964] : memref<72x4xf32, #tpu.memory_space<vmem>>, vector<4x4xf32>
    %c20_965 = arith.constant 20 : index
    %c20_966 = arith.constant 20 : index
    %533 = vector.load %arg12[%c20_965, %c20_966] : memref<32x36xf32, #tpu.memory_space<vmem>>, vector<4x4xf32>
    tpu.vector_store %arg12[%c20_965, %c20_966], %532 {strides = array<i32>} : memref<32x36xf32, #tpu.memory_space<vmem>>, vector<4x4xf32>,
    %c54_967 = arith.constant 54 : index
    %c0_968 = arith.constant 0 : index
    %534 = vector.load %arg9[%c54_967, %c0_968] : memref<72x4xf32, #tpu.memory_space<vmem>>, vector<4x4xf32>
    %c20_969 = arith.constant 20 : index
    %c24_970 = arith.constant 24 : index
    %535 = vector.load %arg12[%c20_969, %c24_970] : memref<32x36xf32, #tpu.memory_space<vmem>>, vector<4x4xf32>
    tpu.vector_store %arg12[%c20_969, %c24_970], %534 {strides = array<i32>} : memref<32x36xf32, #tpu.memory_space<vmem>>, vector<4x4xf32>,
    %c55_971 = arith.constant 55 : index
    %c0_972 = arith.constant 0 : index
    %536 = vector.load %arg9[%c55_971, %c0_972] : memref<72x4xf32, #tpu.memory_space<vmem>>, vector<4x4xf32>
    %c20_973 = arith.constant 20 : index
    %c28_974 = arith.constant 28 : index
    %537 = vector.load %arg12[%c20_973, %c28_974] : memref<32x36xf32, #tpu.memory_space<vmem>>, vector<4x4xf32>
    tpu.vector_store %arg12[%c20_973, %c28_974], %536 {strides = array<i32>} : memref<32x36xf32, #tpu.memory_space<vmem>>, vector<4x4xf32>,
    %c56_975 = arith.constant 56 : index
    %c0_976 = arith.constant 0 : index
    %538 = vector.load %arg9[%c56_975, %c0_976] : memref<72x4xf32, #tpu.memory_space<vmem>>, vector<4x4xf32>
    %c20_977 = arith.constant 20 : index
    %c32_978 = arith.constant 32 : index
    %539 = vector.load %arg12[%c20_977, %c32_978] : memref<32x36xf32, #tpu.memory_space<vmem>>, vector<4x4xf32>
    tpu.vector_store %arg12[%c20_977, %c32_978], %538 {strides = array<i32>} : memref<32x36xf32, #tpu.memory_space<vmem>>, vector<4x4xf32>,
    %c48_979 = arith.constant 48 : index
    %c0_980 = arith.constant 0 : index
    %540 = vector.load %arg9[%c48_979, %c0_980] : memref<72x4xf32, #tpu.memory_space<vmem>>, vector<4x4xf32>
    %c24_981 = arith.constant 24 : index
    %c0_982 = arith.constant 0 : index
    %541 = vector.load %arg12[%c24_981, %c0_982] : memref<32x36xf32, #tpu.memory_space<vmem>>, vector<4x4xf32>
    tpu.vector_store %arg12[%c24_981, %c0_982], %540 {strides = array<i32>} : memref<32x36xf32, #tpu.memory_space<vmem>>, vector<4x4xf32>,
    %c49_983 = arith.constant 49 : index
    %c0_984 = arith.constant 0 : index
    %542 = vector.load %arg9[%c49_983, %c0_984] : memref<72x4xf32, #tpu.memory_space<vmem>>, vector<4x4xf32>
    %c24_985 = arith.constant 24 : index
    %c4_986 = arith.constant 4 : index
    %543 = vector.load %arg12[%c24_985, %c4_986] : memref<32x36xf32, #tpu.memory_space<vmem>>, vector<4x4xf32>
    tpu.vector_store %arg12[%c24_985, %c4_986], %542 {strides = array<i32>} : memref<32x36xf32, #tpu.memory_space<vmem>>, vector<4x4xf32>,
    %c50_987 = arith.constant 50 : index
    %c0_988 = arith.constant 0 : index
    %544 = vector.load %arg9[%c50_987, %c0_988] : memref<72x4xf32, #tpu.memory_space<vmem>>, vector<4x4xf32>
    %c24_989 = arith.constant 24 : index
    %c8_990 = arith.constant 8 : index
    %545 = vector.load %arg12[%c24_989, %c8_990] : memref<32x36xf32, #tpu.memory_space<vmem>>, vector<4x4xf32>
    tpu.vector_store %arg12[%c24_989, %c8_990], %544 {strides = array<i32>} : memref<32x36xf32, #tpu.memory_space<vmem>>, vector<4x4xf32>,
    %c54_991 = arith.constant 54 : index
    %c0_992 = arith.constant 0 : index
    %546 = vector.load %arg9[%c54_991, %c0_992] : memref<72x4xf32, #tpu.memory_space<vmem>>, vector<4x4xf32>
    %c24_993 = arith.constant 24 : index
    %c12_994 = arith.constant 12 : index
    %547 = vector.load %arg12[%c24_993, %c12_994] : memref<32x36xf32, #tpu.memory_space<vmem>>, vector<4x4xf32>
    tpu.vector_store %arg12[%c24_993, %c12_994], %546 {strides = array<i32>} : memref<32x36xf32, #tpu.memory_space<vmem>>, vector<4x4xf32>,
    %c55_995 = arith.constant 55 : index
    %c0_996 = arith.constant 0 : index
    %548 = vector.load %arg9[%c55_995, %c0_996] : memref<72x4xf32, #tpu.memory_space<vmem>>, vector<4x4xf32>
    %c24_997 = arith.constant 24 : index
    %c16_998 = arith.constant 16 : index
    %549 = vector.load %arg12[%c24_997, %c16_998] : memref<32x36xf32, #tpu.memory_space<vmem>>, vector<4x4xf32>
    tpu.vector_store %arg12[%c24_997, %c16_998], %548 {strides = array<i32>} : memref<32x36xf32, #tpu.memory_space<vmem>>, vector<4x4xf32>,
    %c56_999 = arith.constant 56 : index
    %c0_1000 = arith.constant 0 : index
    %550 = vector.load %arg9[%c56_999, %c0_1000] : memref<72x4xf32, #tpu.memory_space<vmem>>, vector<4x4xf32>
    %c24_1001 = arith.constant 24 : index
    %c20_1002 = arith.constant 20 : index
    %551 = vector.load %arg12[%c24_1001, %c20_1002] : memref<32x36xf32, #tpu.memory_space<vmem>>, vector<4x4xf32>
    tpu.vector_store %arg12[%c24_1001, %c20_1002], %550 {strides = array<i32>} : memref<32x36xf32, #tpu.memory_space<vmem>>, vector<4x4xf32>,
    %c60_1003 = arith.constant 60 : index
    %c0_1004 = arith.constant 0 : index
    %552 = vector.load %arg9[%c60_1003, %c0_1004] : memref<72x4xf32, #tpu.memory_space<vmem>>, vector<4x4xf32>
    %c24_1005 = arith.constant 24 : index
    %c24_1006 = arith.constant 24 : index
    %553 = vector.load %arg12[%c24_1005, %c24_1006] : memref<32x36xf32, #tpu.memory_space<vmem>>, vector<4x4xf32>
    tpu.vector_store %arg12[%c24_1005, %c24_1006], %552 {strides = array<i32>} : memref<32x36xf32, #tpu.memory_space<vmem>>, vector<4x4xf32>,
    %c61_1007 = arith.constant 61 : index
    %c0_1008 = arith.constant 0 : index
    %554 = vector.load %arg9[%c61_1007, %c0_1008] : memref<72x4xf32, #tpu.memory_space<vmem>>, vector<4x4xf32>
    %c24_1009 = arith.constant 24 : index
    %c28_1010 = arith.constant 28 : index
    %555 = vector.load %arg12[%c24_1009, %c28_1010] : memref<32x36xf32, #tpu.memory_space<vmem>>, vector<4x4xf32>
    tpu.vector_store %arg12[%c24_1009, %c28_1010], %554 {strides = array<i32>} : memref<32x36xf32, #tpu.memory_space<vmem>>, vector<4x4xf32>,
    %c62_1011 = arith.constant 62 : index
    %c0_1012 = arith.constant 0 : index
    %556 = vector.load %arg9[%c62_1011, %c0_1012] : memref<72x4xf32, #tpu.memory_space<vmem>>, vector<4x4xf32>
    %c24_1013 = arith.constant 24 : index
    %c32_1014 = arith.constant 32 : index
    %557 = vector.load %arg12[%c24_1013, %c32_1014] : memref<32x36xf32, #tpu.memory_space<vmem>>, vector<4x4xf32>
    tpu.vector_store %arg12[%c24_1013, %c32_1014], %556 {strides = array<i32>} : memref<32x36xf32, #tpu.memory_space<vmem>>, vector<4x4xf32>,
    %c54_1015 = arith.constant 54 : index
    %c0_1016 = arith.constant 0 : index
    %558 = vector.load %arg9[%c54_1015, %c0_1016] : memref<72x4xf32, #tpu.memory_space<vmem>>, vector<4x4xf32>
    %c28_1017 = arith.constant 28 : index
    %c0_1018 = arith.constant 0 : index
    %559 = vector.load %arg12[%c28_1017, %c0_1018] : memref<32x36xf32, #tpu.memory_space<vmem>>, vector<4x4xf32>
    tpu.vector_store %arg12[%c28_1017, %c0_1018], %558 {strides = array<i32>} : memref<32x36xf32, #tpu.memory_space<vmem>>, vector<4x4xf32>,
    %c55_1019 = arith.constant 55 : index
    %c0_1020 = arith.constant 0 : index
    %560 = vector.load %arg9[%c55_1019, %c0_1020] : memref<72x4xf32, #tpu.memory_space<vmem>>, vector<4x4xf32>
    %c28_1021 = arith.constant 28 : index
    %c4_1022 = arith.constant 4 : index
    %561 = vector.load %arg12[%c28_1021, %c4_1022] : memref<32x36xf32, #tpu.memory_space<vmem>>, vector<4x4xf32>
    tpu.vector_store %arg12[%c28_1021, %c4_1022], %560 {strides = array<i32>} : memref<32x36xf32, #tpu.memory_space<vmem>>, vector<4x4xf32>,
    %c56_1023 = arith.constant 56 : index
    %c0_1024 = arith.constant 0 : index
    %562 = vector.load %arg9[%c56_1023, %c0_1024] : memref<72x4xf32, #tpu.memory_space<vmem>>, vector<4x4xf32>
    %c28_1025 = arith.constant 28 : index
    %c8_1026 = arith.constant 8 : index
    %563 = vector.load %arg12[%c28_1025, %c8_1026] : memref<32x36xf32, #tpu.memory_space<vmem>>, vector<4x4xf32>
    tpu.vector_store %arg12[%c28_1025, %c8_1026], %562 {strides = array<i32>} : memref<32x36xf32, #tpu.memory_space<vmem>>, vector<4x4xf32>,
    %c60_1027 = arith.constant 60 : index
    %c0_1028 = arith.constant 0 : index
    %564 = vector.load %arg9[%c60_1027, %c0_1028] : memref<72x4xf32, #tpu.memory_space<vmem>>, vector<4x4xf32>
    %c28_1029 = arith.constant 28 : index
    %c12_1030 = arith.constant 12 : index
    %565 = vector.load %arg12[%c28_1029, %c12_1030] : memref<32x36xf32, #tpu.memory_space<vmem>>, vector<4x4xf32>
    tpu.vector_store %arg12[%c28_1029, %c12_1030], %564 {strides = array<i32>} : memref<32x36xf32, #tpu.memory_space<vmem>>, vector<4x4xf32>,
    %c61_1031 = arith.constant 61 : index
    %c0_1032 = arith.constant 0 : index
    %566 = vector.load %arg9[%c61_1031, %c0_1032] : memref<72x4xf32, #tpu.memory_space<vmem>>, vector<4x4xf32>
    %c28_1033 = arith.constant 28 : index
    %c16_1034 = arith.constant 16 : index
    %567 = vector.load %arg12[%c28_1033, %c16_1034] : memref<32x36xf32, #tpu.memory_space<vmem>>, vector<4x4xf32>
    tpu.vector_store %arg12[%c28_1033, %c16_1034], %566 {strides = array<i32>} : memref<32x36xf32, #tpu.memory_space<vmem>>, vector<4x4xf32>,
    %c62_1035 = arith.constant 62 : index
    %c0_1036 = arith.constant 0 : index
    %568 = vector.load %arg9[%c62_1035, %c0_1036] : memref<72x4xf32, #tpu.memory_space<vmem>>, vector<4x4xf32>
    %c28_1037 = arith.constant 28 : index
    %c20_1038 = arith.constant 20 : index
    %569 = vector.load %arg12[%c28_1037, %c20_1038] : memref<32x36xf32, #tpu.memory_space<vmem>>, vector<4x4xf32>
    tpu.vector_store %arg12[%c28_1037, %c20_1038], %568 {strides = array<i32>} : memref<32x36xf32, #tpu.memory_space<vmem>>, vector<4x4xf32>,
    %c66_1039 = arith.constant 66 : index
    %c0_1040 = arith.constant 0 : index
    %570 = vector.load %arg9[%c66_1039, %c0_1040] : memref<72x4xf32, #tpu.memory_space<vmem>>, vector<4x4xf32>
    %c28_1041 = arith.constant 28 : index
    %c24_1042 = arith.constant 24 : index
    %571 = vector.load %arg12[%c28_1041, %c24_1042] : memref<32x36xf32, #tpu.memory_space<vmem>>, vector<4x4xf32>
    tpu.vector_store %arg12[%c28_1041, %c24_1042], %570 {strides = array<i32>} : memref<32x36xf32, #tpu.memory_space<vmem>>, vector<4x4xf32>,
    %c67_1043 = arith.constant 67 : index
    %c0_1044 = arith.constant 0 : index
    %572 = vector.load %arg9[%c67_1043, %c0_1044] : memref<72x4xf32, #tpu.memory_space<vmem>>, vector<4x4xf32>
    %c28_1045 = arith.constant 28 : index
    %c28_1046 = arith.constant 28 : index
    %573 = vector.load %arg12[%c28_1045, %c28_1046] : memref<32x36xf32, #tpu.memory_space<vmem>>, vector<4x4xf32>
    tpu.vector_store %arg12[%c28_1045, %c28_1046], %572 {strides = array<i32>} : memref<32x36xf32, #tpu.memory_space<vmem>>, vector<4x4xf32>,
    %c68_1047 = arith.constant 68 : index
    %c0_1048 = arith.constant 0 : index
    %574 = vector.load %arg9[%c68_1047, %c0_1048] : memref<72x4xf32, #tpu.memory_space<vmem>>, vector<4x4xf32>
    %c28_1049 = arith.constant 28 : index
    %c32_1050 = arith.constant 32 : index
    %575 = vector.load %arg12[%c28_1049, %c32_1050] : memref<32x36xf32, #tpu.memory_space<vmem>>, vector<4x4xf32>
    tpu.vector_store %arg12[%c28_1049, %c32_1050], %574 {strides = array<i32>} : memref<32x36xf32, #tpu.memory_space<vmem>>, vector<4x4xf32>,
    %c0_1051 = arith.constant 0 : index
    %c0_1052 = arith.constant 0 : index
    %576 = vector.load %arg12[%c0_1051, %c0_1052] : memref<32x36xf32, #tpu.memory_space<vmem>>, vector<32x36xf32>
    %c0_1053 = arith.constant 0 : index
    %c0_1054 = arith.constant 0 : index
    %577 = vector.load %arg5[%c0_1053, %c0_1054] : memref<36x4xf32, #tpu.memory_space<vmem>>, vector<36x4xf32>
    %cst_1055 = arith.constant dense<0.000000e+00> : vector<32x4xf32>
    %578 = tpu.matmul %576, %577, %cst_1055 {dimension_numbers = #tpu.dot_dimension_numbers<[1], [0], [0], [1], [0, 0, 1, 1], [], []>} : vector<32x36xf32>, vector<36x4xf32>, vector<32x4xf32> -> vector<32x4xf32>
    %c0_1056 = arith.constant 0 : index
    %c0_1057 = arith.constant 0 : index
    %579 = vector.load %arg6[%c0_1056, %c0_1057] : memref<1x4xf32, #tpu.memory_space<vmem>>, vector<1x4xf32>
    %580 = vector.broadcast %579 : vector<1x4xf32> to vector<32x4xf32>
    %581 = arith.addf %578, %580 : vector<32x4xf32>
    %c0_1058 = arith.constant 0 : index
    %c0_1059 = arith.constant 0 : index
    %582 = vector.load %arg8[%c0_1058, %c0_1059] : memref<32x4xf32, #tpu.memory_space<vmem>>, vector<32x4xf32>
    tpu.vector_store %arg8[%c0_1058, %c0_1059], %581 {strides = array<i32>} : memref<32x4xf32, #tpu.memory_space<vmem>>, vector<32x4xf32>,
    return
  }
}

</mosaic_0001>

<bundles_post_ra>
// kernel: separator_bipart_forward.1
= control target key start
LH: loop header
LB: loop body
LE: loop exit
PB: predicated region body
PF: predicated region fallthrough
CT: control target
= control target key end

     0   :  { %s2293_s9 = smov 4   ;;  %s2294_s10 = smov 2   ;;  %vm30_vm0 = vcmask 13312   ;;  %v2299_v19 = vmov 0.0|0.0   ;;  %vm2301_vm1 = vmmov 0   ;;  %v2302_v26 = vmov 0.0   ;;  %s3400_s0 = inlined_call_operand.vmem [shape: f32[128,2], index: 0, kind: input, shape index: {}]   ;;  %s3401_s1 = inlined_call_operand.vmem [shape: f32[18,4], index: 1, kind: input, shape index: {}]   ;;  %s3402_s2 = inlined_call_operand.vmem [shape: f32[1,4], index: 2, kind: input, shape index: {}]   ;;  %s3403_s3 = inlined_call_operand.vmem [shape: f32[100,4], index: 3, kind: input, shape index: {}]   ;;  %s3404_s4 = inlined_call_operand.vmem [shape: f32[1,4], index: 4, kind: input, shape index: {}]   ;;  %s3405_s5 = inlined_call_operand.vmem [shape: f32[36,4], index: 5, kind: input, shape index: {}]   ;;  %s3406_s6 = inlined_call_operand.vmem [shape: f32[1,4], index: 6, kind: input, shape index: {}]   ;;  %s3407_s7 = inlined_call_operand.hbm [shape: f32[8,4], index: 7, kind: output, shape index: {0}]   ;;  %s3408_s8 = inlined_call_operand.vmem [shape: f32[32,4], index: 8, kind: output, shape index: {1}]  }
   0x1   :  { %v39_v0 = vld [vmem:[%s3400_s0 + $0x2] sm:$0x3f]  ;;  %v96_v2 = vld [vmem:[%s3400_s0 + $0xa] sm:$0x3f]  ;;  %v102_v4 = vld [vmem:[%s3400_s0 + $0x10] sm:$0x3f]  ;;  %2208 = vmatprep.subr.bf16.mxu0 %v2299_v19  ;;  %2211 = vmatprep.subr.bf16.mxu1 %v2299_v19 }
   0x2   :  { %v32_v1 = vld [vmem:[%s3400_s0 + $0x1] sm:$0x3f]  ;;  %41 = vrot.lane.b32.xlu1 %v39_v0, %s2293_s9  ;;  %v90_v3 = vld [vmem:[%s3400_s0 + $0x9] sm:$0x3f]  ;;  %s2295_s19 = smov 6   ;;  %s2296_s24 = smov 8   ;;  %2136 = vmatprep.mubr.msk.f32.mxu0 %vm2301_vm1, %v2302_v26 }
   0x3   :  { %34 = vrot.lane.b32.xlu0 %v32_v1, %s2294_s10  ;;  %v46_v5 = vld [vmem:[%s3400_s0 + $0x8] sm:$0x3f]  ;;  %v108_v6 = vld [vmem:[%s3400_s0 + $0x11] sm:$0x3f]  ;;  %s2297_s29 = smov 10   ;;  %s2298_s14 = smov 12   ;;  %2189 = vmatprep.mubr.msk.f32.mxu1 %vm2301_vm1, %v2302_v26 }
   0x4   :  { %v53_v7 = vld [vmem:[%s3400_s0 + $0x9] sm:$0x3f]  ;;  %v114_v8 = vld [vmem:[%s3400_s0 + $0x12] sm:$0x3f]  ;;  %v120_v13 = vld [vmem:[%s3400_s0 + $0x18] sm:$0x3f] }
   0x5   :  { %v60_v9 = vld [vmem:[%s3400_s0 + $0xa] sm:$0x3f]  ;;  %v67_v10 = vld [vmem:[%s3400_s0 + $0x10] sm:$0x3f]  ;;  %v29_v14 = vld [vmem:[%s3400_s0] sm:$0x3f] }
   0x6   :  { %98 = vrot.lane.b32.xlu1 %v96_v2, %s2293_s9  ;;  %v140_v11 = vld [vmem:[%s3400_s0 + $0x11] sm:$0x3f]  ;;  %31 = vst.msk [vmem:[#allocation3] sm:$0x3f] %vm30_vm0, %v29_v14  ;;  %v88_v15 = vld [vmem:[%s3400_s0 + $0x8] sm:$0x3f] }
   0x7   :  { %92 = vrot.lane.b32.xlu0 %v90_v3, %s2294_s10  ;;  %v146_v12 = vld [vmem:[%s3400_s0 + $0x12] sm:$0x3f]  ;;  %89 = vst.msk [vmem:[#allocation3 + $0x6] sm:$0x3f] %vm30_vm0, %v88_v15  ;;  %v126_v16 = vld [vmem:[%s3400_s0 + $0x19] sm:$0x3f] }
   0x8   :  { %v74_v17 = vld [vmem:[%s3400_s0 + $0x11] sm:$0x3f]  ;;  %s2300_s12 = smov 14   ;;  %v152_v21 = vld [vmem:[%s3400_s0 + $0x18] sm:$0x3f]  ;;  %v647_v22 = vld [vmem:[%s3401_s1] sm:$0xff] }
   0x9   :  { %v138_v18 = vld [vmem:[%s3400_s0 + $0x10] sm:$0x3f]  ;;  %v648_v23 = vld [vmem:[%s3401_s1 + $0x8] sm:$0xff]  ;;  %v188_v25 = vld [vmem:[%s3400_s0 + $0x18] sm:$0x3f]  ;;  %s2303_s26 = smov 16  }
   0xa   :  { %104 = vrot.lane.b32.xlu1 %v102_v4, %s2295_s19  ;;  %139 = vst.msk [vmem:[#allocation3 + $0xc] sm:$0x3f] %vm30_vm0, %v138_v18  ;;  %v81_v20 = vld [vmem:[%s3400_s0 + $0x12] sm:$0x3f]  ;;  %v2209_v24 = vpack.c.bf16 %v648_v23, %v647_v22  ;;  %189 = vst.msk [vmem:[#allocation3 + $0x12] sm:$0x3f] %vm30_vm0, %v188_v25 }
   0xb   :  { %48 = vrot.lane.b32.xlu0 %v46_v5, %s2295_s19 }
   0xe   :  { %110 = vrot.lane.b32.xlu1 %v108_v6, %s2296_s24 }
   0xf   :  { %55 = vrot.lane.b32.xlu0 %v53_v7, %s2296_s24 }
  0x12   :  { %116 = vrot.lane.b32.xlu1 %v114_v8, %s2297_s29 }
  0x13   :  { %62 = vrot.lane.b32.xlu0 %v60_v9, %s2297_s29 }
  0x16   :  { %69 = vrot.lane.b32.xlu1 %v67_v10, %s2298_s14 }
  0x17   :  { %142 = vrot.lane.b32.xlu0 %v140_v11, %s2294_s10 }
  0x1a   :  { %148 = vrot.lane.b32.xlu1 %v146_v12, %s2293_s9 }
  0x1b   :  { %122 = vrot.lane.b32.xlu0 %v120_v13, %s2298_s14 }
  0x1e   :  { %128 = vrot.lane.b32.xlu1 %v126_v16, %s2300_s12 }
  0x1f   :  { %76 = vrot.lane.b32.xlu0 %v74_v17, %s2300_s12 }
  0x22   :  { %83 = vrot.lane.b32.xlu1 %v81_v20, %s2303_s26 }
  0x23   :  { %154 = vrot.lane.b32.xlu0 %v152_v21, %s2295_s19 }
  0x24   :  { %14 = vsyncpa [#allocation7], 0  ;;  %v158_v27 = vld [vmem:[%s3400_s0 + $0x19] sm:$0x3f]  ;;  %2210 = vmatpush3.bf16.msra.mxu0 %v2209_v24  ;;  %v649_v29 = vld [vmem:[%s3401_s1 + $0x10] sm:$0x3] }
  0x25   :  { %v132_v28 = vld [vmem:[%s3400_s0 + $0x1a] sm:$0x3f]  ;;  %2134 = vmatprep.subr.mxu0 %v2302_v26  ;;  %vm685_vm2 = vcmask 1041408   ;;  %v238_v32 = vld [vmem:[%s3400_s0 + $0x20] sm:$0x3f]  ;;  %vm37_vm3 = vcmask 29712  }
  0x26   :  { %160 = vrot.lane.b32.xlu1 %v158_v27, %s2296_s24  ;;  %v190_v30 = vld [vmem:[%s3400_s0 + $0x19] sm:$0x3f]  ;;  %v170_v34 = vld [vmem:[%s3400_s0 + $0x20] sm:$0x3f]  ;;  %239 = vst.msk [vmem:[#allocation3 + $0x18] sm:$0x3f] %vm30_vm0, %v238_v32 }
  0x27   :  { %134 = vrot.lane.b32.xlu0 %v132_v28, %s2303_s26  ;;  %v164_v31 = vld [vmem:[%s3400_s0 + $0x1a] sm:$0x3f]  ;;  %v202_v35 = vld [vmem:[%s3400_s0 + $0x20] sm:$0x3f]  ;;  %v288_v37 = vld [vmem:[%s3400_s0 + $0x28] sm:$0x3f] }
  0x28   :  { %2135 = vmatpush3.msk.msra.mxu0 %vm685_vm2, %v649_v29  ;;  %v196_v33 = vld [vmem:[%s3400_s0 + $0x1a] sm:$0x3f]  ;;  %v176_v36 = vld [vmem:[%s3400_s0 + $0x21] sm:$0x3f]  ;;  %289 = vst.msk [vmem:[#allocation3 + $0x1e] sm:$0x3f] %vm30_vm0, %v288_v37 }
  0x29   :  { %v208_v38 = vld [vmem:[%s3400_s0 + $0x21] sm:$0x3f]  ;;  %v220_v42 = vld [vmem:[%s3400_s0 + $0x28] sm:$0x3f]  ;;  %v302_v49 = vld [vmem:[%s3400_s0 + $0x30] sm:$0x3f] }
  0x2a   :  { %192 = vrot.lane.b32.xlu1 %v190_v30, %s2294_s10  ;;  %v182_v39 = vld [vmem:[%s3400_s0 + $0x22] sm:$0x3f]  ;;  %v290_v43 = vld [vmem:[%s3400_s0 + $0x29] sm:$0x3f]  ;;  %v308_v51 = vld [vmem:[%s3400_s0 + $0x31] sm:$0x3f] }
  0x2b   :  { %166 = vrot.lane.b32.xlu0 %v164_v31, %s2297_s29  ;;  %v240_v40 = vld [vmem:[%s3400_s0 + $0x21] sm:$0x3f]  ;;  %v296_v44 = vld [vmem:[%s3400_s0 + $0x2a] sm:$0x3f]  ;;  %v314_v53 = vld [vmem:[%s3400_s0 + $0x32] sm:$0x3f] }
  0x2c   :  { %v214_v41 = vld [vmem:[%s3400_s0 + $0x22] sm:$0x3f]  ;;  %v252_v46 = vld [vmem:[%s3400_s0 + $0x28] sm:$0x3f]  ;;  %v270_v55 = vld [vmem:[%s3400_s0 + $0x30] sm:$0x3f] }
  0x2d   :  { %v246_v45 = vld [vmem:[%s3400_s0 + $0x22] sm:$0x3f]  ;;  %v226_v47 = vld [vmem:[%s3400_s0 + $0x29] sm:$0x3f]  ;;  %v320_v58 = vld [vmem:[%s3400_s0 + $0x38] sm:$0x3f] }
  0x2e   :  { %198 = vrot.lane.b32.xlu1 %v196_v33, %s2293_s9  ;;  %v232_v48 = vld [vmem:[%s3400_s0 + $0x2a] sm:$0x3f]  ;;  %v338_v50 = vld [vmem:[%s3400_s0 + $0x40] sm:$0x3f]  ;;  %v326_v60 = vld [vmem:[%s3400_s0 + $0x39] sm:$0x3f] }
  0x2f   :  { %172 = vrot.lane.b32.xlu0 %v170_v34, %s2298_s14  ;;  %339 = vst.msk [vmem:[#allocation3 + $0x24] sm:$0x3f] %vm30_vm0, %v338_v50  ;;  %v258_v52 = vld [vmem:[%s3400_s0 + $0x29] sm:$0x3f]  ;;  %v340_v56 = vld [vmem:[%s3400_s0 + $0x41] sm:$0x3f] }
  0x30   :  { %v264_v54 = vld [vmem:[%s3400_s0 + $0x2a] sm:$0x3f]  ;;  %v346_v57 = vld [vmem:[%s3400_s0 + $0x42] sm:$0x3f]  ;;  %v276_v61 = vld [vmem:[%s3400_s0 + $0x31] sm:$0x3f] }
  0x31   :  { %v388_v59 = vld [vmem:[%s3400_s0 + $0x48] sm:$0x3f]  ;;  %v282_v62 = vld [vmem:[%s3400_s0 + $0x32] sm:$0x3f]  ;;  %v332_v1 = vld [vmem:[%s3400_s0 + $0x3a] sm:$0x3f] }
  0x32   :  { %204 = vrot.lane.b32.xlu1 %v202_v35, %s2295_s19  ;;  %389 = vst.msk [vmem:[#allocation3 + $0x2a] sm:$0x3f] %vm30_vm0, %v388_v59  ;;  %v352_v63 = vld [vmem:[%s3400_s0 + $0x48] sm:$0x3f]  ;;  %v438_v4 = vld [vmem:[%s3400_s0 + $0x50] sm:$0x3f] }
  0x33   :  { %178 = vrot.lane.b32.xlu0 %v176_v36, %s2300_s12  ;;  %v358_v0 = vld [vmem:[%s3400_s0 + $0x49] sm:$0x3f]  ;;  %439 = vst.msk [vmem:[#allocation3 + $0x30] sm:$0x3f] %vm30_vm0, %v438_v4  ;;  %v370_v6 = vld [vmem:[%s3400_s0 + $0x50] sm:$0x3f] }
  0x34   :  { %v390_v2 = vld [vmem:[%s3400_s0 + $0x49] sm:$0x3f]  ;;  %v402_v7 = vld [vmem:[%s3400_s0 + $0x50] sm:$0x3f]  ;;  %v488_v9 = vld [vmem:[%s3400_s0 + $0x58] sm:$0x3f] }
  0x35   :  { %v364_v3 = vld [vmem:[%s3400_s0 + $0x4a] sm:$0x3f]  ;;  %v376_v8 = vld [vmem:[%s3400_s0 + $0x51] sm:$0x3f]  ;;  %489 = vst.msk [vmem:[#allocation3 + $0x36] sm:$0x3f] %vm30_vm0, %v488_v9 }
  0x36   :  { %210 = vrot.lane.b32.xlu1 %v208_v38, %s2296_s24  ;;  %v396_v5 = vld [vmem:[%s3400_s0 + $0x4a] sm:$0x3f]  ;;  %v408_v10 = vld [vmem:[%s3400_s0 + $0x51] sm:$0x3f]  ;;  %vm44_vm4 = vcmask 46112   ;;  %vm51_vm5 = vcmask 62512  }
  0x37   :  { %184 = vrot.lane.b32.xlu0 %v182_v39, %s2303_s26  ;;  %v382_v11 = vld [vmem:[%s3400_s0 + $0x52] sm:$0x3f]  ;;  %v420_v18 = vld [vmem:[%s3400_s0 + $0x58] sm:$0x3f]  ;;  %vm58_vm6 = vcmask 78912   ;;  %vm65_vm7 = vcmask 95312  }
  0x38   :  { %v440_v14 = vld [vmem:[%s3400_s0 + $0x51] sm:$0x3f]  ;;  %v490_v20 = vld [vmem:[%s3400_s0 + $0x59] sm:$0x3f]  ;;  %v502_v33 = vld [vmem:[%s3400_s0 + $0x60] sm:$0x3f] }
  0x39   :  { %v414_v15 = vld [vmem:[%s3400_s0 + $0x52] sm:$0x3f]  ;;  %v496_v23 = vld [vmem:[%s3400_s0 + $0x5a] sm:$0x3f]  ;;  %vm72_vm8 = vcmask 111712   ;;  %vm79_vm9 = vcmask 128112  }
  0x3a   :  { %242 = vrot.lane.b32.xlu1 %v240_v40, %s2294_s10  ;;  %v446_v24 = vld [vmem:[%s3400_s0 + $0x52] sm:$0x3f]  ;;  %v452_v28 = vld [vmem:[%s3400_s0 + $0x58] sm:$0x3f]  ;;  %v508_v37 = vld [vmem:[%s3400_s0 + $0x61] sm:$0x3f] }
  0x3b   :  { %216 = vrot.lane.b32.xlu0 %v214_v41, %s2297_s29  ;;  %v426_v29 = vld [vmem:[%s3400_s0 + $0x59] sm:$0x3f]  ;;  %v538_v40 = vld [vmem:[%s3400_s0 + $0x60] sm:$0x3f]  ;;  %vm86_vm10 = vcmask 144512   ;;  %vm657_vm11 = vcmask 146432  }
  0x3c   :  { %v432_v32 = vld [vmem:[%s3400_s0 + $0x5a] sm:$0x3f]  ;;  %539 = vst.msk [vmem:[#allocation3 + $0x3c] sm:$0x3f] %vm30_vm0, %v538_v40  ;;  %v526_v50 = vld [vmem:[%s3400_s0 + $0x69] sm:$0x3f] }
  0x3d   :  { %v458_v36 = vld [vmem:[%s3400_s0 + $0x59] sm:$0x3f]  ;;  %v570_v4 = vld [vmem:[%s3400_s0 + $0x70] sm:$0x3f]  ;;  %vm3409_vm12 = vcmask 31744   ;;  %vm819_vm13 = vcmask 25600  }
  0x3e   :  { %222 = vrot.lane.b32.xlu1 %v220_v42, %s2298_s14  ;;  %v464_v41 = vld [vmem:[%s3400_s0 + $0x5a] sm:$0x3f]  ;;  %v514_v42 = vld [vmem:[%s3400_s0 + $0x62] sm:$0x3f]  ;;  %vm1528_vm14 = vcmask 27648   ;;  %s2306_s17 = smov 28  }
  0x3f   :  { %292 = vrot.lane.b32.xlu0 %v290_v43, %s2294_s10  ;;  %s2307_s18 = smov 32   ;;  %s2308_s20 = smov 36   ;;  %vm826_vm15 = vcmask 58400   ;;  %vm847_vm2 = vcmask 156800  }
  0x40   :  { %s2309_s21 = smov 40   ;;  %s2310_s1 = smov 44  }
  0x41   :  { %s2311_s22 = smov 48   ;;  %s2312_s23 = smov 52  }
  0x42   :  { %298 = vrot.lane.b32.xlu1 %v296_v44, %s2293_s9  ;;  %s2313_s25 = smov 56   ;;  %s2314_s27 = smov 60  }
  0x43   :  { %248 = vrot.lane.b32.xlu0 %v246_v45, %s2293_s9  ;;  %v470_v45 = vld [vmem:[%s3400_s0 + $0x60] sm:$0x3f]  ;;  %s2316_s28 = smov 68   ;;  %s2317_s30 = smov 72  }
  0x44   :  { %s2318_s11 = smov 76   ;;  %s2320_s13 = smov 84  }
  0x45   :  { %s2321_s15 = smov 88   ;;  %s2322_s16 = smov 92  }
  0x46   :  { %254 = vrot.lane.b32.xlu1 %v252_v46, %s2295_s19  ;;  %v520_v46 = vld [vmem:[%s3400_s0 + $0x68] sm:$0x3f] }
  0x47   :  { %228 = vrot.lane.b32.xlu0 %v226_v47, %s2300_s12 }
  0x4a   :  { %234 = vrot.lane.b32.xlu1 %v232_v48, %s2303_s26 }
  0x4b   :  { %304 = vrot.lane.b32.xlu0 %v302_v49, %s2295_s19  ;;  %v476_v49 = vld [vmem:[%s3400_s0 + $0x61] sm:$0x3f] }
  0x4e   :  { %310 = vrot.lane.b32.xlu1 %v308_v51, %s2296_s24 }
  0x4f   :  { %260 = vrot.lane.b32.xlu0 %v258_v52, %s2296_s24 }
  0x52   :  { %316 = vrot.lane.b32.xlu1 %v314_v53, %s2297_s29  ;;  %v540_v53 = vld [vmem:[%s3400_s0 + $0x61] sm:$0x3f] }
  0x53   :  { %266 = vrot.lane.b32.xlu0 %v264_v54, %s2297_s29  ;;  %v482_v54 = vld [vmem:[%s3400_s0 + $0x62] sm:$0x3f] }
  0x56   :  { %272 = vrot.lane.b32.xlu1 %v270_v55, %s2298_s14 }
  0x57   :  { %342 = vrot.lane.b32.xlu0 %v340_v56, %s2294_s10 }
  0x5a   :  { %348 = vrot.lane.b32.xlu1 %v346_v57, %s2293_s9  ;;  %v532_v57 = vld [vmem:[%s3400_s0 + $0x6a] sm:$0x3f] }
  0x5b   :  { %322 = vrot.lane.b32.xlu0 %v320_v58, %s2298_s14  ;;  %v546_v58 = vld [vmem:[%s3400_s0 + $0x62] sm:$0x3f] }
  0x5e   :  { %328 = vrot.lane.b32.xlu1 %v326_v60, %s2300_s12 }
  0x5f   :  { %278 = vrot.lane.b32.xlu0 %v276_v61, %s2300_s12 }
  0x62   :  { %284 = vrot.lane.b32.xlu1 %v282_v62, %s2303_s26  ;;  %v588_v62 = vld [vmem:[%s3400_s0 + $0x68] sm:$0x3f] }
  0x63   :  { %354 = vrot.lane.b32.xlu0 %v352_v63, %s2295_s19  ;;  %v552_v63 = vld [vmem:[%s3400_s0 + $0x68] sm:$0x3f]  ;;  %589 = vst.msk [vmem:[#allocation3 + $0x42] sm:$0x3f] %vm30_vm0, %v588_v62  ;;  %vm833_vm0 = vcmask 91200  }
  0x66   :  { %360 = vrot.lane.b32.xlu1 %v358_v0, %s2296_s24  ;;  %v558_v0 = vld [vmem:[%s3400_s0 + $0x69] sm:$0x3f] }
  0x67   :  { %334 = vrot.lane.b32.xlu0 %v332_v1, %s2303_s26 }
  0x6a   :  { %392 = vrot.lane.b32.xlu1 %v390_v2, %s2294_s10 }
  0x6b   :  { %366 = vrot.lane.b32.xlu0 %v364_v3, %s2297_s29  ;;  %v564_v3 = vld [vmem:[%s3400_s0 + $0x6a] sm:$0x3f] }
  0x6e   :  { %398 = vrot.lane.b32.xlu1 %v396_v5, %s2293_s9 }
  0x6f   :  { %372 = vrot.lane.b32.xlu0 %v370_v6, %s2298_s14 }
  0x72   :  { %404 = vrot.lane.b32.xlu1 %v402_v7, %s2295_s19  ;;  %v576_v7 = vld [vmem:[%s3400_s0 + $0x71] sm:$0x3f] }
  0x73   :  { %378 = vrot.lane.b32.xlu0 %v376_v8, %s2300_s12  ;;  %v582_v8 = vld [vmem:[%s3400_s0 + $0x72] sm:$0x3f] }
  0x74   :  { %v42_v12 = vpop.permute.xlu1 %41 }
  0x75   :  { %v35_v13 = vpop.permute.xlu0 %34 }
  0x76   :  { %38 = vst.msk [vmem:[#allocation3] sm:$0x3f] %vm37_vm3, %v35_v13  ;;  %410 = vrot.lane.b32.xlu1 %v408_v10, %s2296_s24 }
  0x77   :  { %384 = vrot.lane.b32.xlu0 %v382_v11, %s2303_s26  ;;  %45 = vst.msk [vmem:[#allocation3] sm:$0x3f] %vm44_vm4, %v42_v12  ;;  %v590_v11 = vld [vmem:[%s3400_s0 + $0x69] sm:$0x3f] }
  0x78   :  { %v99_v16 = vpop.permute.xlu1 %98  ;;  %v596_v12 = vld [vmem:[%s3400_s0 + $0x6a] sm:$0x3f] }
  0x79   :  { %v93_v17 = vpop.permute.xlu0 %92 }
  0x7a   :  { %95 = vst.msk [vmem:[#allocation3 + $0x6] sm:$0x3f] %vm37_vm3, %v93_v17  ;;  %442 = vrot.lane.b32.xlu1 %v440_v14, %s2294_s10  ;;  %v608_v17 = vld [vmem:[%s3400_s0 + $0x71] sm:$0x3f] }
  0x7b   :  { %416 = vrot.lane.b32.xlu0 %v414_v15, %s2297_s29  ;;  %101 = vst.msk [vmem:[#allocation3 + $0x6] sm:$0x3f] %vm44_vm4, %v99_v16  ;;  %v602_v16 = vld [vmem:[%s3400_s0 + $0x70] sm:$0x3f] }
  0x7c   :  { %v105_v21 = vpop.permute.xlu1 %104 }
  0x7d   :  { %v49_v22 = vpop.permute.xlu0 %48  ;;  %107 = vst.msk [vmem:[#allocation3 + $0x6] sm:$0x3f] %vm51_vm5, %v105_v21  ;;  %v614_v21 = vld [vmem:[%s3400_s0 + $0x72] sm:$0x3f] }
  0x7e   :  { %52 = vst.msk [vmem:[#allocation3] sm:$0x3f] %vm51_vm5, %v49_v22  ;;  %422 = vrot.lane.b32.xlu1 %v420_v18, %s2298_s14  ;;  %v620_v22 = vld [vmem:[%s3400_s0 + $0x78] sm:$0x3f] }
  0x7f   :  { %492 = vrot.lane.b32.xlu0 %v490_v20, %s2294_s10 }
  0x80   :  { %v111_v25 = vpop.permute.xlu1 %110 }
  0x81   :  { %v56_v27 = vpop.permute.xlu0 %55  ;;  %113 = vst.msk [vmem:[#allocation3 + $0x6] sm:$0x3f] %vm58_vm6, %v111_v25  ;;  %v626_v25 = vld [vmem:[%s3400_s0 + $0x79] sm:$0x3f] }
  0x82   :  { %59 = vst.msk [vmem:[#allocation3] sm:$0x3f] %vm58_vm6, %v56_v27  ;;  %498 = vrot.lane.b32.xlu1 %v496_v23, %s2293_s9  ;;  %v632_v27 = vld [vmem:[%s3400_s0 + $0x7a] sm:$0x3f]  ;;  %s2323_s0 = smov 96  }
  0x83   :  { %448 = vrot.lane.b32.xlu0 %v446_v24, %s2293_s9 }
  0x84   :  { %v117_v30 = vpop.permute.xlu1 %116 }
  0x85   :  { %v63_v31 = vpop.permute.xlu0 %62  ;;  %119 = vst.msk [vmem:[#allocation3 + $0x6] sm:$0x3f] %vm65_vm7, %v117_v30 }
  0x86   :  { %66 = vst.msk [vmem:[#allocation3] sm:$0x3f] %vm65_vm7, %v63_v31  ;;  %454 = vrot.lane.b32.xlu1 %v452_v28, %s2295_s19 }
  0x87   :  { %428 = vrot.lane.b32.xlu0 %v426_v29, %s2300_s12 }
  0x88   :  { %v70_v34 = vpop.permute.xlu1 %69 }
  0x89   :  { %v143_v35 = vpop.permute.xlu0 %142  ;;  %73 = vst.msk [vmem:[#allocation3] sm:$0x3f] %vm72_vm8, %v70_v34 }
  0x8a   :  { %145 = vst.msk [vmem:[#allocation3 + $0xc] sm:$0x3f] %vm37_vm3, %v143_v35  ;;  %434 = vrot.lane.b32.xlu1 %v432_v32, %s2303_s26 }
  0x8b   :  { %504 = vrot.lane.b32.xlu0 %v502_v33, %s2295_s19 }
  0x8c   :  { %v149_v38 = vpop.permute.xlu1 %148 }
  0x8d   :  { %v123_v39 = vpop.permute.xlu0 %122  ;;  %151 = vst.msk [vmem:[#allocation3 + $0xc] sm:$0x3f] %vm44_vm4, %v149_v38 }
  0x8e   :  { %125 = vst.msk [vmem:[#allocation3 + $0x6] sm:$0x3f] %vm72_vm8, %v123_v39  ;;  %510 = vrot.lane.b32.xlu1 %v508_v37, %s2296_s24 }
  0x8f   :  { %460 = vrot.lane.b32.xlu0 %v458_v36, %s2296_s24 }
  0x90   :  { %v129_v43 = vpop.permute.xlu1 %128 }
  0x91   :  { %v77_v44 = vpop.permute.xlu0 %76  ;;  %131 = vst.msk [vmem:[#allocation3 + $0x6] sm:$0x3f] %vm79_vm9, %v129_v43 }
  0x92   :  { %80 = vst.msk [vmem:[#allocation3] sm:$0x3f] %vm79_vm9, %v77_v44  ;;  %516 = vrot.lane.b32.xlu1 %v514_v42, %s2297_s29 }
  0x93   :  { %466 = vrot.lane.b32.xlu0 %v464_v41, %s2297_s29 }
  0x94   :  { %v84_v47 = vpop.permute.xlu1 %83 }
  0x95   :  { %v155_v48 = vpop.permute.xlu0 %154  ;;  %87 = vst.msk [vmem:[#allocation3] sm:$0x3f] %vm86_vm10, %v84_v47 }
  0x96   :  { %157 = vst.msk [vmem:[#allocation3 + $0xc] sm:$0x3f] %vm51_vm5, %v155_v48  ;;  %522 = vrot.lane.b32.xlu1 %v520_v46, %s2298_s14 }
  0x97   :  { %472 = vrot.lane.b32.xlu0 %v470_v45, %s2298_s14 }
  0x98   :  { %v161_v51 = vpop.permute.xlu1 %160 }
  0x99   :  { %v135_v52 = vpop.permute.xlu0 %134  ;;  %163 = vst.msk [vmem:[#allocation3 + $0xc] sm:$0x3f] %vm58_vm6, %v161_v51 }
  0x9a   :  { %137 = vst.msk [vmem:[#allocation3 + $0x6] sm:$0x3f] %vm86_vm10, %v135_v52  ;;  %528 = vrot.lane.b32.xlu1 %v526_v50, %s2300_s12 }
  0x9b   :  { %478 = vrot.lane.b32.xlu0 %v476_v49, %s2300_s12 }
  0x9c   :  { %v193_v55 = vpop.permute.xlu1 %192 }
  0x9d   :  { %v167_v56 = vpop.permute.xlu0 %166  ;;  %195 = vst.msk [vmem:[#allocation3 + $0x12] sm:$0x3f] %vm37_vm3, %v193_v55 }
  0x9e   :  { %169 = vst.msk [vmem:[#allocation3 + $0xc] sm:$0x3f] %vm65_vm7, %v167_v56  ;;  %484 = vrot.lane.b32.xlu1 %v482_v54, %s2303_s26 }
  0x9f   :  { %542 = vrot.lane.b32.xlu0 %v540_v53, %s2294_s10 }
  0xa0   :  { %v199_v59 = vpop.permute.xlu1 %198 }
  0xa1   :  { %v173_v60 = vpop.permute.xlu0 %172  ;;  %v638_v61 = vld [vmem:[#allocation3] sm:$0xff]  ;;  %201 = vst.msk [vmem:[#allocation3 + $0x12] sm:$0x3f] %vm44_vm4, %v199_v59 }
  0xa2   :  { %175 = vst.msk [vmem:[#allocation3 + $0xc] sm:$0x3f] %vm72_vm8, %v173_v60  ;;  %2137 = vmatmul.mubr.msk.f32.vlgmr.msra.gmra.mrb[0].mxu0 %vm657_vm11, %v638_v61  ;;  %548 = vrot.lane.b32.xlu1 %v546_v58, %s2293_s9 }
  0xa3   :  { %534 = vrot.lane.b32.xlu0 %v532_v57, %s2303_s26  ;;  %2139 = vmatprep.mubr.msk.f32.mxu0 %vm2301_vm1, %v2302_v26 }
  0xa4   :  { %v205_v1 = vpop.permute.xlu1 %204 }
  0xa5   :  { %v179_v2 = vpop.permute.xlu0 %178  ;;  %207 = vst.msk [vmem:[#allocation3 + $0x12] sm:$0x3f] %vm51_vm5, %v205_v1 }
  0xa6   :  { %181 = vst.msk [vmem:[#allocation3 + $0xc] sm:$0x3f] %vm79_vm9, %v179_v2  ;;  %560 = vrot.lane.b32.xlu1 %v558_v0, %s2296_s24 }
  0xa7   :  { %554 = vrot.lane.b32.xlu0 %v552_v63, %s2295_s19 }
  0xa8   :  { %v211_v5 = vpop.permute.xlu1 %210 }
  0xa9   :  { %v185_v6 = vpop.permute.xlu0 %184  ;;  %213 = vst.msk [vmem:[#allocation3 + $0x12] sm:$0x3f] %vm58_vm6, %v211_v5 }
  0xaa   :  { %187 = vst.msk [vmem:[#allocation3 + $0xc] sm:$0x3f] %vm86_vm10, %v185_v6  ;;  %572 = vrot.lane.b32.xlu1 %v570_v4, %s2298_s14 }
  0xab   :  { %566 = vrot.lane.b32.xlu0 %v564_v3, %s2297_s29 }
  0xac   :  { %v243_v9 = vpop.permute.xlu1 %242 }
  0xad   :  { %v217_v10 = vpop.permute.xlu0 %216  ;;  %245 = vst.msk [vmem:[#allocation3 + $0x18] sm:$0x3f] %vm37_vm3, %v243_v9 }
  0xae   :  { %219 = vst.msk [vmem:[#allocation3 + $0x12] sm:$0x3f] %vm65_vm7, %v217_v10  ;;  %584 = vrot.lane.b32.xlu1 %v582_v8, %s2303_s26 }
  0xaf   :  { %578 = vrot.lane.b32.xlu0 %v576_v7, %s2300_s12 }
  0xb0   :  { %v223_v13 = vpop.permute.xlu1 %222 }
  0xb1   :  { %v293_v14 = vpop.permute.xlu0 %292  ;;  %v639_v15 = vld [vmem:[#allocation3 + $0x8] sm:$0xff]  ;;  %225 = vst.msk [vmem:[#allocation3 + $0x12] sm:$0x3f] %vm72_vm8, %v223_v13 }
  0xb2   :  { %295 = vst.msk [vmem:[#allocation3 + $0x1e] sm:$0x3f] %vm37_vm3, %v293_v14  ;;  %2140 = vmatmul.mubr.msk.f32.gmra.mrb[2].mxu0 %vm657_vm11, %v639_v15  ;;  %598 = vrot.lane.b32.xlu1 %v596_v12, %s2293_s9 }
  0xb3   :  { %592 = vrot.lane.b32.xlu0 %v590_v11, %s2294_s10  ;;  %2142 = vmatprep.mubr.msk.f32.mxu0 %vm2301_vm1, %v2302_v26  ;;  %s2315_s10 = smov 64  }
  0xb4   :  { %v299_v18 = vpop.permute.xlu1 %298 }
  0xb5   :  { %v249_v20 = vpop.permute.xlu0 %248  ;;  %301 = vst.msk [vmem:[#allocation3 + $0x1e] sm:$0x3f] %vm44_vm4, %v299_v18 }
  0xb6   :  { %251 = vst.msk [vmem:[#allocation3 + $0x18] sm:$0x3f] %vm44_vm4, %v249_v20  ;;  %610 = vrot.lane.b32.xlu1 %v608_v17, %s2296_s24 }
  0xb7   :  { %604 = vrot.lane.b32.xlu0 %v602_v16, %s2295_s19  ;;  %s2319_s19 = smov 80  }
  0xb8   :  { %v255_v23 = vpop.permute.xlu1 %254 }
  0xb9   :  { %v229_v24 = vpop.permute.xlu0 %228  ;;  %257 = vst.msk [vmem:[#allocation3 + $0x18] sm:$0x3f] %vm51_vm5, %v255_v23 }
  0xba   :  { %231 = vst.msk [vmem:[#allocation3 + $0x12] sm:$0x3f] %vm79_vm9, %v229_v24  ;;  %622 = vrot.lane.b32.xlu1 %v620_v22, %s2298_s14 }
  0xbb   :  { %616 = vrot.lane.b32.xlu0 %v614_v21, %s2297_s29 }
  0xbc   :  { %v235_v28 = vpop.permute.xlu1 %234 }
  0xbd   :  { %v305_v29 = vpop.permute.xlu0 %304  ;;  %237 = vst.msk [vmem:[#allocation3 + $0x12] sm:$0x3f] %vm86_vm10, %v235_v28 }
  0xbe   :  { %307 = vst.msk [vmem:[#allocation3 + $0x1e] sm:$0x3f] %vm51_vm5, %v305_v29  ;;  %634 = vrot.lane.b32.xlu1 %v632_v27, %s2303_s26 }
  0xbf   :  { %628 = vrot.lane.b32.xlu0 %v626_v25, %s2300_s12  ;;  %s2305_s12 = smov 24  }
  0xc0   :  { %v311_v30 = vpop.permute.xlu1 %310 }
  0xc1   :  { %v261_v31 = vpop.permute.xlu0 %260  ;;  %313 = vst.msk [vmem:[#allocation3 + $0x1e] sm:$0x3f] %vm58_vm6, %v311_v30 }
  0xc2   :  { %263 = vst.msk [vmem:[#allocation3 + $0x18] sm:$0x3f] %vm58_vm6, %v261_v31 }
  0xc4   :  { %v317_v32 = vpop.permute.xlu1 %316  ;;  %v640_v34 = vld [vmem:[#allocation3 + $0x10] sm:$0xff] }
  0xc5   :  { %v267_v33 = vpop.permute.xlu0 %266  ;;  %319 = vst.msk [vmem:[#allocation3 + $0x1e] sm:$0x3f] %vm65_vm7, %v317_v32  ;;  %2143 = vmatmul.mubr.msk.f32.gmra.mrb[4].mxu0 %vm657_vm11, %v640_v34 }
  0xc6   :  { %269 = vst.msk [vmem:[#allocation3 + $0x18] sm:$0x3f] %vm65_vm7, %v267_v33  ;;  %2145 = vmatprep.mubr.msk.f32.mxu0 %vm2301_vm1, %v2302_v26  ;;  %v2942_v33 = vld [vmem:[%s3402_s2] ss:$0 sm:$0xff]  ;;  %s2304_s2 = smov 20  }
  0xc8   :  { %v273_v35 = vpop.permute.xlu1 %272 }
  0xc9   :  { %v343_v36 = vpop.permute.xlu0 %342  ;;  %275 = vst.msk [vmem:[#allocation3 + $0x18] sm:$0x3f] %vm72_vm8, %v273_v35 }
  0xca   :  { %345 = vst.msk [vmem:[#allocation3 + $0x24] sm:$0x3f] %vm37_vm3, %v343_v36 }
  0xcc   :  { %v349_v37 = vpop.permute.xlu1 %348 }
  0xcd   :  { %v323_v38 = vpop.permute.xlu0 %322  ;;  %351 = vst.msk [vmem:[#allocation3 + $0x24] sm:$0x3f] %vm44_vm4, %v349_v37 }
  0xce   :  { %325 = vst.msk [vmem:[#allocation3 + $0x1e] sm:$0x3f] %vm72_vm8, %v323_v38 }
  0xd0   :  { %v329_v39 = vpop.permute.xlu1 %328 }
  0xd1   :  { %v279_v40 = vpop.permute.xlu0 %278  ;;  %331 = vst.msk [vmem:[#allocation3 + $0x1e] sm:$0x3f] %vm79_vm9, %v329_v39 }
  0xd2   :  { %281 = vst.msk [vmem:[#allocation3 + $0x18] sm:$0x3f] %vm79_vm9, %v279_v40 }
  0xd4   :  { %v285_v41 = vpop.permute.xlu1 %284 }
  0xd5   :  { %v355_v42 = vpop.permute.xlu0 %354  ;;  %287 = vst.msk [vmem:[#allocation3 + $0x18] sm:$0x3f] %vm86_vm10, %v285_v41 }
  0xd6   :  { %357 = vst.msk [vmem:[#allocation3 + $0x24] sm:$0x3f] %vm51_vm5, %v355_v42 }
  0xd8   :  { %v361_v43 = vpop.permute.xlu1 %360 }
  0xd9   :  { %v335_v44 = vpop.permute.xlu0 %334  ;;  %363 = vst.msk [vmem:[#allocation3 + $0x24] sm:$0x3f] %vm58_vm6, %v361_v43 }
  0xda   :  { %337 = vst.msk [vmem:[#allocation3 + $0x1e] sm:$0x3f] %vm86_vm10, %v335_v44 }
  0xdc   :  { %v393_v45 = vpop.permute.xlu1 %392 }
  0xdd   :  { %v367_v46 = vpop.permute.xlu0 %366  ;;  %395 = vst.msk [vmem:[#allocation3 + $0x2a] sm:$0x3f] %vm37_vm3, %v393_v45 }
  0xde   :  { %369 = vst.msk [vmem:[#allocation3 + $0x24] sm:$0x3f] %vm65_vm7, %v367_v46 }
  0xe0   :  { %v399_v47 = vpop.permute.xlu1 %398 }
  0xe1   :  { %v373_v48 = vpop.permute.xlu0 %372  ;;  %v641_v49 = vld [vmem:[#allocation3 + $0x18] sm:$0xff]  ;;  %401 = vst.msk [vmem:[#allocation3 + $0x2a] sm:$0x3f] %vm44_vm4, %v399_v47 }
  0xe2   :  { %375 = vst.msk [vmem:[#allocation3 + $0x24] sm:$0x3f] %vm72_vm8, %v373_v48  ;;  %2146 = vmatmul.mubr.msk.f32.gmra.mrb[6].mxu0 %vm657_vm11, %v641_v49 }
  0xe3   :  { %2148 = vmatprep.mubr.msk.f32.mxu0 %vm2301_vm1, %v2302_v26 }
  0xe4   :  { %v405_v50 = vpop.permute.xlu1 %404 }
  0xe5   :  { %v379_v51 = vpop.permute.xlu0 %378  ;;  %407 = vst.msk [vmem:[#allocation3 + $0x2a] sm:$0x3f] %vm51_vm5, %v405_v50 }
  0xe6   :  { %381 = vst.msk [vmem:[#allocation3 + $0x24] sm:$0x3f] %vm79_vm9, %v379_v51 }
  0xe8   :  { %v411_v52 = vpop.permute.xlu1 %410 }
  0xe9   :  { %v385_v53 = vpop.permute.xlu0 %384  ;;  %413 = vst.msk [vmem:[#allocation3 + $0x2a] sm:$0x3f] %vm58_vm6, %v411_v52 }
  0xea   :  { %387 = vst.msk [vmem:[#allocation3 + $0x24] sm:$0x3f] %vm86_vm10, %v385_v53 }
  0xec   :  { %v443_v54 = vpop.permute.xlu1 %442 }
  0xed   :  { %v417_v55 = vpop.permute.xlu0 %416  ;;  %445 = vst.msk [vmem:[#allocation3 + $0x30] sm:$0x3f] %vm37_vm3, %v443_v54 }
  0xee   :  { %419 = vst.msk [vmem:[#allocation3 + $0x2a] sm:$0x3f] %vm65_vm7, %v417_v55 }
  0xf0   :  { %v423_v56 = vpop.permute.xlu1 %422 }
  0xf1   :  { %v493_v57 = vpop.permute.xlu0 %492  ;;  %v642_v58 = vld [vmem:[#allocation3 + $0x20] sm:$0xff]  ;;  %425 = vst.msk [vmem:[#allocation3 + $0x2a] sm:$0x3f] %vm72_vm8, %v423_v56 }
  0xf2   :  { %495 = vst.msk [vmem:[#allocation3 + $0x36] sm:$0x3f] %vm37_vm3, %v493_v57  ;;  %2149 = vmatmul.mubr.msk.f32.gmra.mrb[8].mxu0 %vm657_vm11, %v642_v58 }
  0xf3   :  { %2151 = vmatprep.mubr.msk.f32.mxu0 %vm2301_vm1, %v2302_v26 }
  0xf4   :  { %v499_v59 = vpop.permute.xlu1 %498 }
  0xf5   :  { %v449_v60 = vpop.permute.xlu0 %448  ;;  %501 = vst.msk [vmem:[#allocation3 + $0x36] sm:$0x3f] %vm44_vm4, %v499_v59 }
  0xf6   :  { %451 = vst.msk [vmem:[#allocation3 + $0x30] sm:$0x3f] %vm44_vm4, %v449_v60 }
  0xf8   :  { %v455_v61 = vpop.permute.xlu1 %454 }
  0xf9   :  { %v429_v62 = vpop.permute.xlu0 %428  ;;  %457 = vst.msk [vmem:[#allocation3 + $0x30] sm:$0x3f] %vm51_vm5, %v455_v61 }
  0xfa   :  { %431 = vst.msk [vmem:[#allocation3 + $0x2a] sm:$0x3f] %vm79_vm9, %v429_v62 }
  0xfc   :  { %v435_v63 = vpop.permute.xlu1 %434 }
  0xfd   :  { %v505_v0 = vpop.permute.xlu0 %504  ;;  %437 = vst.msk [vmem:[#allocation3 + $0x2a] sm:$0x3f] %vm86_vm10, %v435_v63 }
  0xfe   :  { %507 = vst.msk [vmem:[#allocation3 + $0x36] sm:$0x3f] %vm51_vm5, %v505_v0 }
 0x100   :  { %v511_v2 = vpop.permute.xlu1 %510 }
 0x101   :  { %v461_v1 = vpop.permute.xlu0 %460  ;;  %513 = vst.msk [vmem:[#allocation3 + $0x36] sm:$0x3f] %vm58_vm6, %v511_v2 }
 0x102   :  { %463 = vst.msk [vmem:[#allocation3 + $0x30] sm:$0x3f] %vm58_vm6, %v461_v1 }
 0x104   :  { %v517_v4 = vpop.permute.xlu1 %516  ;;  %v643_v5 = vld [vmem:[#allocation3 + $0x28] sm:$0xff] }
 0x105   :  { %v467_v3 = vpop.permute.xlu0 %466  ;;  %519 = vst.msk [vmem:[#allocation3 + $0x36] sm:$0x3f] %vm65_vm7, %v517_v4  ;;  %2152 = vmatmul.mubr.msk.f32.gmra.mrb[10].mxu0 %vm657_vm11, %v643_v5 }
 0x106   :  { %469 = vst.msk [vmem:[#allocation3 + $0x30] sm:$0x3f] %vm65_vm7, %v467_v3  ;;  %2154 = vmatprep.mubr.msk.f32.mxu0 %vm2301_vm1, %v2302_v26 }
 0x108   :  { %v523_v7 = vpop.permute.xlu1 %522 }
 0x109   :  { %v473_v6 = vpop.permute.xlu0 %472  ;;  %525 = vst.msk [vmem:[#allocation3 + $0x36] sm:$0x3f] %vm72_vm8, %v523_v7 }
 0x10a   :  { %475 = vst.msk [vmem:[#allocation3 + $0x30] sm:$0x3f] %vm72_vm8, %v473_v6 }
 0x10c   :  { %v529_v9 = vpop.permute.xlu1 %528 }
 0x10d   :  { %v479_v8 = vpop.permute.xlu0 %478  ;;  %531 = vst.msk [vmem:[#allocation3 + $0x36] sm:$0x3f] %vm79_vm9, %v529_v9 }
 0x10e   :  { %481 = vst.msk [vmem:[#allocation3 + $0x30] sm:$0x3f] %vm79_vm9, %v479_v8 }
 0x110   :  { %v485_v11 = vpop.permute.xlu1 %484 }
 0x111   :  { %v543_v10 = vpop.permute.xlu0 %542  ;;  %487 = vst.msk [vmem:[#allocation3 + $0x30] sm:$0x3f] %vm86_vm10, %v485_v11 }
 0x112   :  { %545 = vst.msk [vmem:[#allocation3 + $0x3c] sm:$0x3f] %vm37_vm3, %v543_v10 }
 0x114   :  { %v549_v13 = vpop.permute.xlu1 %548 }
 0x115   :  { %v535_v12 = vpop.permute.xlu0 %534  ;;  %551 = vst.msk [vmem:[#allocation3 + $0x3c] sm:$0x3f] %vm44_vm4, %v549_v13 }
 0x116   :  { %537 = vst.msk [vmem:[#allocation3 + $0x36] sm:$0x3f] %vm86_vm10, %v535_v12 }
 0x118   :  { %v561_v15 = vpop.permute.xlu1 %560 }
 0x119   :  { %v555_v14 = vpop.permute.xlu0 %554 }
 0x11a   :  { %557 = vst.msk [vmem:[#allocation3 + $0x3c] sm:$0x3f] %vm51_vm5, %v555_v14 }
 0x11b   :  { %563 = vst.msk [vmem:[#allocation3 + $0x3c] sm:$0x3f] %vm58_vm6, %v561_v15 }
 0x11c   :  { %v573_v17 = vpop.permute.xlu1 %572 }
 0x11d   :  { %v567_v16 = vpop.permute.xlu0 %566  ;;  %v644_v18 = vld [vmem:[#allocation3 + $0x30] sm:$0xff] }
 0x11e   :  { %569 = vst.msk [vmem:[#allocation3 + $0x3c] sm:$0x3f] %vm65_vm7, %v567_v16  ;;  %2155 = vmatmul.mubr.msk.f32.gmra.mrb[12].mxu0 %vm657_vm11, %v644_v18 }
 0x11f   :  { %575 = vst.msk [vmem:[#allocation3 + $0x3c] sm:$0x3f] %vm72_vm8, %v573_v17  ;;  %2157 = vmatprep.mubr.msk.f32.mxu0 %vm2301_vm1, %v2302_v26 }
 0x120   :  { %v585_v21 = vpop.permute.xlu1 %584 }
 0x121   :  { %v579_v20 = vpop.permute.xlu0 %578 }
 0x122   :  { %581 = vst.msk [vmem:[#allocation3 + $0x3c] sm:$0x3f] %vm79_vm9, %v579_v20 }
 0x123   :  { %587 = vst.msk [vmem:[#allocation3 + $0x3c] sm:$0x3f] %vm86_vm10, %v585_v21 }
 0x124   :  { %v599_v23 = vpop.permute.xlu1 %598 }
 0x125   :  { %v593_v22 = vpop.permute.xlu0 %592 }
 0x126   :  { %595 = vst.msk [vmem:[#allocation3 + $0x42] sm:$0x3f] %vm37_vm3, %v593_v22  ;;  %vm854_vm3 = vcmask 189600  }
 0x127   :  { %601 = vst.msk [vmem:[#allocation3 + $0x42] sm:$0x3f] %vm44_vm4, %v599_v23  ;;  %vm3410_vm4 = vcmask 60448  }
 0x128   :  { %v611_v25 = vpop.permute.xlu1 %610 }
 0x129   :  { %v605_v24 = vpop.permute.xlu0 %604 }
 0x12a   :  { %607 = vst.msk [vmem:[#allocation3 + $0x42] sm:$0x3f] %vm51_vm5, %v605_v24  ;;  %v645_v27 = vld [vmem:[#allocation3 + $0x38] sm:$0xff]  ;;  %vm861_vm5 = vcmask 222400  }
 0x12b   :  { %613 = vst.msk [vmem:[#allocation3 + $0x42] sm:$0x3f] %vm58_vm6, %v611_v25  ;;  %2158 = vmatmul.mubr.msk.f32.gmra.mrb[14].mxu0 %vm657_vm11, %v645_v27  ;;  %vm868_vm6 = vcmask 255200  }
 0x12c   :  { %2160 = vmatprep.mubr.msk.f32.mxu0 %vm2301_vm1, %v2302_v26  ;;  %v623_v29 = vpop.permute.xlu1 %622  ;;  %vm840_vm1 = vcmask 124000  }
 0x12d   :  { %v617_v28 = vpop.permute.xlu0 %616 }
 0x12e   :  { %619 = vst.msk [vmem:[#allocation3 + $0x42] sm:$0x3f] %vm65_vm7, %v617_v28  ;;  %vm875_vm7 = vcmask 288000  }
 0x12f   :  { %625 = vst.msk [vmem:[#allocation3 + $0x42] sm:$0x3f] %vm72_vm8, %v623_v29  ;;  %vm882_vm8 = vcmask 320800  }
 0x130   :  { %v635_v31 = vpop.permute.xlu1 %634 }
 0x131   :  { %v629_v30 = vpop.permute.xlu0 %628 }
 0x132   :  { %631 = vst.msk [vmem:[#allocation3 + $0x42] sm:$0x3f] %vm79_vm9, %v629_v30  ;;  %vm889_vm9 = vcmask 353600  }
 0x133   :  { %637 = vst.msk [vmem:[#allocation3 + $0x42] sm:$0x3f] %vm86_vm10, %v635_v31  ;;  %vm3416_vm10 = vcmask 386400  }
 0x13a   :  { %v646_v32 = vld [vmem:[#allocation3 + $0x40] sm:$0xff] }
 0x13b   :  { %2161 = vmatmul.mubr.msk.f32.gmra.mrb[16].mxu0 %vm657_vm11, %v646_v32  ;;  %vm3411_vm11 = vcmask 419200  }
 0x175   :  { %v755_v34 = vpop.f32.mrb[0].mxu0 }
 0x176   :  { %v756_v35 = vadd.f32 %v2942_v33, %v755_v34  ;;  %v2138_v36 = vpop.f32.mrb[1].mxu0 }
 0x178   :  { %v799_v37 = vmax.f32 %v756_v35, 0.0 }
 0x17a   :  { %809 = vst.msk [vmem:[#allocation2] sm:$0xff] %vm3409_vm12, %v799_v37 }
 0x181   :  { %v828_v38 = vld [vmem:[#allocation2 + $0x2] sm:$0x3]  ;;  %v818_v40 = vld [vmem:[#allocation2] sm:$0x3]  ;;  %v989_v42 = vld [vmem:[#allocation2 + $0x6] sm:$0x3] }
 0x182   :  { %v821_v39 = vld [vmem:[#allocation2 + $0x1] sm:$0x3]  ;;  %830 = vrot.lane.b32.xlu1 %v828_v38, %s2296_s24  ;;  %820 = vst.msk [vmem:[#allocation4] sm:$0x3] %vm819_vm13, %v818_v40  ;;  %v835_v44 = vld [vmem:[#allocation2 + $0x3] sm:$0x3] }
 0x183   :  { %823 = vrot.lane.b32.xlu0 %v821_v39, %s2293_s9  ;;  %v1527_v41 = vld [vmem:[#allocation2] sm:$0xf]  ;;  %990 = vst.msk [vmem:[#allocation4 + $0x2] sm:$0x3] %vm819_vm13, %v989_v42  ;;  %v842_v48 = vld [vmem:[#allocation2 + $0x4] sm:$0x3] }
 0x184   :  { %1529 = vst.msk [vmem:[#allocation5] sm:$0xf] %vm1528_vm14, %v1527_v41  ;;  %v849_v49 = vld [vmem:[#allocation2 + $0x6] sm:$0x3]  ;;  %v1530_v50 = vld [vmem:[#allocation2 + $0x1] sm:$0xf] }
 0x185   :  { %v760_v43 = vpop.f32.mrb[2].mxu0 }
 0x186   :  { %v761_v45 = vadd.f32 %v2942_v33, %v760_v43  ;;  %v2141_v46 = vpop.f32.mrb[3].mxu0 }
 0x187   :  { %837 = vrot.lane.b32.xlu0 %v835_v44, %s2298_s14 }
 0x188   :  { %v800_v47 = vmax.f32 %v761_v45, 0.0 }
 0x18a   :  { %810 = vst.msk [vmem:[#allocation2 + $0x8] sm:$0xff] %vm3409_vm12, %v800_v47 }
 0x18b   :  { %844 = vrot.lane.b32.xlu0 %v842_v48, %s2303_s26 }
 0x18f   :  { %851 = vrot.lane.b32.xlu0 %v849_v49, %s2304_s2 }
 0x191   :  { %v997_v51 = vld [vmem:[#allocation2 + $0x8] sm:$0x3]  ;;  %v1636_v55 = vld [vmem:[#allocation2 + $0xc] sm:$0xf]  ;;  %v1009_v57 = vld [vmem:[#allocation2 + $0xa] sm:$0x3] }
 0x192   :  { %999 = vrot.lane.b32.xlu1 %v997_v51, %s2296_s24  ;;  %v1003_v52 = vld [vmem:[#allocation2 + $0x9] sm:$0x3]  ;;  %v991_v53 = vld [vmem:[#allocation2 + $0x7] sm:$0x3]  ;;  %1637 = vst.msk [vmem:[#allocation5 + $0x8] sm:$0xf] %vm1528_vm14, %v1636_v55 }
 0x193   :  { %1532 = vrot.lane.b32.xlu0 %v1530_v50, %s2293_s9  ;;  %v1586_v54 = vld [vmem:[#allocation2 + $0x6] sm:$0xf]  ;;  %v1015_v62 = vld [vmem:[#allocation2 + $0xc] sm:$0x3]  ;;  %v1027_v2 = vld [vmem:[#allocation2 + $0xe] sm:$0x3] }
 0x194   :  { %1587 = vst.msk [vmem:[#allocation5 + $0x4] sm:$0xf] %vm1528_vm14, %v1586_v54  ;;  %v856_v58 = vld [vmem:[#allocation2 + $0x7] sm:$0x3]  ;;  %v1021_v0 = vld [vmem:[#allocation2 + $0xd] sm:$0x3] }
 0x195   :  { %v863_v63 = vld [vmem:[#allocation2 + $0x8] sm:$0x3]  ;;  %v877_v3 = vld [vmem:[#allocation2 + $0xa] sm:$0x3]  ;;  %v884_v5 = vld [vmem:[#allocation2 + $0xc] sm:$0x3] }
 0x196   :  { %1005 = vrot.lane.b32.xlu1 %v1003_v52, %s2298_s14  ;;  %v870_v1 = vld [vmem:[#allocation2 + $0x9] sm:$0x3]  ;;  %v891_v6 = vld [vmem:[#allocation2 + $0xd] sm:$0x3] }
 0x197   :  { %993 = vrot.lane.b32.xlu0 %v991_v53, %s2293_s9  ;;  %v1588_v4 = vld [vmem:[#allocation2 + $0x7] sm:$0xf]  ;;  %v898_v9 = vld [vmem:[#allocation2 + $0xe] sm:$0x3] }
 0x198   :  { %v765_v56 = vpop.f32.mrb[4].mxu0 }
 0x199   :  { %v766_v59 = vadd.f32 %v2942_v33, %v765_v56  ;;  %v2144_v60 = vpop.f32.mrb[5].mxu0 }
 0x19a   :  { %1011 = vrot.lane.b32.xlu1 %v1009_v57, %s2303_s26 }
 0x19b   :  { %858 = vrot.lane.b32.xlu0 %v856_v58, %s2305_s12  ;;  %v801_v61 = vmax.f32 %v766_v59, 0.0 }
 0x19d   :  { %811 = vst.msk [vmem:[#allocation2 + $0x10] sm:$0xff] %vm3409_vm12, %v801_v61 }
 0x19e   :  { %1017 = vrot.lane.b32.xlu1 %v1015_v62, %s2304_s2 }
 0x19f   :  { %865 = vrot.lane.b32.xlu0 %v863_v63, %s2306_s17 }
 0x1a2   :  { %1023 = vrot.lane.b32.xlu1 %v1021_v0, %s2305_s12 }
 0x1a3   :  { %872 = vrot.lane.b32.xlu0 %v870_v1, %s2307_s18 }
 0x1a4   :  { %v1033_v7 = vld [vmem:[#allocation2 + $0xf] sm:$0x3]  ;;  %v1686_v8 = vld [vmem:[#allocation2 + $0x12] sm:$0xf]  ;;  %v1069_v25 = vld [vmem:[#allocation2 + $0x16] sm:$0x3] }
 0x1a5   :  { %1687 = vst.msk [vmem:[#allocation5 + $0xc] sm:$0xf] %vm1528_vm14, %v1686_v8  ;;  %v1039_v10 = vld [vmem:[#allocation2 + $0x10] sm:$0x3]  ;;  %v1045_v11 = vld [vmem:[#allocation2 + $0x12] sm:$0x3] }
 0x1a6   :  { %1029 = vrot.lane.b32.xlu1 %v1027_v2, %s2306_s17  ;;  %v905_v12 = vld [vmem:[#allocation2 + $0xf] sm:$0x3]  ;;  %v1051_v17 = vld [vmem:[#allocation2 + $0x13] sm:$0x3]  ;;  %v1063_v22 = vld [vmem:[#allocation2 + $0x15] sm:$0x3] }
 0x1a7   :  { %879 = vrot.lane.b32.xlu0 %v877_v3, %s2308_s20  ;;  %v912_v18 = vld [vmem:[#allocation2 + $0x10] sm:$0x3]  ;;  %v1057_v20 = vld [vmem:[#allocation2 + $0x14] sm:$0x3]  ;;  %v919_v21 = vld [vmem:[#allocation2 + $0x12] sm:$0x3] }
 0x1a8   :  { %v926_v23 = vld [vmem:[#allocation2 + $0x13] sm:$0x3]  ;;  %v940_v31 = vld [vmem:[#allocation2 + $0x15] sm:$0x3] }
 0x1a9   :  { %v933_v27 = vld [vmem:[#allocation2 + $0x14] sm:$0x3]  ;;  %v947_v34 = vld [vmem:[#allocation2 + $0x16] sm:$0x3] }
 0x1aa   :  { %1590 = vrot.lane.b32.xlu1 %v1588_v4, %s2293_s9 }
 0x1ab   :  { %886 = vrot.lane.b32.xlu0 %v884_v5, %s2309_s21 }
 0x1ae   :  { %1035 = vrot.lane.b32.xlu1 %v1033_v7, %s2307_s18 }
 0x1af   :  { %893 = vrot.lane.b32.xlu0 %v891_v6, %s2310_s1 }
 0x1b2   :  { %1041 = vrot.lane.b32.xlu1 %v1039_v10, %s2308_s20 }
 0x1b3   :  { %900 = vrot.lane.b32.xlu0 %v898_v9, %s2311_s22 }
 0x1b5   :  { %v770_v13 = vpop.f32.mrb[6].mxu0 }
 0x1b6   :  { %1047 = vrot.lane.b32.xlu1 %v1045_v11, %s2309_s21  ;;  %v771_v14 = vadd.f32 %v2942_v33, %v770_v13  ;;  %v2147_v15 = vpop.f32.mrb[7].mxu0 }
 0x1b7   :  { %907 = vrot.lane.b32.xlu0 %v905_v12, %s2312_s23 }
 0x1b8   :  { %v802_v16 = vmax.f32 %v771_v14, 0.0 }
 0x1ba   :  { %812 = vst.msk [vmem:[#allocation2 + $0x18] sm:$0xff] %vm3409_vm12, %v802_v16  ;;  %1053 = vrot.lane.b32.xlu1 %v1051_v17, %s2310_s1 }
 0x1bb   :  { %914 = vrot.lane.b32.xlu0 %v912_v18, %s2313_s25 }
 0x1be   :  { %1059 = vrot.lane.b32.xlu1 %v1057_v20, %s2311_s22 }
 0x1bf   :  { %921 = vrot.lane.b32.xlu0 %v919_v21, %s2314_s27 }
 0x1c1   :  { %v1075_v32 = vld [vmem:[#allocation2 + $0x18] sm:$0x3]  ;;  %v1087_v36 = vld [vmem:[#allocation2 + $0x1a] sm:$0x3]  ;;  %v1099_v43 = vld [vmem:[#allocation2 + $0x1c] sm:$0x3] }
 0x1c2   :  { %1065 = vrot.lane.b32.xlu1 %v1063_v22, %s2312_s23  ;;  %v1081_v35 = vld [vmem:[#allocation2 + $0x19] sm:$0x3]  ;;  %v1093_v40 = vld [vmem:[#allocation2 + $0x1b] sm:$0x3]  ;;  %v1105_v48 = vld [vmem:[#allocation2 + $0x1e] sm:$0x3] }
 0x1c3   :  { %928 = vrot.lane.b32.xlu0 %v926_v23, %s2315_s10  ;;  %v954_v37 = vld [vmem:[#allocation2 + $0x18] sm:$0x3]  ;;  %v968_v44 = vld [vmem:[#allocation2 + $0x1a] sm:$0x3]  ;;  %v982_v50 = vld [vmem:[#allocation2 + $0x1c] sm:$0x3] }
 0x1c4   :  { %v961_v41 = vld [vmem:[#allocation2 + $0x19] sm:$0x3]  ;;  %v975_v49 = vld [vmem:[#allocation2 + $0x1b] sm:$0x3] }
 0x1c5   :  { %v775_v24 = vpop.f32.mrb[8].mxu0 }
 0x1c6   :  { %v776_v28 = vadd.f32 %v2942_v33, %v775_v24  ;;  %1071 = vrot.lane.b32.xlu1 %v1069_v25, %s2313_s25  ;;  %v2150_v29 = vpop.f32.mrb[9].mxu0 }
 0x1c7   :  { %935 = vrot.lane.b32.xlu0 %v933_v27, %s2316_s28 }
 0x1c8   :  { %v803_v30 = vmax.f32 %v776_v28, 0.0 }
 0x1ca   :  { %813 = vst.msk [vmem:[#allocation2 + $0x20] sm:$0xff] %vm3409_vm12, %v803_v30  ;;  %1077 = vrot.lane.b32.xlu1 %v1075_v32, %s2314_s27 }
 0x1cb   :  { %942 = vrot.lane.b32.xlu0 %v940_v31, %s2317_s30 }
 0x1ce   :  { %1083 = vrot.lane.b32.xlu1 %v1081_v35, %s2315_s10 }
 0x1cf   :  { %949 = vrot.lane.b32.xlu0 %v947_v34, %s2318_s11 }
 0x1d1   :  { %v1135_v38 = vld [vmem:[#allocation2 + $0x24] sm:$0x3]  ;;  %v1143_v52 = vld [vmem:[#allocation2 + $0x26] sm:$0x3]  ;;  %v1111_v53 = vld [vmem:[#allocation2 + $0x1f] sm:$0x3] }
 0x1d2   :  { %1089 = vrot.lane.b32.xlu1 %v1087_v36, %s2316_s28  ;;  %1136 = vst.msk [vmem:[#allocation4 + $0x4] sm:$0x3] %vm819_vm13, %v1135_v38  ;;  %v1736_v39 = vld [vmem:[#allocation2 + $0x24] sm:$0xf]  ;;  %v1117_v55 = vld [vmem:[#allocation2 + $0x20] sm:$0x3] }
 0x1d3   :  { %956 = vrot.lane.b32.xlu0 %v954_v37, %s2319_s19  ;;  %1737 = vst.msk [vmem:[#allocation5 + $0x10] sm:$0xf] %vm1528_vm14, %v1736_v39  ;;  %v1137_v51 = vld [vmem:[#allocation2 + $0x25] sm:$0x3]  ;;  %v1123_v58 = vld [vmem:[#allocation2 + $0x21] sm:$0x3] }
 0x1d4   :  { %v1129_v60 = vld [vmem:[#allocation2 + $0x22] sm:$0x3] }
 0x1d6   :  { %1095 = vrot.lane.b32.xlu1 %v1093_v40, %s2317_s30 }
 0x1d7   :  { %963 = vrot.lane.b32.xlu0 %v961_v41, %s2320_s13 }
 0x1d8   :  { %v780_v42 = vpop.f32.mrb[10].mxu0 }
 0x1d9   :  { %v781_v45 = vadd.f32 %v2942_v33, %v780_v42  ;;  %v2153_v46 = vpop.f32.mrb[11].mxu0 }
 0x1da   :  { %1101 = vrot.lane.b32.xlu1 %v1099_v43, %s2318_s11 }
 0x1db   :  { %970 = vrot.lane.b32.xlu0 %v968_v44, %s2321_s15  ;;  %v804_v47 = vmax.f32 %v781_v45, 0.0 }
 0x1dd   :  { %814 = vst.msk [vmem:[#allocation2 + $0x28] sm:$0xff] %vm3409_vm12, %v804_v47 }
 0x1de   :  { %1107 = vrot.lane.b32.xlu1 %v1105_v48, %s2319_s19 }
 0x1df   :  { %977 = vrot.lane.b32.xlu0 %v975_v49, %s2322_s16 }
 0x1e2   :  { %1139 = vrot.lane.b32.xlu1 %v1137_v51, %s2293_s9 }
 0x1e3   :  { %984 = vrot.lane.b32.xlu0 %v982_v50, %s2323_s0 }
 0x1e4   :  { %v1281_v54 = vld [vmem:[#allocation2 + $0x2a] sm:$0x3]  ;;  %v1149_v59 = vld [vmem:[#allocation2 + $0x27] sm:$0x3]  ;;  %v1289_v4 = vld [vmem:[#allocation2 + $0x2c] sm:$0x3] }
 0x1e5   :  { %v1283_v56 = vld [vmem:[#allocation2 + $0x2b] sm:$0x3]  ;;  %1282 = vst.msk [vmem:[#allocation4 + $0x6] sm:$0x3] %vm819_vm13, %v1281_v54  ;;  %v1155_v61 = vld [vmem:[#allocation2 + $0x28] sm:$0x3] }
 0x1e6   :  { %1113 = vrot.lane.b32.xlu1 %v1111_v53, %s2320_s13  ;;  %v1786_v57 = vld [vmem:[#allocation2 + $0x2a] sm:$0xf]  ;;  %v1301_v10 = vld [vmem:[#allocation2 + $0x2e] sm:$0x3]  ;;  %vm3412_vm13 = vcmask 452000  }
 0x1e7   :  { %1145 = vrot.lane.b32.xlu0 %v1143_v52, %s2296_s24  ;;  %1787 = vst.msk [vmem:[#allocation5 + $0x14] sm:$0xf] %vm1528_vm14, %v1786_v57  ;;  %v1161_v5 = vld [vmem:[#allocation2 + $0x2a] sm:$0x3]  ;;  %v1295_v7 = vld [vmem:[#allocation2 + $0x2d] sm:$0x3] }
 0x1e8   :  { %v1167_v8 = vld [vmem:[#allocation2 + $0x2b] sm:$0x3]  ;;  %v1179_v18 = vld [vmem:[#allocation2 + $0x2d] sm:$0x3] }
 0x1e9   :  { %v1173_v11 = vld [vmem:[#allocation2 + $0x2c] sm:$0x3]  ;;  %v1185_v23 = vld [vmem:[#allocation2 + $0x2e] sm:$0x3] }
 0x1ea   :  { %1119 = vrot.lane.b32.xlu1 %v1117_v55, %s2321_s15 }
 0x1eb   :  { %1285 = vrot.lane.b32.xlu0 %v1283_v56, %s2293_s9 }
 0x1ee   :  { %1125 = vrot.lane.b32.xlu1 %v1123_v58, %s2322_s16 }
 0x1ef   :  { %1151 = vrot.lane.b32.xlu0 %v1149_v59, %s2298_s14 }
 0x1f1   :  { %v785_v62 = vpop.f32.mrb[12].mxu0 }
 0x1f2   :  { %1131 = vrot.lane.b32.xlu1 %v1129_v60, %s2323_s0  ;;  %v786_v63 = vadd.f32 %v2942_v33, %v785_v62  ;;  %v2156_v0 = vpop.f32.mrb[13].mxu0 }
 0x1f3   :  { %1157 = vrot.lane.b32.xlu0 %v1155_v61, %s2303_s26 }
 0x1f4   :  { %v831_v1 = vpop.permute.xlu1 %830  ;;  %v805_v3 = vmax.f32 %v786_v63, 0.0 }
 0x1f5   :  { %v824_v2 = vpop.permute.xlu0 %823 }
 0x1f6   :  { %827 = vst.msk [vmem:[#allocation4] sm:$0x3] %vm826_vm15, %v824_v2  ;;  %1291 = vrot.lane.b32.xlu1 %v1289_v4, %s2296_s24 }
 0x1f7   :  { %815 = vst.msk [vmem:[#allocation2 + $0x30] sm:$0xff] %vm3409_vm12, %v805_v3  ;;  %1163 = vrot.lane.b32.xlu0 %v1161_v5, %s2304_s2 }
 0x1f8   :  { %834 = vst.msk [vmem:[#allocation4] sm:$0x3] %vm833_vm0, %v831_v1 }
 0x1f9   :  { %v838_v6 = vpop.permute.xlu0 %837 }
 0x1fa   :  { %841 = vst.msk [vmem:[#allocation4] sm:$0x3] %vm840_vm1, %v838_v6  ;;  %1297 = vrot.lane.b32.xlu1 %v1295_v7, %s2298_s14  ;;  %v1428_v7 = vld [vmem:[%s3403_s3] sm:$0xff] }
 0x1fb   :  { %1169 = vrot.lane.b32.xlu0 %v1167_v8, %s2305_s12  ;;  %v1429_v8 = vld [vmem:[%s3403_s3 + $0x8] sm:$0xff] }
 0x1fd   :  { %v845_v9 = vpop.permute.xlu0 %844 }
 0x1fe   :  { %848 = vst.msk [vmem:[#allocation4] sm:$0x3] %vm847_vm2, %v845_v9  ;;  %1303 = vrot.lane.b32.xlu1 %v1301_v10, %s2303_s26  ;;  %v790_v12 = vpop.f32.mrb[14].mxu0  ;;  %v1307_v15 = vld [vmem:[#allocation2 + $0x30] sm:$0x3]  ;;  %v2212_v9 = vpack.c.bf16 %v1429_v8, %v1428_v7 }
 0x1ff   :  { %1175 = vrot.lane.b32.xlu0 %v1173_v11, %s2306_s17  ;;  %v791_v13 = vadd.f32 %v2942_v33, %v790_v12  ;;  %v2159_v14 = vpop.f32.mrb[15].mxu0  ;;  %v1836_v22 = vld [vmem:[#allocation2 + $0x30] sm:$0xf]  ;;  %v1331_v41 = vld [vmem:[#allocation2 + $0x34] sm:$0x3] }
 0x200   :  { %v1313_v24 = vld [vmem:[#allocation2 + $0x31] sm:$0x3]  ;;  %1837 = vst.msk [vmem:[#allocation5 + $0x18] sm:$0xf] %vm1528_vm14, %v1836_v22  ;;  %v1325_v32 = vld [vmem:[#allocation2 + $0x33] sm:$0x3]  ;;  %2213 = vmatpush3.bf16.msra.mxu1 %v2212_v9 }
 0x201   :  { %v852_v16 = vpop.permute.xlu0 %851  ;;  %v806_v17 = vmax.f32 %v791_v13, 0.0  ;;  %v1319_v28 = vld [vmem:[#allocation2 + $0x32] sm:$0x3]  ;;  %v1191_v29 = vld [vmem:[#allocation2 + $0x30] sm:$0x3]  ;;  %2214 = vmatprep.subr.bf16.mxu1 %v2299_v19  ;;  %v1432_v22 = vld [vmem:[%s3403_s3 + $0x20] sm:$0xff] }
 0x202   :  { %855 = vst.msk [vmem:[#allocation4] sm:$0x3] %vm854_vm3, %v852_v16  ;;  %1309 = vrot.lane.b32.xlu1 %v1307_v15, %s2304_s2  ;;  %v1197_v34 = vld [vmem:[#allocation2 + $0x31] sm:$0x3]  ;;  %v1337_v45 = vld [vmem:[#allocation2 + $0x36] sm:$0x3] }
 0x203   :  { %1181 = vrot.lane.b32.xlu0 %v1179_v18, %s2307_s18  ;;  %816 = vst.msk [vmem:[#allocation2 + $0x38] sm:$0xff] %vm3409_vm12, %v806_v17  ;;  %v1203_v42 = vld [vmem:[#allocation2 + $0x32] sm:$0x3]  ;;  %v1215_v49 = vld [vmem:[#allocation2 + $0x34] sm:$0x3]  ;;  %v1431_v15 = vld [vmem:[%s3403_s3 + $0x18] sm:$0xff] }
 0x204   :  { %v1000_v21 = vpop.permute.xlu1 %999  ;;  %v1209_v46 = vld [vmem:[#allocation2 + $0x33] sm:$0x3]  ;;  %v1221_v53 = vld [vmem:[#allocation2 + $0x36] sm:$0x3]  ;;  %v1558_v9 = vld [vmem:[#allocation2 + $0x8] sm:$0xf] }
 0x205   :  { %v1533_v20 = vpop.permute.xlu0 %1532  ;;  %v1430_v14 = vld [vmem:[%s3403_s3 + $0x10] sm:$0xff] }
 0x206   :  { %1536 = vst.msk [vmem:[#allocation5] sm:$0xf] %vm3410_vm4, %v1533_v20  ;;  %1315 = vrot.lane.b32.xlu1 %v1313_v24, %s2305_s12  ;;  %v2215_v16 = vpack.c.bf16 %v1431_v15, %v1430_v14  ;;  %v1694_v8 = vld [vmem:[#allocation2 + $0x14] sm:$0xf] }
 0x207   :  { %1187 = vrot.lane.b32.xlu0 %v1185_v23, %s2308_s20  ;;  %v1433_v23 = vld [vmem:[%s3403_s3 + $0x28] sm:$0xff] }
 0x208   :  { %v1006_v25 = vpop.permute.xlu1 %1005  ;;  %2216 = vmatpush3.bf16.msra.mxu1 %v2215_v16  ;;  %v2218_v24 = vpack.c.bf16 %v1433_v23, %v1432_v22  ;;  %v1700_v16 = vld [vmem:[#allocation2 + $0x18] sm:$0xf]  ;;  %v1565_v22 = vld [vmem:[#allocation2 + $0xc] sm:$0xf] }
 0x209   :  { %v994_v27 = vpop.permute.xlu0 %993  ;;  %2217 = vmatprep.subr.bf16.mxu1 %v2299_v19 }
 0x20a   :  { %996 = vst.msk [vmem:[#allocation4 + $0x2] sm:$0x3] %vm826_vm15, %v994_v27  ;;  %1321 = vrot.lane.b32.xlu1 %v1319_v28, %s2306_s17  ;;  %v1886_v43 = vld [vmem:[#allocation2 + $0x36] sm:$0xf]  ;;  %v1361_v61 = vld [vmem:[#allocation2 + $0x3a] sm:$0x3] }
 0x20b   :  { %1002 = vst.msk [vmem:[#allocation4 + $0x2] sm:$0x3] %vm833_vm0, %v1000_v21  ;;  %1193 = vrot.lane.b32.xlu0 %v1191_v29, %s2309_s21  ;;  %v1343_v50 = vld [vmem:[#allocation2 + $0x37] sm:$0x3]  ;;  %v1355_v57 = vld [vmem:[#allocation2 + $0x39] sm:$0x3] }
 0x20c   :  { %1008 = vst.msk [vmem:[#allocation4 + $0x2] sm:$0x3] %vm840_vm1, %v1006_v25  ;;  %v1012_v30 = vpop.permute.xlu1 %1011  ;;  %v1349_v54 = vld [vmem:[#allocation2 + $0x38] sm:$0x3]  ;;  %v1367_v1 = vld [vmem:[#allocation2 + $0x3c] sm:$0x3]  ;;  %2219 = vmatpush3.bf16.msra.mxu1 %v2218_v24 }
 0x20d   :  { %v859_v31 = vpop.permute.xlu0 %858  ;;  %1014 = vst.msk [vmem:[#allocation4 + $0x2] sm:$0x3] %vm847_vm2, %v1012_v30  ;;  %v1227_v58 = vld [vmem:[#allocation2 + $0x37] sm:$0x3]  ;;  %v1239_v2 = vld [vmem:[#allocation2 + $0x39] sm:$0x3]  ;;  %2220 = vmatprep.subr.bf16.mxu1 %v2299_v19 }
 0x20e   :  { %862 = vst.msk [vmem:[#allocation4] sm:$0x3] %vm861_vm5, %v859_v31  ;;  %1327 = vrot.lane.b32.xlu1 %v1325_v32, %s2307_s18  ;;  %v795_v35 = vpop.f32.mrb[16].mxu0  ;;  %v1233_v62 = vld [vmem:[#allocation2 + $0x38] sm:$0x3]  ;;  %v1434_v30 = vld [vmem:[%s3403_s3 + $0x30] sm:$0xff] }
 0x20f   :  { %1199 = vrot.lane.b32.xlu0 %v1197_v34, %s2310_s1  ;;  %v796_v36 = vadd.f32 %v2942_v33, %v795_v35  ;;  %v2162_v37 = vpop.f32.mrb[17].mxu0  ;;  %1887 = vst.msk [vmem:[#allocation5 + $0x1c] sm:$0xf] %vm1528_vm14, %v1886_v43  ;;  %vm3413_vm14 = vcmask 484800   ;;  %v1373_v5 = vld [vmem:[#allocation2 + $0x3d] sm:$0x3] }
 0x210   :  { %v1018_v38 = vpop.permute.xlu1 %1017  ;;  %v1245_v6 = vld [vmem:[#allocation2 + $0x3a] sm:$0x3]  ;;  %v1379_v12 = vld [vmem:[#allocation2 + $0x3e] sm:$0x3]  ;;  %v1251_v13 = vld [vmem:[#allocation2 + $0x3c] sm:$0x3] }
 0x211   :  { %v866_v39 = vpop.permute.xlu0 %865  ;;  %v807_v40 = vmax.f32 %v796_v36, 0.0  ;;  %1020 = vst.msk [vmem:[#allocation4 + $0x2] sm:$0x3] %vm854_vm3, %v1018_v38  ;;  %v1257_v20 = vld [vmem:[#allocation2 + $0x3d] sm:$0x3]  ;;  %v1436_v38 = vld [vmem:[%s3403_s3 + $0x40] sm:$0xff] }
 0x212   :  { %869 = vst.msk [vmem:[#allocation4] sm:$0x3] %vm868_vm6, %v866_v39  ;;  %1333 = vrot.lane.b32.xlu1 %v1331_v41, %s2308_s20  ;;  %v1263_v28 = vld [vmem:[#allocation2 + $0x3e] sm:$0x3]  ;;  %v1437_v39 = vld [vmem:[%s3403_s3 + $0x48] sm:$0xff] }
 0x213   :  { %1205 = vrot.lane.b32.xlu0 %v1203_v42, %s2311_s22  ;;  %817 = vst.msk [vmem:[#allocation2 + $0x40] sm:$0xff] %vm3409_vm12, %v807_v40  ;;  %vm3414_vm12 = vcmask 517600   ;;  %v1435_v31 = vld [vmem:[%s3403_s3 + $0x38] sm:$0xff]  ;;  %v2224_v40 = vpack.c.bf16 %v1437_v39, %v1436_v38 }
 0x214   :  { %v1024_v44 = vpop.permute.xlu1 %1023  ;;  %v2221_v32 = vpack.c.bf16 %v1435_v31, %v1434_v30  ;;  %v1788_v30 = vld [vmem:[#allocation2 + $0x2b] sm:$0xf]  ;;  %v1744_v31 = vld [vmem:[#allocation2 + $0x26] sm:$0xf]  ;;  %v1712_v39 = vld [vmem:[#allocation2 + $0x1a] sm:$0xf] }
 0x215   :  { %v873_v33 = vpop.permute.xlu0 %872  ;;  %1026 = vst.msk [vmem:[#allocation4 + $0x2] sm:$0x3] %vm861_vm5, %v1024_v44 }
 0x216   :  { %876 = vst.msk [vmem:[#allocation4] sm:$0x3] %vm875_vm7, %v873_v33  ;;  %1339 = vrot.lane.b32.xlu1 %v1337_v45, %s2309_s21  ;;  %2222 = vmatpush3.bf16.msra.mxu1 %v2221_v32  ;;  %v1438_v33 = vld [vmem:[%s3403_s3 + $0x50] sm:$0xff]  ;;  %v1439_v45 = vld [vmem:[%s3403_s3 + $0x58] sm:$0xff] }
 0x217   :  { %1211 = vrot.lane.b32.xlu0 %v1209_v46, %s2312_s23  ;;  %2223 = vmatprep.subr.bf16.mxu1 %v2299_v19  ;;  %v2227_v46 = vpack.c.bf16 %v1439_v45, %v1438_v33 }
 0x218   :  { %v1030_v47 = vpop.permute.xlu1 %1029 }
 0x219   :  { %v880_v48 = vpop.permute.xlu0 %879  ;;  %1032 = vst.msk [vmem:[#allocation4 + $0x2] sm:$0x3] %vm868_vm6, %v1030_v47 }
 0x21a   :  { %883 = vst.msk [vmem:[#allocation4] sm:$0x3] %vm882_vm8, %v880_v48  ;;  %1345 = vrot.lane.b32.xlu1 %v1343_v50, %s2310_s1  ;;  %v1385_v21 = vld [vmem:[#allocation2 + $0x3f] sm:$0x3]  ;;  %v1397_v36 = vld [vmem:[#allocation2 + $0x42] sm:$0x3]  ;;  %2225 = vmatpush3.bf16.msra.mxu1 %v2224_v40 }
 0x21b   :  { %1217 = vrot.lane.b32.xlu0 %v1215_v49, %s2313_s25  ;;  %v1391_v29 = vld [vmem:[#allocation2 + $0x40] sm:$0x3]  ;;  %v1403_v43 = vld [vmem:[#allocation2 + $0x43] sm:$0x3]  ;;  %2226 = vmatprep.subr.bf16.mxu1 %v2299_v19  ;;  %v1572_v40 = vld [vmem:[#allocation2 + $0xd] sm:$0xf] }
 0x21c   :  { %v1591_v51 = vpop.permute.xlu1 %1590  ;;  %v1269_v37 = vld [vmem:[#allocation2 + $0x3f] sm:$0x3]  ;;  %v1409_v49 = vld [vmem:[#allocation2 + $0x44] sm:$0x3] }
 0x21d   :  { %v887_v52 = vpop.permute.xlu0 %886  ;;  %1593 = vst.msk [vmem:[#allocation5 + $0x4] sm:$0xf] %vm3410_vm4, %v1591_v51  ;;  %vm3415_vm4 = vcmask 550400   ;;  %v1275_v44 = vld [vmem:[#allocation2 + $0x40] sm:$0x3] }
 0x21e   :  { %890 = vst.msk [vmem:[#allocation4] sm:$0x3] %vm889_vm9, %v887_v52  ;;  %1351 = vrot.lane.b32.xlu1 %v1349_v54, %s2311_s22  ;;  %v1537_v50 = vld [vmem:[#allocation2 + $0x2] sm:$0xf]  ;;  %2228 = vmatpush3.bf16.msra.mxu1 %v2227_v46  ;;  %v1638_v54 = vld [vmem:[#allocation2 + $0xd] sm:$0xf] }
 0x21f   :  { %1223 = vrot.lane.b32.xlu0 %v1221_v53, %s2314_s27  ;;  %v1440_v51 = vld [vmem:[%s3403_s3 + $0x60] sm:$0xf]  ;;  %2187 = vmatprep.subr.mxu1 %v2302_v26  ;;  %v1415_v53 = vld [vmem:[#allocation2 + $0x45] sm:$0x3]  ;;  %v1888_v46 = vld [vmem:[#allocation2 + $0x37] sm:$0xf] }
 0x220   :  { %v1036_v56 = vpop.permute.xlu1 %1035  ;;  %v1421_v26 = vld [vmem:[#allocation2 + $0x46] sm:$0x3] }
 0x221   :  { %v894_v55 = vpop.permute.xlu0 %893  ;;  %1038 = vst.msk [vmem:[#allocation4 + $0x2] sm:$0x3] %vm875_vm7, %v1036_v56 }
 0x222   :  { %897 = vst.msk [vmem:[#allocation4] sm:$0x3] %vm3416_vm10, %v894_v55  ;;  %1357 = vrot.lane.b32.xlu1 %v1355_v57, %s2312_s23  ;;  %v1544_v57 = vld [vmem:[#allocation2 + $0x6] sm:$0xf] }
 0x223   :  { %1229 = vrot.lane.b32.xlu0 %v1227_v58, %s2315_s10 }
 0x224   :  { %v1042_v60 = vpop.permute.xlu1 %1041 }
 0x225   :  { %v901_v59 = vpop.permute.xlu0 %900  ;;  %1044 = vst.msk [vmem:[#allocation4 + $0x2] sm:$0x3] %vm882_vm8, %v1042_v60  ;;  %v1594_v60 = vld [vmem:[#allocation2 + $0x8] sm:$0xf] }
 0x226   :  { %904 = vst.msk [vmem:[#allocation4] sm:$0x3] %vm3411_vm11, %v901_v59  ;;  %1363 = vrot.lane.b32.xlu1 %v1361_v61, %s2313_s25  ;;  %v1644_v61 = vld [vmem:[#allocation2 + $0xe] sm:$0xf] }
 0x227   :  { %1235 = vrot.lane.b32.xlu0 %v1233_v62, %s2316_s28 }
 0x228   :  { %v1048_v63 = vpop.permute.xlu1 %1047 }
 0x229   :  { %v908_v0 = vpop.permute.xlu0 %907  ;;  %1050 = vst.msk [vmem:[#allocation4 + $0x2] sm:$0x3] %vm889_vm9, %v1048_v63 }
 0x22a   :  { %911 = vst.msk [vmem:[#allocation4] sm:$0x3] %vm3412_vm13, %v908_v0  ;;  %1369 = vrot.lane.b32.xlu1 %v1367_v1, %s2314_s27  ;;  %v1688_v0 = vld [vmem:[#allocation2 + $0x13] sm:$0xf]  ;;  %v1551_v1 = vld [vmem:[#allocation2 + $0x7] sm:$0xf] }
 0x22b   :  { %1241 = vrot.lane.b32.xlu0 %v1239_v2, %s2317_s30 }
 0x22c   :  { %v1054_v3 = vpop.permute.xlu1 %1053 }
 0x22d   :  { %v915_v4 = vpop.permute.xlu0 %914  ;;  %1056 = vst.msk [vmem:[#allocation4 + $0x2] sm:$0x3] %vm3416_vm10, %v1054_v3  ;;  %vm3419_vm10 = vcmask 1043456  }
 0x22e   :  { %918 = vst.msk [vmem:[#allocation4] sm:$0x3] %vm3413_vm14, %v915_v4  ;;  %1375 = vrot.lane.b32.xlu1 %v1373_v5, %s2315_s10  ;;  %2188 = vmatpush3.msk.msra.mxu1 %vm3419_vm10, %v1440_v51  ;;  %vm987_vm10 = vcmask 812800   ;;  %v1600_v4 = vld [vmem:[#allocation2 + $0xc] sm:$0xf] }
 0x22f   :  { %1247 = vrot.lane.b32.xlu0 %v1245_v6, %s2318_s11  ;;  %v1650_v5 = vld [vmem:[#allocation2 + $0x12] sm:$0xf] }
 0x230   :  { %v1060_v10 = vpop.permute.xlu1 %1059  ;;  %v1844_v51 = vld [vmem:[#allocation2 + $0x32] sm:$0xf] }
 0x231   :  { %v922_v11 = vpop.permute.xlu0 %921  ;;  %1062 = vst.msk [vmem:[#allocation4 + $0x2] sm:$0x3] %vm3411_vm11, %v1060_v10  ;;  %vm3417_vm11 = vcmask 583200  }
 0x232   :  { %925 = vst.msk [vmem:[#allocation4] sm:$0x3] %vm3414_vm12, %v922_v11  ;;  %1381 = vrot.lane.b32.xlu1 %v1379_v12, %s2316_s28  ;;  %v1606_v12 = vld [vmem:[#allocation2 + $0xd] sm:$0xf] }
 0x233   :  { %1253 = vrot.lane.b32.xlu0 %v1251_v13, %s2319_s19  ;;  %v1656_v13 = vld [vmem:[#allocation2 + $0x13] sm:$0xf] }
 0x234   :  { %v1066_v17 = vpop.permute.xlu1 %1065 }
 0x235   :  { %v929_v18 = vpop.permute.xlu0 %928  ;;  %1068 = vst.msk [vmem:[#allocation4 + $0x2] sm:$0x3] %vm3412_vm13, %v1066_v17  ;;  %vm3418_vm13 = vcmask 616000   ;;  %v1738_v17 = vld [vmem:[#allocation2 + $0x25] sm:$0xf] }
 0x236   :  { %932 = vst.msk [vmem:[#allocation4] sm:$0x3] %vm3415_vm4, %v929_v18  ;;  %1387 = vrot.lane.b32.xlu1 %v1385_v21, %s2317_s30  ;;  %v1612_v21 = vld [vmem:[#allocation2 + $0xe] sm:$0xf] }
 0x237   :  { %1259 = vrot.lane.b32.xlu0 %v1257_v20, %s2320_s13 }
 0x238   :  { %v1072_v25 = vpop.permute.xlu1 %1071 }
 0x239   :  { %v936_v27 = vpop.permute.xlu0 %935  ;;  %1074 = vst.msk [vmem:[#allocation4 + $0x2] sm:$0x3] %vm3413_vm14, %v1072_v25  ;;  %vm952_vm14 = vcmask 648800   ;;  %v1706_v25 = vld [vmem:[#allocation2 + $0x19] sm:$0xf] }
 0x23a   :  { %939 = vst.msk [vmem:[#allocation4] sm:$0x3] %vm3417_vm11, %v936_v27  ;;  %1393 = vrot.lane.b32.xlu1 %v1391_v29, %s2318_s11  ;;  %v1662_v27 = vld [vmem:[#allocation2 + $0x14] sm:$0xf] }
 0x23b   :  { %1265 = vrot.lane.b32.xlu0 %v1263_v28, %s2321_s15 }
 0x23c   :  { %v1078_v35 = vpop.permute.xlu1 %1077 }
 0x23d   :  { %v943_v34 = vpop.permute.xlu0 %942  ;;  %1080 = vst.msk [vmem:[#allocation4 + $0x2] sm:$0x3] %vm3414_vm12, %v1078_v35  ;;  %vm959_vm12 = vcmask 681600   ;;  %v1618_v35 = vld [vmem:[#allocation2 + $0x12] sm:$0xf] }
 0x23e   :  { %946 = vst.msk [vmem:[#allocation4] sm:$0x3] %vm3418_vm13, %v943_v34  ;;  %1399 = vrot.lane.b32.xlu1 %v1397_v36, %s2319_s19  ;;  %v1838_v36 = vld [vmem:[#allocation2 + $0x31] sm:$0xf] }
 0x23f   :  { %1271 = vrot.lane.b32.xlu0 %v1269_v37, %s2322_s16 }
 0x240   :  { %v1084_v42 = vpop.permute.xlu1 %1083 }
 0x241   :  { %v950_v41 = vpop.permute.xlu0 %949  ;;  %1086 = vst.msk [vmem:[#allocation4 + $0x2] sm:$0x3] %vm3415_vm4, %v1084_v42  ;;  %vm966_vm4 = vcmask 714400  }
 0x242   :  { %953 = vst.msk [vmem:[#allocation4] sm:$0x3] %vm952_vm14, %v950_v41  ;;  %1405 = vrot.lane.b32.xlu1 %v1403_v43, %s2320_s13  ;;  %v1794_v43 = vld [vmem:[#allocation2 + $0x2c] sm:$0xf] }
 0x243   :  { %1277 = vrot.lane.b32.xlu0 %v1275_v44, %s2323_s0  ;;  %v1668_v44 = vld [vmem:[#allocation2 + $0x18] sm:$0xf] }
 0x244   :  { %v1090_v47 = vpop.permute.xlu1 %1089 }
 0x245   :  { %v957_v48 = vpop.permute.xlu0 %956  ;;  %1092 = vst.msk [vmem:[#allocation4 + $0x2] sm:$0x3] %vm3417_vm11, %v1090_v47  ;;  %vm973_vm11 = vcmask 747200   ;;  %v1750_v47 = vld [vmem:[#allocation2 + $0x2a] sm:$0xf] }
 0x246   :  { %960 = vst.msk [vmem:[#allocation4] sm:$0x3] %vm959_vm12, %v957_v48  ;;  %1411 = vrot.lane.b32.xlu1 %v1409_v49, %s2321_s15 }
 0x247   :  { %1539 = vrot.lane.b32.xlu0 %v1537_v50, %s2296_s24  ;;  %v1624_v50 = vld [vmem:[#allocation2 + $0x13] sm:$0xf] }
 0x248   :  { %v1096_v19 = vpop.permute.xlu1 %1095 }
 0x249   :  { %v964_v52 = vpop.permute.xlu0 %963  ;;  %1098 = vst.msk [vmem:[#allocation4 + $0x2] sm:$0x3] %vm3418_vm13, %v1096_v19  ;;  %vm980_vm13 = vcmask 780000  }
 0x24a   :  { %967 = vst.msk [vmem:[#allocation4] sm:$0x3] %vm966_vm4, %v964_v52  ;;  %1417 = vrot.lane.b32.xlu1 %v1415_v53, %s2322_s16  ;;  %v1718_v53 = vld [vmem:[#allocation2 + $0x1e] sm:$0xf] }
 0x24b   :  { %1640 = vrot.lane.b32.xlu0 %v1638_v54, %s2293_s9  ;;  %v1579_v54 = vld [vmem:[#allocation2 + $0xe] sm:$0xf] }
 0x24c   :  { %v1102_v55 = vpop.permute.xlu1 %1101 }
 0x24d   :  { %v971_v56 = vpop.permute.xlu0 %970  ;;  %1104 = vst.msk [vmem:[#allocation4 + $0x2] sm:$0x3] %vm952_vm14, %v1102_v55 }
 0x24e   :  { %974 = vst.msk [vmem:[#allocation4] sm:$0x3] %vm973_vm11, %v971_v56  ;;  %1423 = vrot.lane.b32.xlu1 %v1421_v26, %s2323_s0  ;;  %v1800_v26 = vld [vmem:[#allocation2 + $0x30] sm:$0xf]  ;;  %s2324_s0 = smov [#allocation6]  }
 0x24f   :  { %1546 = vrot.lane.b32.xlu0 %v1544_v57, %s2298_s14  ;;  %v1674_v57 = vld [vmem:[#allocation2 + $0x19] sm:$0xf]  ;;  %s2063_s30 = sshll.u32 %s2324_s0, 4  ;;  %s2064_s30 = int_to_ptr.vmem [resolvable:$true] %s2063_s30 }
 0x250   :  { %v1108_v58 = vpop.permute.xlu1 %1107  ;;  %s2269_s21 = scalar_lea.vmem %s2064_s30, 128  ;;  %p2274_p1 = scmp.lt.s32.totalorder %s2064_s30, %s2064_s30 }
 0x251   :  { %v978_v59 = vpop.permute.xlu0 %977  ;;  %1110 = vst.msk [vmem:[#allocation4 + $0x2] sm:$0x3] %vm959_vm12, %v1108_v58  ;;  %p2270_p0 = scmp.ne.s32.totalorder %s2064_s30, %s2269_s21  ;;  %p2275_p2 = scmp.lt.s32.totalorder %s2269_s21, %s2269_s21 }
 0x252   :  { %981 = vst.msk [vmem:[#allocation4] sm:$0x3] %vm980_vm13, %v978_v59  ;;  %1596 = vrot.lane.b32.xlu1 %v1594_v60, %s2296_s24  ;;  %v1894_v60 = vld [vmem:[#allocation2 + $0x38] sm:$0xf] }
 0x253   :  { %1646 = vrot.lane.b32.xlu0 %v1644_v61, %s2296_s24  ;;  %v1756_v61 = vld [vmem:[#allocation2 + $0x2b] sm:$0xf]  ;;  %p2276_p3 = por %p2275_p2, %p2274_p1 }
 0x254   :  { %v1140_v63 = vpop.permute.xlu1 %1139 }
 0x255   :  { %v985_v62 = vpop.permute.xlu0 %984  ;;  %1142 = vst.msk [vmem:[#allocation4 + $0x4] sm:$0x3] %vm826_vm15, %v1140_v63  ;;  %p2277_p4 = pnand %p2276_p3, %p2270_p0 }
 0x256   :  { %988 = vst.msk [vmem:[#allocation4] sm:$0x3] %vm987_vm10, %v985_v62  ;;  %1690 = vrot.lane.b32.xlu1 %v1688_v0, %s2293_s9  ;;  %v1630_v0 = vld [vmem:[#allocation2 + $0x14] sm:$0xf] }
 0x257   :  { %1553 = vrot.lane.b32.xlu0 %v1551_v1, %s2303_s26  ;;  %v1850_v1 = vld [vmem:[#allocation2 + $0x36] sm:$0xf] }
 0x258   :  { %v1114_v3 = vpop.permute.xlu1 %1113 }
 0x259   :  { %v1146_v2 = vpop.permute.xlu0 %1145  ;;  %1116 = vst.msk [vmem:[#allocation4 + $0x2] sm:$0x3] %vm966_vm4, %v1114_v3  ;;  %v1941_v3 = vld [vmem:[%s3405_s5 + $0x8] sm:$0xff] }
 0x25a   :  { %1148 = vst.msk [vmem:[#allocation4 + $0x4] sm:$0x3] %vm833_vm0, %v1146_v2  ;;  %1602 = vrot.lane.b32.xlu1 %v1600_v4, %s2298_s14  ;;  %v1940_v2 = vld [vmem:[%s3405_s5] sm:$0xff] }
 0x25b   :  { %1652 = vrot.lane.b32.xlu0 %v1650_v5, %s2298_s14  ;;  %v3242_v4 = vpack.c.bf16 %v1941_v3, %v1940_v2 }
 0x25c   :  { %v1120_v6 = vpop.permute.xlu1 %1119 }
 0x25d   :  { %v1286_v7 = vpop.permute.xlu0 %1285  ;;  %1122 = vst.msk [vmem:[#allocation4 + $0x2] sm:$0x3] %vm973_vm11, %v1120_v6  ;;  %2230 = vmatprep.subr.bf16.mxu1 %v3242_v4 }
 0x25e   :  { %1288 = vst.msk [vmem:[#allocation4 + $0x6] sm:$0x3] %vm826_vm15, %v1286_v7  ;;  %1696 = vrot.lane.b32.xlu1 %v1694_v8, %s2296_s24  ;;  %vm3420_vm15 = vcmask 386400   ;;  %v1724_v7 = vld [vmem:[#allocation2 + $0x1f] sm:$0xf] }
 0x25f   :  { %1560 = vrot.lane.b32.xlu0 %v1558_v9, %s2304_s2  ;;  %v1680_v8 = vld [vmem:[#allocation2 + $0x1a] sm:$0xf] }
 0x260   :  { %v1126_v10 = vpop.permute.xlu1 %1125 }
 0x261   :  { %v1152_v11 = vpop.permute.xlu0 %1151  ;;  %1128 = vst.msk [vmem:[#allocation4 + $0x2] sm:$0x3] %vm980_vm13, %v1126_v10 }
 0x262   :  { %1154 = vst.msk [vmem:[#allocation4 + $0x4] sm:$0x3] %vm840_vm1, %v1152_v11  ;;  %1608 = vrot.lane.b32.xlu1 %v1606_v12, %s2303_s26  ;;  %v1806_v11 = vld [vmem:[#allocation2 + $0x31] sm:$0xf]  ;;  %v1762_v12 = vld [vmem:[#allocation2 + $0x2c] sm:$0xf] }
 0x263   :  { %1658 = vrot.lane.b32.xlu0 %v1656_v13, %s2303_s26 }
 0x264   :  { %v1132_v14 = vpop.permute.xlu1 %1131 }
 0x265   :  { %v1158_v15 = vpop.permute.xlu0 %1157  ;;  %1134 = vst.msk [vmem:[#allocation4 + $0x2] sm:$0x3] %vm987_vm10, %v1132_v14 }
 0x266   :  { %1160 = vst.msk [vmem:[#allocation4 + $0x4] sm:$0x3] %vm847_vm2, %v1158_v15  ;;  %1702 = vrot.lane.b32.xlu1 %v1700_v16, %s2298_s14  ;;  %v1900_v15 = vld [vmem:[#allocation2 + $0x3c] sm:$0xf]  ;;  %v1856_v16 = vld [vmem:[#allocation2 + $0x37] sm:$0xf] }
 0x267   :  { %1740 = vrot.lane.b32.xlu0 %v1738_v17, %s2293_s9 }
 0x268   :  { %v1292_v18 = vpop.permute.xlu1 %1291 }
 0x269   :  { %v1164_v20 = vpop.permute.xlu0 %1163  ;;  %1294 = vst.msk [vmem:[#allocation4 + $0x6] sm:$0x3] %vm833_vm0, %v1292_v18  ;;  %vm3421_vm0 = vcmask 419200  }
 0x26a   :  { %1166 = vst.msk [vmem:[#allocation4 + $0x4] sm:$0x3] %vm854_vm3, %v1164_v20  ;;  %1614 = vrot.lane.b32.xlu1 %v1612_v21, %s2304_s2  ;;  %v1730_v20 = vld [vmem:[#allocation2 + $0x20] sm:$0xf]  ;;  %v1768_v21 = vld [vmem:[#allocation2 + $0x30] sm:$0xf] }
 0x26b   :  { %1567 = vrot.lane.b32.xlu0 %v1565_v22, %s2305_s12 }
 0x26c   :  { %v1298_v23 = vpop.permute.xlu1 %1297 }
 0x26d   :  { %v1170_v24 = vpop.permute.xlu0 %1169  ;;  %1300 = vst.msk [vmem:[#allocation4 + $0x6] sm:$0x3] %vm840_vm1, %v1298_v23  ;;  %vm3422_vm1 = vcmask 452000  }
 0x26e   :  { %1172 = vst.msk [vmem:[#allocation4 + $0x4] sm:$0x3] %vm861_vm5, %v1170_v24  ;;  %1708 = vrot.lane.b32.xlu1 %v1706_v25, %s2303_s26  ;;  %v1812_v24 = vld [vmem:[#allocation2 + $0x32] sm:$0xf]  ;;  %v1862_v25 = vld [vmem:[#allocation2 + $0x38] sm:$0xf] }
 0x26f   :  { %1664 = vrot.lane.b32.xlu0 %v1662_v27, %s2304_s2 }
 0x270   :  { %v1304_v28 = vpop.permute.xlu1 %1303 }
 0x271   :  { %v1176_v29 = vpop.permute.xlu0 %1175  ;;  %1306 = vst.msk [vmem:[#allocation4 + $0x6] sm:$0x3] %vm847_vm2, %v1304_v28  ;;  %vm3423_vm2 = vcmask 484800  }
 0x272   :  { %1178 = vst.msk [vmem:[#allocation4 + $0x4] sm:$0x3] %vm868_vm6, %v1176_v29  ;;  %1790 = vrot.lane.b32.xlu1 %v1788_v30, %s2293_s9  ;;  %v1906_v29 = vld [vmem:[#allocation2 + $0x3d] sm:$0xf]  ;;  %v1774_v30 = vld [vmem:[#allocation2 + $0x31] sm:$0xf] }
 0x273   :  { %1746 = vrot.lane.b32.xlu0 %v1744_v31, %s2296_s24 }
 0x274   :  { %v1310_v34 = vpop.permute.xlu1 %1309 }
 0x275   :  { %v1182_v32 = vpop.permute.xlu0 %1181  ;;  %1312 = vst.msk [vmem:[#allocation4 + $0x6] sm:$0x3] %vm854_vm3, %v1310_v34  ;;  %vm3424_vm3 = vmmov %vm3420_vm15  ;;  %v1818_v34 = vld [vmem:[#allocation2 + $0x36] sm:$0xf] }
 0x276   :  { %1184 = vst.msk [vmem:[#allocation4 + $0x4] sm:$0x3] %vm875_vm7, %v1182_v32  ;;  %1620 = vrot.lane.b32.xlu1 %v1618_v35, %s2305_s12  ;;  %v1868_v35 = vld [vmem:[#allocation2 + $0x3c] sm:$0xf] }
 0x277   :  { %1840 = vrot.lane.b32.xlu0 %v1838_v36, %s2293_s9 }
 0x278   :  { %v1316_v38 = vpop.permute.xlu1 %1315 }
 0x279   :  { %v1188_v37 = vpop.permute.xlu0 %1187  ;;  %1318 = vst.msk [vmem:[#allocation4 + $0x6] sm:$0x3] %vm861_vm5, %v1316_v38  ;;  %vm3425_vm5 = vcmask 517600   ;;  %v1912_v38 = vld [vmem:[#allocation2 + $0x3e] sm:$0xf] }
 0x27a   :  { %1190 = vst.msk [vmem:[#allocation4 + $0x4] sm:$0x3] %vm882_vm8, %v1188_v37  ;;  %1714 = vrot.lane.b32.xlu1 %v1712_v39, %s2304_s2  ;;  %v1780_v39 = vld [vmem:[#allocation2 + $0x32] sm:$0xf] }
 0x27b   :  { %1574 = vrot.lane.b32.xlu0 %v1572_v40, %s2306_s17 }
 0x27c   :  { %v1322_v41 = vpop.permute.xlu1 %1321 }
 0x27d   :  { %v1194_v42 = vpop.permute.xlu0 %1193  ;;  %1324 = vst.msk [vmem:[#allocation4 + $0x6] sm:$0x3] %vm868_vm6, %v1322_v41  ;;  %vm3426_vm6 = vmmov %vm3421_vm0 }
 0x27e   :  { %1196 = vst.msk [vmem:[#allocation4 + $0x4] sm:$0x3] %vm889_vm9, %v1194_v42  ;;  %1796 = vrot.lane.b32.xlu1 %v1794_v43, %s2296_s24  ;;  %v1824_v42 = vld [vmem:[#allocation2 + $0x37] sm:$0xf]  ;;  %v1874_v43 = vld [vmem:[#allocation2 + $0x3d] sm:$0xf] }
 0x27f   :  { %1670 = vrot.lane.b32.xlu0 %v1668_v44, %s2305_s12 }
 0x280   :  { %v1328_v33 = vpop.permute.xlu1 %1327 }
 0x281   :  { %v1200_v45 = vpop.permute.xlu0 %1199  ;;  %1330 = vst.msk [vmem:[#allocation4 + $0x6] sm:$0x3] %vm875_vm7, %v1328_v33  ;;  %vm3427_vm7 = vmmov %vm3422_vm1 }
 0x282   :  { %1202 = vst.msk [vmem:[#allocation4 + $0x4] sm:$0x3] %vm3420_vm15, %v1200_v45  ;;  %1890 = vrot.lane.b32.xlu1 %v1888_v46, %s2293_s9  ;;  %vm3430_vm15 = vcmask 583200   ;;  %v1918_v45 = vld [vmem:[#allocation2 + $0x42] sm:$0xf] }
 0x283   :  { %1752 = vrot.lane.b32.xlu0 %v1750_v47, %s2298_s14  ;;  %v1880_v46 = vld [vmem:[#allocation2 + $0x3e] sm:$0xf] }
 0x284   :  { %v1334_v48 = vpop.permute.xlu1 %1333 }
 0x285   :  { %v1206_v49 = vpop.permute.xlu0 %1205  ;;  %1336 = vst.msk [vmem:[#allocation4 + $0x6] sm:$0x3] %vm882_vm8, %v1334_v48  ;;  %vm3428_vm8 = vcmask 550400  }
 0x286   :  { %1208 = vst.msk [vmem:[#allocation4 + $0x4] sm:$0x3] %vm3421_vm0, %v1206_v49  ;;  %1626 = vrot.lane.b32.xlu1 %v1624_v50, %s2306_s17  ;;  %vm3431_vm0 = vmmov %vm3425_vm5  ;;  %v1830_v49 = vld [vmem:[#allocation2 + $0x38] sm:$0xf] }
 0x287   :  { %1846 = vrot.lane.b32.xlu0 %v1844_v51, %s2296_s24 }
 0x288   :  { %v1340_v19 = vpop.permute.xlu1 %1339 }
 0x289   :  { %v1212_v52 = vpop.permute.xlu0 %1211  ;;  %1342 = vst.msk [vmem:[#allocation4 + $0x6] sm:$0x3] %vm889_vm9, %v1340_v19  ;;  %vm3429_vm9 = vmmov %vm3423_vm2  ;;  %v1942_v19 = vld [vmem:[%s3405_s5 + $0x10] sm:$0xff] }
 0x28a   :  { %1214 = vst.msk [vmem:[#allocation4 + $0x4] sm:$0x3] %vm3422_vm1, %v1212_v52  ;;  %1720 = vrot.lane.b32.xlu1 %v1718_v53, %s2305_s12  ;;  %vm3432_vm1 = vcmask 616000   ;;  %v1943_v52 = vld [vmem:[%s3405_s5 + $0x18] sm:$0xff]  ;;  %v1924_v53 = vld [vmem:[#allocation2 + $0x43] sm:$0xf] }
 0x28b   :  { %1581 = vrot.lane.b32.xlu0 %v1579_v54, %s2307_s18  ;;  %v2233_v54 = vpack.c.bf16 %v1943_v52, %v1942_v19 }
 0x28c   :  { %v1346_v56 = vpop.permute.xlu1 %1345 }
 0x28d   :  { %v1218_v55 = vpop.permute.xlu0 %1217  ;;  %1348 = vst.msk [vmem:[#allocation4 + $0x6] sm:$0x3] %vm3424_vm3, %v1346_v56  ;;  %vm3434_vm3 = vmmov %vm3430_vm15 }
 0x28e   :  { %1220 = vst.msk [vmem:[#allocation4 + $0x4] sm:$0x3] %vm3423_vm2, %v1218_v55  ;;  %1802 = vrot.lane.b32.xlu1 %v1800_v26, %s2298_s14  ;;  %vm3433_vm2 = vmmov %vm3428_vm8 }
 0x28f   :  { %1676 = vrot.lane.b32.xlu0 %v1674_v57, %s2306_s17  ;;  %v1930_v57 = vld [vmem:[#allocation2 + $0x44] sm:$0xf] }
 0x290   :  { %v1352_v59 = vpop.permute.xlu1 %1351 }
 0x291   :  { %v1224_v58 = vpop.permute.xlu0 %1223  ;;  %1354 = vst.msk [vmem:[#allocation4 + $0x6] sm:$0x3] %vm3426_vm6, %v1352_v59  ;;  %vm1563_vm6 = vcmask 191648  }
 0x292   :  { %1226 = vst.msk [vmem:[#allocation4 + $0x4] sm:$0x3] %vm3425_vm5, %v1224_v58  ;;  %1896 = vrot.lane.b32.xlu1 %v1894_v60, %s2296_s24  ;;  %vm3435_vm5 = vmmov %vm3432_vm1  ;;  %v1944_v60 = vld [vmem:[%s3405_s5 + $0x20] sm:$0xf] }
 0x293   :  { %1758 = vrot.lane.b32.xlu0 %v1756_v61, %s2303_s26 }
 0x294   :  { %v1358_v62 = vpop.permute.xlu1 %1357 }
 0x295   :  { %v1230_v63 = vpop.permute.xlu0 %1229  ;;  %1360 = vst.msk [vmem:[#allocation4 + $0x6] sm:$0x3] %vm3427_vm7, %v1358_v62  ;;  %vm3438_vm7 = vcmask 1043456  }
 0x296   :  { %1232 = vst.msk [vmem:[#allocation4 + $0x4] sm:$0x3] %vm3428_vm8, %v1230_v63  ;;  %1632 = vrot.lane.b32.xlu1 %v1630_v0, %s2307_s18  ;;  %vm3439_vm8 = vmmov %vm3438_vm7 }
 0x297   :  { %1852 = vrot.lane.b32.xlu0 %v1850_v1, %s2298_s14 }
 0x298   :  { %v1364_v5 = vpop.permute.xlu1 %1363 }
 0x299   :  { %v1236_v6 = vpop.permute.xlu0 %1235  ;;  %1366 = vst.msk [vmem:[#allocation4 + $0x6] sm:$0x3] %vm3429_vm9, %v1364_v5 }
 0x29a   :  { %1238 = vst.msk [vmem:[#allocation4 + $0x4] sm:$0x3] %vm3430_vm15, %v1236_v6  ;;  %1726 = vrot.lane.b32.xlu1 %v1724_v7, %s2306_s17  ;;  %vm1570_vm15 = vcmask 224448  }
 0x29b   :  { %1682 = vrot.lane.b32.xlu0 %v1680_v8, %s2307_s18 }
 0x29c   :  { %v1370_v9 = vpop.permute.xlu1 %1369 }
 0x29d   :  { %v1242_v10 = vpop.permute.xlu0 %1241  ;;  %1372 = vst.msk [vmem:[#allocation4 + $0x6] sm:$0x3] %vm3431_vm0, %v1370_v9 }
 0x29e   :  { %1244 = vst.msk [vmem:[#allocation4 + $0x4] sm:$0x3] %vm3432_vm1, %v1242_v10  ;;  %1808 = vrot.lane.b32.xlu1 %v1806_v11, %s2303_s26 }
 0x29f   :  { %1764 = vrot.lane.b32.xlu0 %v1762_v12, %s2304_s2 }
 0x2a0   :  { %v1376_v13 = vpop.permute.xlu1 %1375 }
 0x2a1   :  { %v1248_v14 = vpop.permute.xlu0 %1247  ;;  %1378 = vst.msk [vmem:[#allocation4 + $0x6] sm:$0x3] %vm3433_vm2, %v1376_v13  ;;  %vm1577_vm2 = vcmask 257248  }
 0x2a2   :  { %1250 = vst.msk [vmem:[#allocation4 + $0x4] sm:$0x3] %vm952_vm14, %v1248_v14  ;;  %1902 = vrot.lane.b32.xlu1 %v1900_v15, %s2298_s14 }
 0x2a3   :  { %1858 = vrot.lane.b32.xlu0 %v1856_v16, %s2303_s26 }
 0x2a4   :  { %v1382_v17 = vpop.permute.xlu1 %1381 }
 0x2a5   :  { %v1254_v18 = vpop.permute.xlu0 %1253  ;;  %1384 = vst.msk [vmem:[#allocation4 + $0x6] sm:$0x3] %vm3434_vm3, %v1382_v17 }
 0x2a6   :  { %1256 = vst.msk [vmem:[#allocation4 + $0x4] sm:$0x3] %vm959_vm12, %v1254_v18  ;;  %1732 = vrot.lane.b32.xlu1 %v1730_v20, %s2307_s18 }
 0x2a7   :  { %1770 = vrot.lane.b32.xlu0 %v1768_v21, %s2305_s12 }
 0x2a8   :  { %v1388_v23 = vpop.permute.xlu1 %1387 }
 0x2a9   :  { %v1260_v22 = vpop.permute.xlu0 %1259  ;;  %1390 = vst.msk [vmem:[#allocation4 + $0x6] sm:$0x3] %vm3435_vm5, %v1388_v23  ;;  %vm1584_vm5 = vcmask 290048  }
 0x2aa   :  { %1262 = vst.msk [vmem:[#allocation4 + $0x4] sm:$0x3] %vm966_vm4, %v1260_v22  ;;  %1814 = vrot.lane.b32.xlu1 %v1812_v24, %s2304_s2 }
 0x2ab   :  { %1864 = vrot.lane.b32.xlu0 %v1862_v25, %s2304_s2 }
 0x2ac   :  { %v1394_v28 = vpop.permute.xlu1 %1393 }
 0x2ad   :  { %v1266_v27 = vpop.permute.xlu0 %1265  ;;  %1396 = vst.msk [vmem:[#allocation4 + $0x6] sm:$0x3] %vm952_vm14, %v1394_v28 }
 0x2ae   :  { %1268 = vst.msk [vmem:[#allocation4 + $0x4] sm:$0x3] %vm973_vm11, %v1266_v27  ;;  %1908 = vrot.lane.b32.xlu1 %v1906_v29, %s2303_s26 }
 0x2af   :  { %1776 = vrot.lane.b32.xlu0 %v1774_v30, %s2306_s17 }
 0x2b0   :  { %v1400_v31 = vpop.permute.xlu1 %1399 }
 0x2b1   :  { %v1272_v32 = vpop.permute.xlu0 %1271  ;;  %1402 = vst.msk [vmem:[#allocation4 + $0x6] sm:$0x3] %vm959_vm12, %v1400_v31  ;;  %vm1542_vm12 = vcmask 93248  }
 0x2b2   :  { %1274 = vst.msk [vmem:[#allocation4 + $0x4] sm:$0x3] %vm980_vm13, %v1272_v32  ;;  %1820 = vrot.lane.b32.xlu1 %v1818_v34, %s2305_s12 }
 0x2b3   :  { %1870 = vrot.lane.b32.xlu0 %v1868_v35, %s2305_s12 }
 0x2b4   :  { %v1406_v36 = vpop.permute.xlu1 %1405 }
 0x2b5   :  { %v1278_v37 = vpop.permute.xlu0 %1277  ;;  %1408 = vst.msk [vmem:[#allocation4 + $0x6] sm:$0x3] %vm966_vm4, %v1406_v36  ;;  %vm3436_vm4 = vcmask 60448  }
 0x2b6   :  { %1280 = vst.msk [vmem:[#allocation4 + $0x4] sm:$0x3] %vm987_vm10, %v1278_v37  ;;  %1914 = vrot.lane.b32.xlu1 %v1912_v38, %s2304_s2  ;;  %vm3437_vm14 = vmmov %vm3436_vm4 }
 0x2b7   :  { %1782 = vrot.lane.b32.xlu0 %v1780_v39, %s2307_s18  ;;  %vm3440_vm9 = vmmov %vm3436_vm4 }
 0x2b8   :  { %v1412_v40 = vpop.permute.xlu1 %1411  ;;  %vm3441_vm0 = vmmov %vm3436_vm4 }
 0x2b9   :  { %v1540_v41 = vpop.permute.xlu0 %1539  ;;  %1414 = vst.msk [vmem:[#allocation4 + $0x6] sm:$0x3] %vm973_vm11, %v1412_v40  ;;  %vm1549_vm11 = vcmask 126048   ;;  %vm3442_vm1 = vmmov %vm3441_vm0 }
 0x2ba   :  { %1543 = vst.msk [vmem:[#allocation5] sm:$0xf] %vm1542_vm12, %v1540_v41  ;;  %1826 = vrot.lane.b32.xlu1 %v1824_v42, %s2306_s17  ;;  %vm3443_vm3 = vmmov %vm3441_vm0 }
 0x2bb   :  { %1876 = vrot.lane.b32.xlu0 %v1874_v43, %s2306_s17 }
 0x2bc   :  { %v1418_v44 = vpop.permute.xlu1 %1417 }
 0x2bd   :  { %v1641_v33 = vpop.permute.xlu0 %1640  ;;  %1420 = vst.msk [vmem:[#allocation4 + $0x6] sm:$0x3] %vm980_vm13, %v1418_v44  ;;  %vm1448_vm13 = vcmask 818176  }
 0x2be   :  { %1643 = vst.msk [vmem:[#allocation5 + $0x8] sm:$0xf] %vm3436_vm4, %v1641_v33  ;;  %1920 = vrot.lane.b32.xlu1 %v1918_v45, %s2305_s12  ;;  %vm1952_vm4 = vcmask 293888  }
 0x2bf   :  { %1882 = vrot.lane.b32.xlu0 %v1880_v46, %s2307_s18 }
 0x2c0   :  { %v1424_v47 = vpop.permute.xlu1 %1423 }
 0x2c1   :  { %v1547_v48 = vpop.permute.xlu0 %1546  ;;  %1426 = vst.msk [vmem:[#allocation4 + $0x6] sm:$0x3] %vm987_vm10, %v1424_v47  ;;  %vm1556_vm10 = vcmask 158848  }
 0x2c2   :  { %1550 = vst.msk [vmem:[#allocation5] sm:$0xf] %vm1549_vm11, %v1547_v48  ;;  %1832 = vrot.lane.b32.xlu1 %v1830_v49, %s2307_s18 }
 0x2c4   :  { %v1597_v50 = vpop.permute.xlu1 %1596 }
 0x2c5   :  { %v1647_v51 = vpop.permute.xlu0 %1646  ;;  %1599 = vst.msk [vmem:[#allocation5 + $0x4] sm:$0xf] %vm1542_vm12, %v1597_v50 }
 0x2c6   :  { %1649 = vst.msk [vmem:[#allocation5 + $0x8] sm:$0xf] %vm1542_vm12, %v1647_v51  ;;  %1926 = vrot.lane.b32.xlu1 %v1924_v53, %s2306_s17 }
 0x2c8   :  { %v1691_v55 = vpop.permute.xlu1 %1690  ;;  %v1427_v26 = vld [vmem:[#allocation4] sm:$0xff] }
 0x2c9   :  { %v1554_v56 = vpop.permute.xlu0 %1553  ;;  %1693 = vst.msk [vmem:[#allocation5 + $0xc] sm:$0xf] %vm3437_vm14, %v1691_v55  ;;  %2190 = vmatmul.mubr.msk.f32.vlgmr.msra.gmra.mrb[0].mxu1 %vm1448_vm13, %v1427_v26  ;;  %v2086_v55 = vld [vmem:[%s3404_s4] ss:$0 sm:$0xff] }
 0x2ca   :  { %1557 = vst.msk [vmem:[#allocation5] sm:$0xf] %vm1556_vm10, %v1554_v56  ;;  %1932 = vrot.lane.b32.xlu1 %v1930_v57, %s2307_s18  ;;  %2232 = vmatpush3.bf16.msra.mxu1 %v3242_v4 }
 0x2cb   :  { %2234 = vmatprep.subr.bf16.mxu1 %v2233_v54 }
 0x2cc   :  { %v1603_v58 = vpop.permute.xlu1 %1602 }
 0x2cd   :  { %v1653_v59 = vpop.permute.xlu0 %1652  ;;  %1605 = vst.msk [vmem:[#allocation5 + $0x4] sm:$0xf] %vm1549_vm11, %v1603_v58 }
 0x2ce   :  { %1655 = vst.msk [vmem:[#allocation5 + $0x8] sm:$0xf] %vm1549_vm11, %v1653_v59  ;;  %2236 = vmatpush3.bf16.msra.mxu1 %v2233_v54 }
 0x2cf   :  { %2200 = vmatprep.subr.msk.mxu1 %vm3438_vm7, %v1944_v60 }
 0x2d0   :  { %v1697_v61 = vpop.permute.xlu1 %1696 }
 0x2d1   :  { %v1561_v62 = vpop.permute.xlu0 %1560  ;;  %1699 = vst.msk [vmem:[#allocation5 + $0xc] sm:$0xf] %vm1542_vm12, %v1697_v61 }
 0x2d2   :  { %1564 = vst.msk [vmem:[#allocation5] sm:$0xf] %vm1563_vm6, %v1561_v62  ;;  %2201 = vmatpush3.msk.msra.mxu1 %vm3439_vm8, %v1944_v60 }
 0x2d4   :  { %v1609_v63 = vpop.permute.xlu1 %1608 }
 0x2d5   :  { %v1659_v0 = vpop.permute.xlu0 %1658  ;;  %1611 = vst.msk [vmem:[#allocation5 + $0x4] sm:$0xf] %vm1556_vm10, %v1609_v63 }
 0x2d6   :  { %1661 = vst.msk [vmem:[#allocation5 + $0x8] sm:$0xf] %vm1556_vm10, %v1659_v0 }
 0x2d8   :  { %v1703_v1 = vpop.permute.xlu1 %1702 }
 0x2d9   :  { %v1741_v2 = vpop.permute.xlu0 %1740  ;;  %1705 = vst.msk [vmem:[#allocation5 + $0xc] sm:$0xf] %vm1549_vm11, %v1703_v1 }
 0x2da   :  { %1743 = vst.msk [vmem:[#allocation5 + $0x10] sm:$0xf] %vm3440_vm9, %v1741_v2 }
 0x2dc   :  { %v1615_v3 = vpop.permute.xlu1 %1614 }
 0x2dd   :  { %v1568_v4 = vpop.permute.xlu0 %1567  ;;  %1617 = vst.msk [vmem:[#allocation5 + $0x4] sm:$0xf] %vm1563_vm6, %v1615_v3 }
 0x2de   :  { %1571 = vst.msk [vmem:[#allocation5] sm:$0xf] %vm1570_vm15, %v1568_v4 }
 0x2e0   :  { %v1709_v5 = vpop.permute.xlu1 %1708 }
 0x2e1   :  { %v1665_v6 = vpop.permute.xlu0 %1664  ;;  %1711 = vst.msk [vmem:[#allocation5 + $0xc] sm:$0xf] %vm1556_vm10, %v1709_v5 }
 0x2e2   :  { %1667 = vst.msk [vmem:[#allocation5 + $0x8] sm:$0xf] %vm1563_vm6, %v1665_v6 }
 0x2e4   :  { %v1791_v7 = vpop.permute.xlu1 %1790 }
 0x2e5   :  { %v1747_v8 = vpop.permute.xlu0 %1746  ;;  %1793 = vst.msk [vmem:[#allocation5 + $0x14] sm:$0xf] %vm3441_vm0, %v1791_v7 }
 0x2e6   :  { %1749 = vst.msk [vmem:[#allocation5 + $0x10] sm:$0xf] %vm1542_vm12, %v1747_v8 }
 0x2e8   :  { %v1621_v9 = vpop.permute.xlu1 %1620 }
 0x2e9   :  { %v1841_v10 = vpop.permute.xlu0 %1840  ;;  %1623 = vst.msk [vmem:[#allocation5 + $0x4] sm:$0xf] %vm1570_vm15, %v1621_v9 }
 0x2ea   :  { %1843 = vst.msk [vmem:[#allocation5 + $0x18] sm:$0xf] %vm3442_vm1, %v1841_v10 }
 0x2ec   :  { %v1715_v11 = vpop.permute.xlu1 %1714 }
 0x2ed   :  { %v1575_v12 = vpop.permute.xlu0 %1574  ;;  %1717 = vst.msk [vmem:[#allocation5 + $0xc] sm:$0xf] %vm1563_vm6, %v1715_v11 }
 0x2ee   :  { %1578 = vst.msk [vmem:[#allocation5] sm:$0xf] %vm1577_vm2, %v1575_v12 }
 0x2f0   :  { %v1797_v13 = vpop.permute.xlu1 %1796 }
 0x2f1   :  { %v1671_v14 = vpop.permute.xlu0 %1670  ;;  %1799 = vst.msk [vmem:[#allocation5 + $0x14] sm:$0xf] %vm1542_vm12, %v1797_v13 }
 0x2f2   :  { %1673 = vst.msk [vmem:[#allocation5 + $0x8] sm:$0xf] %vm1570_vm15, %v1671_v14 }
 0x2f4   :  { %v1891_v15 = vpop.permute.xlu1 %1890 }
 0x2f5   :  { %v1753_v16 = vpop.permute.xlu0 %1752  ;;  %1893 = vst.msk [vmem:[#allocation5 + $0x1c] sm:$0xf] %vm3443_vm3, %v1891_v15 }
 0x2f6   :  { %1755 = vst.msk [vmem:[#allocation5 + $0x10] sm:$0xf] %vm1549_vm11, %v1753_v16 }
 0x2f8   :  { %v1627_v17 = vpop.permute.xlu1 %1626 }
 0x2f9   :  { %v1847_v18 = vpop.permute.xlu0 %1846  ;;  %1629 = vst.msk [vmem:[#allocation5 + $0x4] sm:$0xf] %vm1577_vm2, %v1627_v17 }
 0x2fa   :  { %1849 = vst.msk [vmem:[#allocation5 + $0x18] sm:$0xf] %vm1542_vm12, %v1847_v18 }
 0x2fc   :  { %v1721_v20 = vpop.permute.xlu1 %1720 }
 0x2fd   :  { %v1582_v21 = vpop.permute.xlu0 %1581  ;;  %1723 = vst.msk [vmem:[#allocation5 + $0xc] sm:$0xf] %vm1570_vm15, %v1721_v20 }
 0x2fe   :  { %1585 = vst.msk [vmem:[#allocation5] sm:$0xf] %vm1584_vm5, %v1582_v21 }
 0x300   :  { %v1803_v22 = vpop.permute.xlu1 %1802 }
 0x301   :  { %v1677_v23 = vpop.permute.xlu0 %1676  ;;  %1805 = vst.msk [vmem:[#allocation5 + $0x14] sm:$0xf] %vm1549_vm11, %v1803_v22 }
 0x302   :  { %1679 = vst.msk [vmem:[#allocation5 + $0x8] sm:$0xf] %vm1577_vm2, %v1677_v23 }
 0x304   :  { %v1897_v24 = vpop.permute.xlu1 %1896 }
 0x305   :  { %v1759_v25 = vpop.permute.xlu0 %1758  ;;  %1899 = vst.msk [vmem:[#allocation5 + $0x1c] sm:$0xf] %vm1542_vm12, %v1897_v24  ;;  %vm3444_vm12 = vcmask 31744  }
 0x306   :  { %1761 = vst.msk [vmem:[#allocation5 + $0x10] sm:$0xf] %vm1556_vm10, %v1759_v25 }
 0x308   :  { %v1633_v27 = vpop.permute.xlu1 %1632 }
 0x309   :  { %v1853_v28 = vpop.permute.xlu0 %1852  ;;  %1635 = vst.msk [vmem:[#allocation5 + $0x4] sm:$0xf] %vm1584_vm5, %v1633_v27 }
 0x30a   :  { %1855 = vst.msk [vmem:[#allocation5 + $0x18] sm:$0xf] %vm1549_vm11, %v1853_v28 }
 0x30c   :  { %v1727_v29 = vpop.permute.xlu1 %1726 }
 0x30d   :  { %v1683_v30 = vpop.permute.xlu0 %1682  ;;  %1729 = vst.msk [vmem:[#allocation5 + $0xc] sm:$0xf] %vm1577_vm2, %v1727_v29 }
 0x30e   :  { %1685 = vst.msk [vmem:[#allocation5 + $0x8] sm:$0xf] %vm1584_vm5, %v1683_v30 }
 0x310   :  { %v1809_v31 = vpop.permute.xlu1 %1808  ;;  %v1936_v34 = vld [vmem:[#allocation5] sm:$0xff] }
 0x311   :  { %v1765_v32 = vpop.permute.xlu0 %1764  ;;  %1811 = vst.msk [vmem:[#allocation5 + $0x14] sm:$0xf] %vm1556_vm10, %v1809_v31  ;;  %2202 = vmatprep.mubr.msk.f32.mxu1 %vm1952_vm4, %v1936_v34 }
 0x312   :  { %1767 = vst.msk [vmem:[#allocation5 + $0x10] sm:$0xf] %vm1563_vm6, %v1765_v32 }
 0x314   :  { %v1903_v35 = vpop.permute.xlu1 %1902 }
 0x315   :  { %v1859_v36 = vpop.permute.xlu0 %1858  ;;  %1905 = vst.msk [vmem:[#allocation5 + $0x1c] sm:$0xf] %vm1549_vm11, %v1903_v35 }
 0x316   :  { %1861 = vst.msk [vmem:[#allocation5 + $0x18] sm:$0xf] %vm1556_vm10, %v1859_v36 }
 0x318   :  { %v1733_v37 = vpop.permute.xlu1 %1732 }
 0x319   :  { %v1771_v38 = vpop.permute.xlu0 %1770  ;;  %1735 = vst.msk [vmem:[#allocation5 + $0xc] sm:$0xf] %vm1584_vm5, %v1733_v37 }
 0x31a   :  { %1773 = vst.msk [vmem:[#allocation5 + $0x10] sm:$0xf] %vm1570_vm15, %v1771_v38 }
 0x31c   :  { %v1815_v39 = vpop.permute.xlu1 %1814 }
 0x31d   :  { %v1865_v40 = vpop.permute.xlu0 %1864  ;;  %1817 = vst.msk [vmem:[#allocation5 + $0x14] sm:$0xf] %vm1563_vm6, %v1815_v39 }
 0x31e   :  { %1867 = vst.msk [vmem:[#allocation5 + $0x18] sm:$0xf] %vm1563_vm6, %v1865_v40 }
 0x320   :  { %v1909_v41 = vpop.permute.xlu1 %1908  ;;  %v1937_v43 = vld [vmem:[#allocation5 + $0x8] sm:$0xff] }
 0x321   :  { %v1777_v42 = vpop.permute.xlu0 %1776  ;;  %1911 = vst.msk [vmem:[#allocation5 + $0x1c] sm:$0xf] %vm1556_vm10, %v1909_v41  ;;  %2203 = vmatmul.mubr.msk.f32.vlgmr.msra.gmra.mrb[2].mxu1 %vm1952_vm4, %v1937_v43 }
 0x322   :  { %1779 = vst.msk [vmem:[#allocation5 + $0x10] sm:$0xf] %vm1577_vm2, %v1777_v42 }
 0x324   :  { %v1821_v44 = vpop.permute.xlu1 %1820 }
 0x325   :  { %v1871_v33 = vpop.permute.xlu0 %1870  ;;  %1823 = vst.msk [vmem:[#allocation5 + $0x14] sm:$0xf] %vm1570_vm15, %v1821_v44 }
 0x326   :  { %1873 = vst.msk [vmem:[#allocation5 + $0x18] sm:$0xf] %vm1570_vm15, %v1871_v33 }
 0x328   :  { %v1915_v45 = vpop.permute.xlu1 %1914 }
 0x329   :  { %v1783_v46 = vpop.permute.xlu0 %1782  ;;  %1917 = vst.msk [vmem:[#allocation5 + $0x1c] sm:$0xf] %vm1563_vm6, %v1915_v45 }
 0x32a   :  { %1785 = vst.msk [vmem:[#allocation5 + $0x10] sm:$0xf] %vm1584_vm5, %v1783_v46 }
 0x32c   :  { %v1827_v47 = vpop.permute.xlu1 %1826 }
 0x32d   :  { %v1877_v48 = vpop.permute.xlu0 %1876  ;;  %1829 = vst.msk [vmem:[#allocation5 + $0x14] sm:$0xf] %vm1577_vm2, %v1827_v47 }
 0x32e   :  { %1879 = vst.msk [vmem:[#allocation5 + $0x18] sm:$0xf] %vm1577_vm2, %v1877_v48 }
 0x330   :  { %v1921_v49 = vpop.permute.xlu1 %1920 }
 0x331   :  { %v1883_v50 = vpop.permute.xlu0 %1882  ;;  %1923 = vst.msk [vmem:[#allocation5 + $0x1c] sm:$0xf] %vm1570_vm15, %v1921_v49 }
 0x332   :  { %1885 = vst.msk [vmem:[#allocation5 + $0x18] sm:$0xf] %vm1584_vm5, %v1883_v50 }
 0x334   :  { %v1833_v51 = vpop.permute.xlu1 %1832 }
 0x335   :  { %1835 = vst.msk [vmem:[#allocation5 + $0x14] sm:$0xf] %vm1584_vm5, %v1833_v51 }
 0x338   :  { %v1927_v19 = vpop.permute.xlu1 %1926 }
 0x339   :  { %1929 = vst.msk [vmem:[#allocation5 + $0x1c] sm:$0xf] %vm1577_vm2, %v1927_v19 }
 0x33c   :  { %v1933_v52 = vpop.permute.xlu1 %1932  ;;  %v1938_v53 = vld [vmem:[#allocation5 + $0x10] sm:$0xff] }
 0x33d   :  { %1935 = vst.msk [vmem:[#allocation5 + $0x1c] sm:$0xf] %vm1584_vm5, %v1933_v52  ;;  %2205 = vmatprep.mubr.msk.f32.mxu1 %vm1952_vm4, %v1938_v53 }
 0x344   :  { %v1939_v54 = vld [vmem:[#allocation5 + $0x18] sm:$0xff] }
 0x345   :  { %2206 = vmatmul.mubr.msk.f32.gmra.mrb[4].mxu1 %vm1952_vm4, %v1939_v54 }
 0x39c   :  { %v1522_v56 = vpop.f32.mrb[0].mxu1 }
 0x39d   :  { %v1523_v26 = vadd.f32 %v2086_v55, %v1522_v56  ;;  %v2191_v57 = vpop.f32.mrb[1].mxu1 }
 0x39f   :  { %1526 = vst.msk [vmem:[#allocation6] sm:$0xff] %vm3444_vm12, %v1523_v26 }
 0x3a0   :  { %2280 = shalt.err (!%p2277_p4)
}
 0x3a1   :  { %s2281_s11 = scalar_lea.hbm %s3407_s7, 128 }
 0x3a2   :  { %p2282_p5 = scmp.ne.s32.totalorder %s3407_s7, %s2281_s11  ;;  %p2285_p6 = scmp.lt.u32.totalorder %s2281_s11, %s3407_s7 }
 0x3a4   :  { %p2287_p7 = pnand %p2285_p6, %p2282_p5 }
 0x3a6   :  { %2290 = shalt.err (!%p2287_p7)
}
 0x3a7   :  { %2066 = dma.vmem_to_hbm [thread:$0]  %s2064_s30, 128, %s3407_s7, [#allocation7]   ;;  %v2089_v58 = vld [vmem:[%s3406_s6] ss:$0 sm:$0xff]  ;;  %vm3445_vm11 = vmmov %vm3444_vm12 }
 0x3a8   :  { %vm3446_vm10 = vmmov %vm3445_vm11 }
 0x3a9   :  { %vm3447_vm13 = vmmov %vm3446_vm10 }
 0x3aa   :  { %vm3448_vm14 = vmmov %vm3446_vm10 }
 0x3f4   :  { %v2204_v59 = vpop.f32.mrb[2].mxu1 }
 0x3f5   :  { %v2040_v60 = vadd.f32 %v2204_v59, %v2089_v58  ;;  %v2034_v61 = vpop.f32.mrb[3].mxu1 }
 0x3f6   :  { %v2035_v62 = vadd.f32 %v2089_v58, %v2034_v61 }
 0x3f7   :  { %2054 = vst.msk [vmem:[%s3408_s8 + $0x8] sm:$0xff] %vm3445_vm11, %v2040_v60 }
 0x3f8   :  { %2053 = vst.msk [vmem:[%s3408_s8] sm:$0xff] %vm3446_vm10, %v2035_v62 }
 0x418   :  { %v2207_v63 = vpop.f32.mrb[4].mxu1 }
 0x419   :  { %v2050_v0 = vadd.f32 %v2207_v63, %v2089_v58  ;;  %v2044_v1 = vpop.f32.mrb[5].mxu1 }
 0x41a   :  { %v2045_v2 = vadd.f32 %v2089_v58, %v2044_v1 }
 0x41b   :  { %2056 = vst.msk [vmem:[%s3408_s8 + $0x18] sm:$0xff] %vm3447_vm13, %v2050_v0 }
 0x41c   :  { %2055 = vst.msk [vmem:[%s3408_s8 + $0x10] sm:$0xff] %vm3448_vm14, %v2045_v2 }
 0x41d   :  { %2291 = dma.done.wait [#allocation7], 128  }
 0x41e   :  { %2292 = vsyncadd [#allocation7], 4294967168 }
 0x41f   :  { %2074 = vsyncpa [#allocation7], 1 }

</bundles_post_ra>
